<compile_context>
chip_gen: v7x
topology: tpu7x:2x2x1
jax: 0.10.0
libtpu: 0.0.40
codegen_flags: <defaults>
</compile_context>

<pallas_src>
import functools

import jax
import jax.numpy as jnp
from jax.experimental import pallas as pl
from jax.experimental.pallas import tpu as pltpu  # noqa: F401 (TPU backend)

EPS = 1e-5  # PyTorch LayerNorm default eps


def _layernorm(x, gamma, beta):
    mu = jnp.mean(x, axis=-1, keepdims=True)
    var = jnp.mean((x - mu) ** 2, axis=-1, keepdims=True)   # biased, like PyTorch
    return (x - mu) * jax.lax.rsqrt(var + EPS) * gamma + beta


def fused_pos_decoder_kernel(x_ref,
                             wqkv_ref, bqkv_ref, wo_ref, bo_ref,
                             g1_ref, bt1_ref,
                             w1_ref, b1_ref, w2_ref, b2_ref,
                             g2_ref, bt2_ref,
                             tw1_ref, tb1_ref, tw2_ref, tb2_ref,
                             o_ref, *, n_head, num_layers):
    """4 fused post-norm TransformerEncoderLayers + transfer MLP, one block."""
    x = x_ref[...].astype(jnp.float32)                      # (B, L, D)
    B, L, D = x.shape
    hd = D // n_head
    scale = 1.0 / (float(hd) ** 0.5)

    h = x.reshape(B * L, D)                                 # token-major activations

    for layer in range(num_layers):                         # static layer loop
        # ---- fused QKV projection: one (D, 3D) matmul -------------------
        qkv = jnp.dot(h, wqkv_ref[layer],
                      preferred_element_type=jnp.float32) + bqkv_ref[layer]

        if n_head == 1:
            q = qkv[:, :D].reshape(B, L, D)
            k = qkv[:, D:2 * D].reshape(B, L, D)
            v = qkv[:, 2 * D:].reshape(B, L, D)
        else:
            def split_heads(t):
                return (t.reshape(B, L, n_head, hd)
                         .transpose(0, 2, 1, 3)
                         .reshape(B * n_head, L, hd))
            q = split_heads(qkv[:, :D])
            k = split_heads(qkv[:, D:2 * D])
            v = split_heads(qkv[:, 2 * D:])

        # ---- attention: batched dot_general, no explicit transpose ------
        s = jnp.einsum('bqd,bkd->bqk', q, k,
                       preferred_element_type=jnp.float32) * scale
        s = s - jnp.max(s, axis=-1, keepdims=True)
        p = jnp.exp(s)
        p = p * pl.reciprocal(jnp.sum(p, axis=-1, keepdims=True), approx=True)
        attn = jnp.einsum('bqk,bkd->bqd', p, v,
                          preferred_element_type=jnp.float32)
        if n_head == 1:
            attn = attn.reshape(B * L, D)
        else:
            attn = (attn.reshape(B, n_head, L, hd)
                        .transpose(0, 2, 1, 3)
                        .reshape(B * L, D))

        attn = jnp.dot(attn, wo_ref[layer],
                       preferred_element_type=jnp.float32) + bo_ref[layer]
        h1 = _layernorm(h + attn, g1_ref[layer], bt1_ref[layer])

        # ---- FFN (hidden zero-padded to a 128-lane multiple) ------------
        ff = jnp.maximum(
            jnp.dot(h1, w1_ref[layer],
                    preferred_element_type=jnp.float32) + b1_ref[layer], 0.0)
        ff = jnp.dot(ff, w2_ref[layer],
                     preferred_element_type=jnp.float32) + b2_ref[layer]
        h = _layernorm(h1 + ff, g2_ref[layer], bt2_ref[layer])

    # ---- transfer: Linear(D, 2D) -> ReLU -> Linear(2D, n_class padded) ---
    t = jnp.maximum(
        jnp.dot(h, tw1_ref[...],
                preferred_element_type=jnp.float32) + tb1_ref[...], 0.0)
    out = jnp.dot(t, tw2_ref[...],
                  preferred_element_type=jnp.float32) + tb2_ref[...]
    o_ref[...] = out.astype(o_ref.dtype)                    # (B*L, C_pad), lane-dense


def run_fused(batch, params, *, n_head):
    """batch: [B, L, D] -> logits for every token: [B*L, C_pad]."""
    B, L, D = batch.shape
    num_layers = params['wqkv'].shape[0]
    c_pad = params['t_w2'].shape[1]
    # No grid: the whole problem (a few hundred KB of weights + a 4 KB batch)
    # fits in VMEM as a single block; a grid would only add per-step overhead.
    # TODO(synk): on v7x, shard sentences across the 2 TensorCores (parallel
    # grid axis / core_map) once B is large enough to matter.
    return pl.pallas_call(
        functools.partial(fused_pos_decoder_kernel,
                          n_head=n_head, num_layers=num_layers),
        out_shape=jax.ShapeDtypeStruct((B * L, c_pad), jnp.float32),
    )(batch,
      params['wqkv'], params['bqkv'], params['wo'], params['bo'],
      params['g1'], params['bt1'],
      params['w1'], params['b1'], params['w2'], params['b2'],
      params['g2'], params['bt2'],
      params['t_w1'], params['t_b1'], params['t_w2'], params['t_b2'])


def _pad_to_128(n):
    return ((n + 127) // 128) * 128


def init_params(key, d_model, hidden, n_class, num_layers=4):
    """Per-layer weights stacked along a leading [num_layers, ...] axis.
    FFN hidden and transfer output are zero-padded to 128-lane multiples
    (zero pads are mathematically inert through ReLU + matmul)."""
    h_pad = _pad_to_128(hidden)
    c_pad = _pad_to_128(n_class)

    def nrm(k, shape, scale=0.05):
        return scale * jax.random.normal(k, shape, jnp.float32)

    names = ('wqkv', 'bqkv', 'wo', 'bo', 'g1', 'bt1',
             'w1', 'b1', 'w2', 'b2', 'g2', 'bt2')
    acc = {n: [] for n in names}
    for i in range(num_layers):
        ks = jax.random.split(jax.random.fold_in(key, i), 12)
        wq = nrm(ks[0], (d_model, d_model))
        wk = nrm(ks[1], (d_model, d_model))
        wv = nrm(ks[2], (d_model, d_model))
        bq = nrm(ks[3], (1, d_model))
        bk = nrm(ks[4], (1, d_model))
        bv = nrm(ks[5], (1, d_model))
        acc['wqkv'].append(jnp.concatenate([wq, wk, wv], axis=1))   # (D, 3D)
        acc['bqkv'].append(jnp.concatenate([bq, bk, bv], axis=1))   # (1, 3D)
        acc['wo'].append(nrm(ks[6], (d_model, d_model)))
        acc['bo'].append(nrm(ks[7], (1, d_model)))
        acc['g1'].append(jnp.ones((1, d_model), jnp.float32))
        acc['bt1'].append(jnp.zeros((1, d_model), jnp.float32))
        w1 = nrm(ks[8], (d_model, hidden))
        b1 = nrm(ks[9], (1, hidden))
        w2 = nrm(ks[10], (hidden, d_model))
        acc['w1'].append(jnp.pad(w1, ((0, 0), (0, h_pad - hidden))))
        acc['b1'].append(jnp.pad(b1, ((0, 0), (0, h_pad - hidden))))
        acc['w2'].append(jnp.pad(w2, ((0, h_pad - hidden), (0, 0))))
        acc['b2'].append(nrm(ks[11], (1, d_model)))
        acc['g2'].append(jnp.ones((1, d_model), jnp.float32))
        acc['bt2'].append(jnp.zeros((1, d_model), jnp.float32))

    params = {n: jnp.stack(v) for n, v in acc.items()}

    kts = jax.random.split(jax.random.fold_in(key, 1000), 4)
    t_w2 = nrm(kts[2], (2 * d_model, n_class))
    t_b2 = nrm(kts[3], (1, n_class))
    params.update(
        t_w1=nrm(kts[0], (d_model, 2 * d_model)),
        t_b1=nrm(kts[1], (1, 2 * d_model)),
        t_w2=jnp.pad(t_w2, ((0, 0), (0, c_pad - n_class))),
        t_b2=jnp.pad(t_b2, ((0, 0), (0, c_pad - n_class))),
        n_class=n_class,
    )
    return params


def pos_decoder_forward(params, z, encoded, lang_based_nodes, transformer_indices,
                        *, input_size, sequence_size, residual_connection, n_head):
    # x = F.pad(encoded, (0, input_size - z_dim - enc_dim))
    pad_amt = input_size - z.shape[1] - encoded.shape[1]
    x = jnp.pad(encoded, ((0, 0), (0, pad_amt)))

    # Sentence gathering / padding / stacking: pure indexing glue, stays in JAX.
    sentences = []
    for lang_nodes in lang_based_nodes:
        idx = jnp.asarray(lang_nodes, dtype=jnp.int32)
        if residual_connection:
            t = jnp.concatenate([z[idx, :], x[idx, :]], axis=1)
        else:
            t = z[idx, :]
        t = jnp.pad(t, ((0, sequence_size - t.shape[0]), (0, 0)))
        sentences.append(t)
    batch = jnp.stack(sentences)                          # [B, L, D], batch-first

    # One fused Pallas call: 4 encoder layers + transfer MLP on all tokens.
    logits_full = run_fused(batch, params, n_head=n_head)  # [B*L, C_pad]

    rows = jnp.asarray(transformer_indices[0], jnp.int32)
    cols = jnp.asarray(transformer_indices[1], jnp.int32)
    flat = rows * sequence_size + cols
    return logits_full[flat, :params['n_class']]           # [T, n_class]


if __name__ == "__main__":
    # Module config (input_size=64 is already a multiple of 64 -> n_head=1).
    requested_input_size = 64
    n_head = max(1, requested_input_size // 64)
    if n_head * 64 != requested_input_size:
        n_head += 1
    input_size = n_head * 64
    hidden_size = 32
    n_class = 8
    sequence_size = 8
    residual_connection = True

    key = jax.random.PRNGKey(0)
    k_z, k_e, k_p = jax.random.split(key, 3)

    num_nodes = 10
    z_dim = 40
    enc_dim = 16
    z = jax.random.normal(k_z, (num_nodes, z_dim), jnp.float32)
    encoded = jax.random.normal(k_e, (num_nodes, enc_dim), jnp.float32)

    # Two "sentences" of nodes; real token positions for the final gather.
    lang_based_nodes = [[0, 1, 2], [3, 4, 5, 6]]
    transformer_indices = ([0, 0, 0, 1, 1, 1, 1],
                           [0, 1, 2, 0, 1, 2, 3])

    params = init_params(k_p, input_size, hidden_size, n_class)

    res = pos_decoder_forward(
        params, z, encoded, lang_based_nodes, transformer_indices,
        input_size=input_size, sequence_size=sequence_size,
        residual_connection=residual_connection, n_head=n_head)
    res = jax.block_until_ready(res)

    assert res.shape == (len(transformer_indices[0]), n_class)
    assert bool(jnp.all(jnp.isfinite(res)))
    print("KERNEL_OK")
</pallas_src>

<mosaic_0001>
module attributes {stable_mosaic.version = 11 : i64} {
  func.func @fused_pos_decoder_kernel(%arg0: memref<2x8x64xf32, #tpu.memory_space<vmem>>, %arg1: memref<4x64x192xf32, #tpu.memory_space<vmem>>, %arg2: memref<4x1x192xf32, #tpu.memory_space<vmem>>, %arg3: memref<4x64x64xf32, #tpu.memory_space<vmem>>, %arg4: memref<4x1x64xf32, #tpu.memory_space<vmem>>, %arg5: memref<4x1x64xf32, #tpu.memory_space<vmem>>, %arg6: memref<4x1x64xf32, #tpu.memory_space<vmem>>, %arg7: memref<4x64x128xf32, #tpu.memory_space<vmem>>, %arg8: memref<4x1x128xf32, #tpu.memory_space<vmem>>, %arg9: memref<4x128x64xf32, #tpu.memory_space<vmem>>, %arg10: memref<4x1x64xf32, #tpu.memory_space<vmem>>, %arg11: memref<4x1x64xf32, #tpu.memory_space<vmem>>, %arg12: memref<4x1x64xf32, #tpu.memory_space<vmem>>, %arg13: memref<64x128xf32, #tpu.memory_space<vmem>>, %arg14: memref<1x128xf32, #tpu.memory_space<vmem>>, %arg15: memref<128x128xf32, #tpu.memory_space<vmem>>, %arg16: memref<1x128xf32, #tpu.memory_space<vmem>>, %arg17: memref<16x128xf32, #tpu.memory_space<vmem>>) attributes {dimension_semantics = [], scalar_prefetch = 0 : i64, scratch_operands = 0 : i64, tpu.core_type = #tpu.core_type<tc>} {
    %c0 = arith.constant 0 : index
    %c0_0 = arith.constant 0 : index
    %c0_1 = arith.constant 0 : index
    %0 = vector.load %arg0[%c0, %c0_0, %c0_1] : memref<2x8x64xf32, #tpu.memory_space<vmem>>, vector<2x8x64xf32>
    %1 = vector.shape_cast %0 : vector<2x8x64xf32> to vector<16x64xf32>
    %c0_2 = arith.constant 0 : index
    %c0_3 = arith.constant 0 : index
    %c0_4 = arith.constant 0 : index
    %2 = vector.load %arg1[%c0_2, %c0_3, %c0_4] : memref<4x64x192xf32, #tpu.memory_space<vmem>>, vector<1x64x192xf32>
    %3 = vector.shape_cast %2 : vector<1x64x192xf32> to vector<64x192xf32>
    %cst = arith.constant dense<0.000000e+00> : vector<16x192xf32>
    %4 = tpu.matmul %1, %3, %cst {dimension_numbers = #tpu.dot_dimension_numbers<[1], [0], [0], [1], [0, 0, 1, 1], [], []>} : vector<16x64xf32>, vector<64x192xf32>, vector<16x192xf32> -> vector<16x192xf32>
    %c0_5 = arith.constant 0 : index
    %c0_6 = arith.constant 0 : index
    %c0_7 = arith.constant 0 : index
    %5 = vector.load %arg2[%c0_5, %c0_6, %c0_7] : memref<4x1x192xf32, #tpu.memory_space<vmem>>, vector<1x1x192xf32>
    %6 = vector.shape_cast %5 : vector<1x1x192xf32> to vector<1x192xf32>
    %7 = vector.broadcast %6 : vector<1x192xf32> to vector<16x192xf32>
    %8 = arith.addf %4, %7 : vector<16x192xf32>
    %9 = vector.extract_strided_slice %8 {offsets = [0, 0], sizes = [16, 64], strides = [1, 1]} : vector<16x192xf32> to vector<16x64xf32>
    %10 = vector.shape_cast %9 : vector<16x64xf32> to vector<2x8x64xf32>
    %11 = vector.extract_strided_slice %8 {offsets = [0, 64], sizes = [16, 64], strides = [1, 1]} : vector<16x192xf32> to vector<16x64xf32>
    %12 = vector.shape_cast %11 : vector<16x64xf32> to vector<2x8x64xf32>
    %13 = vector.extract_strided_slice %8 {offsets = [0, 128], sizes = [16, 64], strides = [1, 1]} : vector<16x192xf32> to vector<16x64xf32>
    %14 = vector.shape_cast %13 : vector<16x64xf32> to vector<2x8x64xf32>
    "tpu.trace_start"() <{level = 10 : i32, message = "bqd,bkd->bqk"}> : () -> ()
    %cst_8 = arith.constant dense<0.000000e+00> : vector<2x8x8xf32>
    %15 = tpu.matmul %10, %12, %cst_8 {dimension_numbers = #tpu.dot_dimension_numbers<[2], [2], [1], [1], [0, 0, 0, 1, 1, 1], [0], [0]>} : vector<2x8x64xf32>, vector<2x8x64xf32>, vector<2x8x8xf32> -> vector<2x8x8xf32>
    "tpu.trace_stop"() : () -> ()
    %cst_9 = arith.constant 1.250000e-01 : f32
    %16 = vector.broadcast %cst_9 : f32 to vector<2x8x8xf32>
    %17 = arith.mulf %15, %16 : vector<2x8x8xf32>
    %cst_10 = arith.constant dense<0xFF800000> : vector<2x8xf32>
    %18 = vector.multi_reduction <maximumf>, %17, %cst_10 [2] : vector<2x8x8xf32> to vector<2x8xf32>
    %19 = vector.shape_cast %18 : vector<2x8xf32> to vector<2x8x1xf32>
    %20 = vector.broadcast %19 : vector<2x8x1xf32> to vector<2x8x8xf32>
    %21 = arith.subf %17, %20 : vector<2x8x8xf32>
    %22 = math.exp %21 : vector<2x8x8xf32>
    %cst_11 = arith.constant dense<0.000000e+00> : vector<2x8xf32>
    %23 = vector.multi_reduction <add>, %22, %cst_11 [2] : vector<2x8x8xf32> to vector<2x8xf32>
    %24 = vector.shape_cast %23 : vector<2x8xf32> to vector<2x8x1xf32>
    %25 = tpu.reciprocal %24 {approx = true} : vector<2x8x1xf32> -> vector<2x8x1xf32>
    %26 = vector.broadcast %25 : vector<2x8x1xf32> to vector<2x8x8xf32>
    %27 = arith.mulf %22, %26 : vector<2x8x8xf32>
    "tpu.trace_start"() <{level = 10 : i32, message = "bqk,bkd->bqd"}> : () -> ()
    %cst_12 = arith.constant dense<0.000000e+00> : vector<2x8x64xf32>
    %28 = tpu.matmul %27, %14, %cst_12 {dimension_numbers = #tpu.dot_dimension_numbers<[2], [1], [1], [2], [0, 0, 0, 1, 1, 2], [0], [0]>} : vector<2x8x8xf32>, vector<2x8x64xf32>, vector<2x8x64xf32> -> vector<2x8x64xf32>
    "tpu.trace_stop"() : () -> ()
    %29 = vector.shape_cast %28 : vector<2x8x64xf32> to vector<16x64xf32>
    %c0_13 = arith.constant 0 : index
    %c0_14 = arith.constant 0 : index
    %c0_15 = arith.constant 0 : index
    %30 = vector.load %arg3[%c0_13, %c0_14, %c0_15] : memref<4x64x64xf32, #tpu.memory_space<vmem>>, vector<1x64x64xf32>
    %31 = vector.shape_cast %30 : vector<1x64x64xf32> to vector<64x64xf32>
    %cst_16 = arith.constant dense<0.000000e+00> : vector<16x64xf32>
    %32 = tpu.matmul %29, %31, %cst_16 {dimension_numbers = #tpu.dot_dimension_numbers<[1], [0], [0], [1], [0, 0, 1, 1], [], []>} : vector<16x64xf32>, vector<64x64xf32>, vector<16x64xf32> -> vector<16x64xf32>
    %c0_17 = arith.constant 0 : index
    %c0_18 = arith.constant 0 : index
    %c0_19 = arith.constant 0 : index
    %33 = vector.load %arg4[%c0_17, %c0_18, %c0_19] : memref<4x1x64xf32, #tpu.memory_space<vmem>>, vector<1x1x64xf32>
    %34 = vector.shape_cast %33 : vector<1x1x64xf32> to vector<1x64xf32>
    %35 = vector.broadcast %34 : vector<1x64xf32> to vector<16x64xf32>
    %36 = arith.addf %32, %35 : vector<16x64xf32>
    %37 = arith.addf %1, %36 : vector<16x64xf32>
    %c0_20 = arith.constant 0 : index
    %c0_21 = arith.constant 0 : index
    %c0_22 = arith.constant 0 : index
    %38 = vector.load %arg5[%c0_20, %c0_21, %c0_22] : memref<4x1x64xf32, #tpu.memory_space<vmem>>, vector<1x1x64xf32>
    %39 = vector.shape_cast %38 : vector<1x1x64xf32> to vector<1x64xf32>
    %c0_23 = arith.constant 0 : index
    %c0_24 = arith.constant 0 : index
    %c0_25 = arith.constant 0 : index
    %40 = vector.load %arg6[%c0_23, %c0_24, %c0_25] : memref<4x1x64xf32, #tpu.memory_space<vmem>>, vector<1x1x64xf32>
    %41 = vector.shape_cast %40 : vector<1x1x64xf32> to vector<1x64xf32>
    %cst_26 = arith.constant dense<0.000000e+00> : vector<16xf32>
    %42 = vector.multi_reduction <add>, %37, %cst_26 [1] : vector<16x64xf32> to vector<16xf32>
    %43 = vector.shape_cast %42 : vector<16xf32> to vector<16x1xf32>
    %cst_27 = arith.constant 6.400000e+01 : f32
    %44 = vector.broadcast %cst_27 : f32 to vector<16x1xf32>
    %45 = arith.divf %43, %44 : vector<16x1xf32>
    %46 = vector.broadcast %45 : vector<16x1xf32> to vector<16x64xf32>
    %47 = arith.subf %37, %46 : vector<16x64xf32>
    %48 = arith.mulf %47, %47 : vector<16x64xf32>
    %cst_28 = arith.constant dense<0.000000e+00> : vector<16xf32>
    %49 = vector.multi_reduction <add>, %48, %cst_28 [1] : vector<16x64xf32> to vector<16xf32>
    %50 = vector.shape_cast %49 : vector<16xf32> to vector<16x1xf32>
    %cst_29 = arith.constant 6.400000e+01 : f32
    %51 = vector.broadcast %cst_29 : f32 to vector<16x1xf32>
    %52 = arith.divf %50, %51 : vector<16x1xf32>
    %53 = vector.broadcast %45 : vector<16x1xf32> to vector<16x64xf32>
    %54 = arith.subf %37, %53 : vector<16x64xf32>
    %cst_30 = arith.constant 9.99999974E-6 : f32
    %55 = vector.broadcast %cst_30 : f32 to vector<16x1xf32>
    %56 = arith.addf %52, %55 : vector<16x1xf32>
    %57 = math.rsqrt %56 : vector<16x1xf32>
    %58 = vector.broadcast %57 : vector<16x1xf32> to vector<16x64xf32>
    %59 = arith.mulf %54, %58 : vector<16x64xf32>
    %60 = vector.broadcast %39 : vector<1x64xf32> to vector<16x64xf32>
    %61 = arith.mulf %59, %60 : vector<16x64xf32>
    %62 = vector.broadcast %41 : vector<1x64xf32> to vector<16x64xf32>
    %63 = arith.addf %61, %62 : vector<16x64xf32>
    %c0_31 = arith.constant 0 : index
    %c0_32 = arith.constant 0 : index
    %c0_33 = arith.constant 0 : index
    %64 = vector.load %arg7[%c0_31, %c0_32, %c0_33] : memref<4x64x128xf32, #tpu.memory_space<vmem>>, vector<1x64x128xf32>
    %65 = vector.shape_cast %64 : vector<1x64x128xf32> to vector<64x128xf32>
    %cst_34 = arith.constant dense<0.000000e+00> : vector<16x128xf32>
    %66 = tpu.matmul %63, %65, %cst_34 {dimension_numbers = #tpu.dot_dimension_numbers<[1], [0], [0], [1], [0, 0, 1, 1], [], []>} : vector<16x64xf32>, vector<64x128xf32>, vector<16x128xf32> -> vector<16x128xf32>
    %c0_35 = arith.constant 0 : index
    %c0_36 = arith.constant 0 : index
    %c0_37 = arith.constant 0 : index
    %67 = vector.load %arg8[%c0_35, %c0_36, %c0_37] : memref<4x1x128xf32, #tpu.memory_space<vmem>>, vector<1x1x128xf32>
    %68 = vector.shape_cast %67 : vector<1x1x128xf32> to vector<1x128xf32>
    %69 = vector.broadcast %68 : vector<1x128xf32> to vector<16x128xf32>
    %70 = arith.addf %66, %69 : vector<16x128xf32>
    %cst_38 = arith.constant 0.000000e+00 : f32
    %71 = vector.broadcast %cst_38 : f32 to vector<16x128xf32>
    %72 = arith.maximumf %70, %71 : vector<16x128xf32>
    %c0_39 = arith.constant 0 : index
    %c0_40 = arith.constant 0 : index
    %c0_41 = arith.constant 0 : index
    %73 = vector.load %arg9[%c0_39, %c0_40, %c0_41] : memref<4x128x64xf32, #tpu.memory_space<vmem>>, vector<1x128x64xf32>
    %74 = vector.shape_cast %73 : vector<1x128x64xf32> to vector<128x64xf32>
    %cst_42 = arith.constant dense<0.000000e+00> : vector<16x64xf32>
    %75 = tpu.matmul %72, %74, %cst_42 {dimension_numbers = #tpu.dot_dimension_numbers<[1], [0], [0], [1], [0, 0, 1, 1], [], []>} : vector<16x128xf32>, vector<128x64xf32>, vector<16x64xf32> -> vector<16x64xf32>
    %c0_43 = arith.constant 0 : index
    %c0_44 = arith.constant 0 : index
    %c0_45 = arith.constant 0 : index
    %76 = vector.load %arg10[%c0_43, %c0_44, %c0_45] : memref<4x1x64xf32, #tpu.memory_space<vmem>>, vector<1x1x64xf32>
    %77 = vector.shape_cast %76 : vector<1x1x64xf32> to vector<1x64xf32>
    %78 = vector.broadcast %77 : vector<1x64xf32> to vector<16x64xf32>
    %79 = arith.addf %75, %78 : vector<16x64xf32>
    %80 = arith.addf %63, %79 : vector<16x64xf32>
    %c0_46 = arith.constant 0 : index
    %c0_47 = arith.constant 0 : index
    %c0_48 = arith.constant 0 : index
    %81 = vector.load %arg11[%c0_46, %c0_47, %c0_48] : memref<4x1x64xf32, #tpu.memory_space<vmem>>, vector<1x1x64xf32>
    %82 = vector.shape_cast %81 : vector<1x1x64xf32> to vector<1x64xf32>
    %c0_49 = arith.constant 0 : index
    %c0_50 = arith.constant 0 : index
    %c0_51 = arith.constant 0 : index
    %83 = vector.load %arg12[%c0_49, %c0_50, %c0_51] : memref<4x1x64xf32, #tpu.memory_space<vmem>>, vector<1x1x64xf32>
    %84 = vector.shape_cast %83 : vector<1x1x64xf32> to vector<1x64xf32>
    %cst_52 = arith.constant dense<0.000000e+00> : vector<16xf32>
    %85 = vector.multi_reduction <add>, %80, %cst_52 [1] : vector<16x64xf32> to vector<16xf32>
    %86 = vector.shape_cast %85 : vector<16xf32> to vector<16x1xf32>
    %cst_53 = arith.constant 6.400000e+01 : f32
    %87 = vector.broadcast %cst_53 : f32 to vector<16x1xf32>
    %88 = arith.divf %86, %87 : vector<16x1xf32>
    %89 = vector.broadcast %88 : vector<16x1xf32> to vector<16x64xf32>
    %90 = arith.subf %80, %89 : vector<16x64xf32>
    %91 = arith.mulf %90, %90 : vector<16x64xf32>
    %cst_54 = arith.constant dense<0.000000e+00> : vector<16xf32>
    %92 = vector.multi_reduction <add>, %91, %cst_54 [1] : vector<16x64xf32> to vector<16xf32>
    %93 = vector.shape_cast %92 : vector<16xf32> to vector<16x1xf32>
    %cst_55 = arith.constant 6.400000e+01 : f32
    %94 = vector.broadcast %cst_55 : f32 to vector<16x1xf32>
    %95 = arith.divf %93, %94 : vector<16x1xf32>
    %96 = vector.broadcast %88 : vector<16x1xf32> to vector<16x64xf32>
    %97 = arith.subf %80, %96 : vector<16x64xf32>
    %cst_56 = arith.constant 9.99999974E-6 : f32
    %98 = vector.broadcast %cst_56 : f32 to vector<16x1xf32>
    %99 = arith.addf %95, %98 : vector<16x1xf32>
    %100 = math.rsqrt %99 : vector<16x1xf32>
    %101 = vector.broadcast %100 : vector<16x1xf32> to vector<16x64xf32>
    %102 = arith.mulf %97, %101 : vector<16x64xf32>
    %103 = vector.broadcast %82 : vector<1x64xf32> to vector<16x64xf32>
    %104 = arith.mulf %102, %103 : vector<16x64xf32>
    %105 = vector.broadcast %84 : vector<1x64xf32> to vector<16x64xf32>
    %106 = arith.addf %104, %105 : vector<16x64xf32>
    %c1 = arith.constant 1 : index
    %c0_57 = arith.constant 0 : index
    %c0_58 = arith.constant 0 : index
    %107 = vector.load %arg1[%c1, %c0_57, %c0_58] : memref<4x64x192xf32, #tpu.memory_space<vmem>>, vector<1x64x192xf32>
    %108 = vector.shape_cast %107 : vector<1x64x192xf32> to vector<64x192xf32>
    %cst_59 = arith.constant dense<0.000000e+00> : vector<16x192xf32>
    %109 = tpu.matmul %106, %108, %cst_59 {dimension_numbers = #tpu.dot_dimension_numbers<[1], [0], [0], [1], [0, 0, 1, 1], [], []>} : vector<16x64xf32>, vector<64x192xf32>, vector<16x192xf32> -> vector<16x192xf32>
    %c1_60 = arith.constant 1 : index
    %c0_61 = arith.constant 0 : index
    %c0_62 = arith.constant 0 : index
    %110 = vector.load %arg2[%c1_60, %c0_61, %c0_62] : memref<4x1x192xf32, #tpu.memory_space<vmem>>, vector<1x1x192xf32>
    %111 = vector.shape_cast %110 : vector<1x1x192xf32> to vector<1x192xf32>
    %112 = vector.broadcast %111 : vector<1x192xf32> to vector<16x192xf32>
    %113 = arith.addf %109, %112 : vector<16x192xf32>
    %114 = vector.extract_strided_slice %113 {offsets = [0, 0], sizes = [16, 64], strides = [1, 1]} : vector<16x192xf32> to vector<16x64xf32>
    %115 = vector.shape_cast %114 : vector<16x64xf32> to vector<2x8x64xf32>
    %116 = vector.extract_strided_slice %113 {offsets = [0, 64], sizes = [16, 64], strides = [1, 1]} : vector<16x192xf32> to vector<16x64xf32>
    %117 = vector.shape_cast %116 : vector<16x64xf32> to vector<2x8x64xf32>
    %118 = vector.extract_strided_slice %113 {offsets = [0, 128], sizes = [16, 64], strides = [1, 1]} : vector<16x192xf32> to vector<16x64xf32>
    %119 = vector.shape_cast %118 : vector<16x64xf32> to vector<2x8x64xf32>
    "tpu.trace_start"() <{level = 10 : i32, message = "bqd,bkd->bqk"}> : () -> ()
    %cst_63 = arith.constant dense<0.000000e+00> : vector<2x8x8xf32>
    %120 = tpu.matmul %115, %117, %cst_63 {dimension_numbers = #tpu.dot_dimension_numbers<[2], [2], [1], [1], [0, 0, 0, 1, 1, 1], [0], [0]>} : vector<2x8x64xf32>, vector<2x8x64xf32>, vector<2x8x8xf32> -> vector<2x8x8xf32>
    "tpu.trace_stop"() : () -> ()
    %cst_64 = arith.constant 1.250000e-01 : f32
    %121 = vector.broadcast %cst_64 : f32 to vector<2x8x8xf32>
    %122 = arith.mulf %120, %121 : vector<2x8x8xf32>
    %cst_65 = arith.constant dense<0xFF800000> : vector<2x8xf32>
    %123 = vector.multi_reduction <maximumf>, %122, %cst_65 [2] : vector<2x8x8xf32> to vector<2x8xf32>
    %124 = vector.shape_cast %123 : vector<2x8xf32> to vector<2x8x1xf32>
    %125 = vector.broadcast %124 : vector<2x8x1xf32> to vector<2x8x8xf32>
    %126 = arith.subf %122, %125 : vector<2x8x8xf32>
    %127 = math.exp %126 : vector<2x8x8xf32>
    %cst_66 = arith.constant dense<0.000000e+00> : vector<2x8xf32>
    %128 = vector.multi_reduction <add>, %127, %cst_66 [2] : vector<2x8x8xf32> to vector<2x8xf32>
    %129 = vector.shape_cast %128 : vector<2x8xf32> to vector<2x8x1xf32>
    %130 = tpu.reciprocal %129 {approx = true} : vector<2x8x1xf32> -> vector<2x8x1xf32>
    %131 = vector.broadcast %130 : vector<2x8x1xf32> to vector<2x8x8xf32>
    %132 = arith.mulf %127, %131 : vector<2x8x8xf32>
    "tpu.trace_start"() <{level = 10 : i32, message = "bqk,bkd->bqd"}> : () -> ()
    %cst_67 = arith.constant dense<0.000000e+00> : vector<2x8x64xf32>
    %133 = tpu.matmul %132, %119, %cst_67 {dimension_numbers = #tpu.dot_dimension_numbers<[2], [1], [1], [2], [0, 0, 0, 1, 1, 2], [0], [0]>} : vector<2x8x8xf32>, vector<2x8x64xf32>, vector<2x8x64xf32> -> vector<2x8x64xf32>
    "tpu.trace_stop"() : () -> ()
    %134 = vector.shape_cast %133 : vector<2x8x64xf32> to vector<16x64xf32>
    %c1_68 = arith.constant 1 : index
    %c0_69 = arith.constant 0 : index
    %c0_70 = arith.constant 0 : index
    %135 = vector.load %arg3[%c1_68, %c0_69, %c0_70] : memref<4x64x64xf32, #tpu.memory_space<vmem>>, vector<1x64x64xf32>
    %136 = vector.shape_cast %135 : vector<1x64x64xf32> to vector<64x64xf32>
    %cst_71 = arith.constant dense<0.000000e+00> : vector<16x64xf32>
    %137 = tpu.matmul %134, %136, %cst_71 {dimension_numbers = #tpu.dot_dimension_numbers<[1], [0], [0], [1], [0, 0, 1, 1], [], []>} : vector<16x64xf32>, vector<64x64xf32>, vector<16x64xf32> -> vector<16x64xf32>
    %c1_72 = arith.constant 1 : index
    %c0_73 = arith.constant 0 : index
    %c0_74 = arith.constant 0 : index
    %138 = vector.load %arg4[%c1_72, %c0_73, %c0_74] : memref<4x1x64xf32, #tpu.memory_space<vmem>>, vector<1x1x64xf32>
    %139 = vector.shape_cast %138 : vector<1x1x64xf32> to vector<1x64xf32>
    %140 = vector.broadcast %139 : vector<1x64xf32> to vector<16x64xf32>
    %141 = arith.addf %137, %140 : vector<16x64xf32>
    %142 = arith.addf %106, %141 : vector<16x64xf32>
    %c1_75 = arith.constant 1 : index
    %c0_76 = arith.constant 0 : index
    %c0_77 = arith.constant 0 : index
    %143 = vector.load %arg5[%c1_75, %c0_76, %c0_77] : memref<4x1x64xf32, #tpu.memory_space<vmem>>, vector<1x1x64xf32>
    %144 = vector.shape_cast %143 : vector<1x1x64xf32> to vector<1x64xf32>
    %c1_78 = arith.constant 1 : index
    %c0_79 = arith.constant 0 : index
    %c0_80 = arith.constant 0 : index
    %145 = vector.load %arg6[%c1_78, %c0_79, %c0_80] : memref<4x1x64xf32, #tpu.memory_space<vmem>>, vector<1x1x64xf32>
    %146 = vector.shape_cast %145 : vector<1x1x64xf32> to vector<1x64xf32>
    %cst_81 = arith.constant dense<0.000000e+00> : vector<16xf32>
    %147 = vector.multi_reduction <add>, %142, %cst_81 [1] : vector<16x64xf32> to vector<16xf32>
    %148 = vector.shape_cast %147 : vector<16xf32> to vector<16x1xf32>
    %cst_82 = arith.constant 6.400000e+01 : f32
    %149 = vector.broadcast %cst_82 : f32 to vector<16x1xf32>
    %150 = arith.divf %148, %149 : vector<16x1xf32>
    %151 = vector.broadcast %150 : vector<16x1xf32> to vector<16x64xf32>
    %152 = arith.subf %142, %151 : vector<16x64xf32>
    %153 = arith.mulf %152, %152 : vector<16x64xf32>
    %cst_83 = arith.constant dense<0.000000e+00> : vector<16xf32>
    %154 = vector.multi_reduction <add>, %153, %cst_83 [1] : vector<16x64xf32> to vector<16xf32>
    %155 = vector.shape_cast %154 : vector<16xf32> to vector<16x1xf32>
    %cst_84 = arith.constant 6.400000e+01 : f32
    %156 = vector.broadcast %cst_84 : f32 to vector<16x1xf32>
    %157 = arith.divf %155, %156 : vector<16x1xf32>
    %158 = vector.broadcast %150 : vector<16x1xf32> to vector<16x64xf32>
    %159 = arith.subf %142, %158 : vector<16x64xf32>
    %cst_85 = arith.constant 9.99999974E-6 : f32
    %160 = vector.broadcast %cst_85 : f32 to vector<16x1xf32>
    %161 = arith.addf %157, %160 : vector<16x1xf32>
    %162 = math.rsqrt %161 : vector<16x1xf32>
    %163 = vector.broadcast %162 : vector<16x1xf32> to vector<16x64xf32>
    %164 = arith.mulf %159, %163 : vector<16x64xf32>
    %165 = vector.broadcast %144 : vector<1x64xf32> to vector<16x64xf32>
    %166 = arith.mulf %164, %165 : vector<16x64xf32>
    %167 = vector.broadcast %146 : vector<1x64xf32> to vector<16x64xf32>
    %168 = arith.addf %166, %167 : vector<16x64xf32>
    %c1_86 = arith.constant 1 : index
    %c0_87 = arith.constant 0 : index
    %c0_88 = arith.constant 0 : index
    %169 = vector.load %arg7[%c1_86, %c0_87, %c0_88] : memref<4x64x128xf32, #tpu.memory_space<vmem>>, vector<1x64x128xf32>
    %170 = vector.shape_cast %169 : vector<1x64x128xf32> to vector<64x128xf32>
    %cst_89 = arith.constant dense<0.000000e+00> : vector<16x128xf32>
    %171 = tpu.matmul %168, %170, %cst_89 {dimension_numbers = #tpu.dot_dimension_numbers<[1], [0], [0], [1], [0, 0, 1, 1], [], []>} : vector<16x64xf32>, vector<64x128xf32>, vector<16x128xf32> -> vector<16x128xf32>
    %c1_90 = arith.constant 1 : index
    %c0_91 = arith.constant 0 : index
    %c0_92 = arith.constant 0 : index
    %172 = vector.load %arg8[%c1_90, %c0_91, %c0_92] : memref<4x1x128xf32, #tpu.memory_space<vmem>>, vector<1x1x128xf32>
    %173 = vector.shape_cast %172 : vector<1x1x128xf32> to vector<1x128xf32>
    %174 = vector.broadcast %173 : vector<1x128xf32> to vector<16x128xf32>
    %175 = arith.addf %171, %174 : vector<16x128xf32>
    %cst_93 = arith.constant 0.000000e+00 : f32
    %176 = vector.broadcast %cst_93 : f32 to vector<16x128xf32>
    %177 = arith.maximumf %175, %176 : vector<16x128xf32>
    %c1_94 = arith.constant 1 : index
    %c0_95 = arith.constant 0 : index
    %c0_96 = arith.constant 0 : index
    %178 = vector.load %arg9[%c1_94, %c0_95, %c0_96] : memref<4x128x64xf32, #tpu.memory_space<vmem>>, vector<1x128x64xf32>
    %179 = vector.shape_cast %178 : vector<1x128x64xf32> to vector<128x64xf32>
    %cst_97 = arith.constant dense<0.000000e+00> : vector<16x64xf32>
    %180 = tpu.matmul %177, %179, %cst_97 {dimension_numbers = #tpu.dot_dimension_numbers<[1], [0], [0], [1], [0, 0, 1, 1], [], []>} : vector<16x128xf32>, vector<128x64xf32>, vector<16x64xf32> -> vector<16x64xf32>
    %c1_98 = arith.constant 1 : index
    %c0_99 = arith.constant 0 : index
    %c0_100 = arith.constant 0 : index
    %181 = vector.load %arg10[%c1_98, %c0_99, %c0_100] : memref<4x1x64xf32, #tpu.memory_space<vmem>>, vector<1x1x64xf32>
    %182 = vector.shape_cast %181 : vector<1x1x64xf32> to vector<1x64xf32>
    %183 = vector.broadcast %182 : vector<1x64xf32> to vector<16x64xf32>
    %184 = arith.addf %180, %183 : vector<16x64xf32>
    %185 = arith.addf %168, %184 : vector<16x64xf32>
    %c1_101 = arith.constant 1 : index
    %c0_102 = arith.constant 0 : index
    %c0_103 = arith.constant 0 : index
    %186 = vector.load %arg11[%c1_101, %c0_102, %c0_103] : memref<4x1x64xf32, #tpu.memory_space<vmem>>, vector<1x1x64xf32>
    %187 = vector.shape_cast %186 : vector<1x1x64xf32> to vector<1x64xf32>
    %c1_104 = arith.constant 1 : index
    %c0_105 = arith.constant 0 : index
    %c0_106 = arith.constant 0 : index
    %188 = vector.load %arg12[%c1_104, %c0_105, %c0_106] : memref<4x1x64xf32, #tpu.memory_space<vmem>>, vector<1x1x64xf32>
    %189 = vector.shape_cast %188 : vector<1x1x64xf32> to vector<1x64xf32>
    %cst_107 = arith.constant dense<0.000000e+00> : vector<16xf32>
    %190 = vector.multi_reduction <add>, %185, %cst_107 [1] : vector<16x64xf32> to vector<16xf32>
    %191 = vector.shape_cast %190 : vector<16xf32> to vector<16x1xf32>
    %cst_108 = arith.constant 6.400000e+01 : f32
    %192 = vector.broadcast %cst_108 : f32 to vector<16x1xf32>
    %193 = arith.divf %191, %192 : vector<16x1xf32>
    %194 = vector.broadcast %193 : vector<16x1xf32> to vector<16x64xf32>
    %195 = arith.subf %185, %194 : vector<16x64xf32>
    %196 = arith.mulf %195, %195 : vector<16x64xf32>
    %cst_109 = arith.constant dense<0.000000e+00> : vector<16xf32>
    %197 = vector.multi_reduction <add>, %196, %cst_109 [1] : vector<16x64xf32> to vector<16xf32>
    %198 = vector.shape_cast %197 : vector<16xf32> to vector<16x1xf32>
    %cst_110 = arith.constant 6.400000e+01 : f32
    %199 = vector.broadcast %cst_110 : f32 to vector<16x1xf32>
    %200 = arith.divf %198, %199 : vector<16x1xf32>
    %201 = vector.broadcast %193 : vector<16x1xf32> to vector<16x64xf32>
    %202 = arith.subf %185, %201 : vector<16x64xf32>
    %cst_111 = arith.constant 9.99999974E-6 : f32
    %203 = vector.broadcast %cst_111 : f32 to vector<16x1xf32>
    %204 = arith.addf %200, %203 : vector<16x1xf32>
    %205 = math.rsqrt %204 : vector<16x1xf32>
    %206 = vector.broadcast %205 : vector<16x1xf32> to vector<16x64xf32>
    %207 = arith.mulf %202, %206 : vector<16x64xf32>
    %208 = vector.broadcast %187 : vector<1x64xf32> to vector<16x64xf32>
    %209 = arith.mulf %207, %208 : vector<16x64xf32>
    %210 = vector.broadcast %189 : vector<1x64xf32> to vector<16x64xf32>
    %211 = arith.addf %209, %210 : vector<16x64xf32>
    %c2 = arith.constant 2 : index
    %c0_112 = arith.constant 0 : index
    %c0_113 = arith.constant 0 : index
    %212 = vector.load %arg1[%c2, %c0_112, %c0_113] : memref<4x64x192xf32, #tpu.memory_space<vmem>>, vector<1x64x192xf32>
    %213 = vector.shape_cast %212 : vector<1x64x192xf32> to vector<64x192xf32>
    %cst_114 = arith.constant dense<0.000000e+00> : vector<16x192xf32>
    %214 = tpu.matmul %211, %213, %cst_114 {dimension_numbers = #tpu.dot_dimension_numbers<[1], [0], [0], [1], [0, 0, 1, 1], [], []>} : vector<16x64xf32>, vector<64x192xf32>, vector<16x192xf32> -> vector<16x192xf32>
    %c2_115 = arith.constant 2 : index
    %c0_116 = arith.constant 0 : index
    %c0_117 = arith.constant 0 : index
    %215 = vector.load %arg2[%c2_115, %c0_116, %c0_117] : memref<4x1x192xf32, #tpu.memory_space<vmem>>, vector<1x1x192xf32>
    %216 = vector.shape_cast %215 : vector<1x1x192xf32> to vector<1x192xf32>
    %217 = vector.broadcast %216 : vector<1x192xf32> to vector<16x192xf32>
    %218 = arith.addf %214, %217 : vector<16x192xf32>
    %219 = vector.extract_strided_slice %218 {offsets = [0, 0], sizes = [16, 64], strides = [1, 1]} : vector<16x192xf32> to vector<16x64xf32>
    %220 = vector.shape_cast %219 : vector<16x64xf32> to vector<2x8x64xf32>
    %221 = vector.extract_strided_slice %218 {offsets = [0, 64], sizes = [16, 64], strides = [1, 1]} : vector<16x192xf32> to vector<16x64xf32>
    %222 = vector.shape_cast %221 : vector<16x64xf32> to vector<2x8x64xf32>
    %223 = vector.extract_strided_slice %218 {offsets = [0, 128], sizes = [16, 64], strides = [1, 1]} : vector<16x192xf32> to vector<16x64xf32>
    %224 = vector.shape_cast %223 : vector<16x64xf32> to vector<2x8x64xf32>
    "tpu.trace_start"() <{level = 10 : i32, message = "bqd,bkd->bqk"}> : () -> ()
    %cst_118 = arith.constant dense<0.000000e+00> : vector<2x8x8xf32>
    %225 = tpu.matmul %220, %222, %cst_118 {dimension_numbers = #tpu.dot_dimension_numbers<[2], [2], [1], [1], [0, 0, 0, 1, 1, 1], [0], [0]>} : vector<2x8x64xf32>, vector<2x8x64xf32>, vector<2x8x8xf32> -> vector<2x8x8xf32>
    "tpu.trace_stop"() : () -> ()
    %cst_119 = arith.constant 1.250000e-01 : f32
    %226 = vector.broadcast %cst_119 : f32 to vector<2x8x8xf32>
    %227 = arith.mulf %225, %226 : vector<2x8x8xf32>
    %cst_120 = arith.constant dense<0xFF800000> : vector<2x8xf32>
    %228 = vector.multi_reduction <maximumf>, %227, %cst_120 [2] : vector<2x8x8xf32> to vector<2x8xf32>
    %229 = vector.shape_cast %228 : vector<2x8xf32> to vector<2x8x1xf32>
    %230 = vector.broadcast %229 : vector<2x8x1xf32> to vector<2x8x8xf32>
    %231 = arith.subf %227, %230 : vector<2x8x8xf32>
    %232 = math.exp %231 : vector<2x8x8xf32>
    %cst_121 = arith.constant dense<0.000000e+00> : vector<2x8xf32>
    %233 = vector.multi_reduction <add>, %232, %cst_121 [2] : vector<2x8x8xf32> to vector<2x8xf32>
    %234 = vector.shape_cast %233 : vector<2x8xf32> to vector<2x8x1xf32>
    %235 = tpu.reciprocal %234 {approx = true} : vector<2x8x1xf32> -> vector<2x8x1xf32>
    %236 = vector.broadcast %235 : vector<2x8x1xf32> to vector<2x8x8xf32>
    %237 = arith.mulf %232, %236 : vector<2x8x8xf32>
    "tpu.trace_start"() <{level = 10 : i32, message = "bqk,bkd->bqd"}> : () -> ()
    %cst_122 = arith.constant dense<0.000000e+00> : vector<2x8x64xf32>
    %238 = tpu.matmul %237, %224, %cst_122 {dimension_numbers = #tpu.dot_dimension_numbers<[2], [1], [1], [2], [0, 0, 0, 1, 1, 2], [0], [0]>} : vector<2x8x8xf32>, vector<2x8x64xf32>, vector<2x8x64xf32> -> vector<2x8x64xf32>
    "tpu.trace_stop"() : () -> ()
    %239 = vector.shape_cast %238 : vector<2x8x64xf32> to vector<16x64xf32>
    %c2_123 = arith.constant 2 : index
    %c0_124 = arith.constant 0 : index
    %c0_125 = arith.constant 0 : index
    %240 = vector.load %arg3[%c2_123, %c0_124, %c0_125] : memref<4x64x64xf32, #tpu.memory_space<vmem>>, vector<1x64x64xf32>
    %241 = vector.shape_cast %240 : vector<1x64x64xf32> to vector<64x64xf32>
    %cst_126 = arith.constant dense<0.000000e+00> : vector<16x64xf32>
    %242 = tpu.matmul %239, %241, %cst_126 {dimension_numbers = #tpu.dot_dimension_numbers<[1], [0], [0], [1], [0, 0, 1, 1], [], []>} : vector<16x64xf32>, vector<64x64xf32>, vector<16x64xf32> -> vector<16x64xf32>
    %c2_127 = arith.constant 2 : index
    %c0_128 = arith.constant 0 : index
    %c0_129 = arith.constant 0 : index
    %243 = vector.load %arg4[%c2_127, %c0_128, %c0_129] : memref<4x1x64xf32, #tpu.memory_space<vmem>>, vector<1x1x64xf32>
    %244 = vector.shape_cast %243 : vector<1x1x64xf32> to vector<1x64xf32>
    %245 = vector.broadcast %244 : vector<1x64xf32> to vector<16x64xf32>
    %246 = arith.addf %242, %245 : vector<16x64xf32>
    %247 = arith.addf %211, %246 : vector<16x64xf32>
    %c2_130 = arith.constant 2 : index
    %c0_131 = arith.constant 0 : index
    %c0_132 = arith.constant 0 : index
    %248 = vector.load %arg5[%c2_130, %c0_131, %c0_132] : memref<4x1x64xf32, #tpu.memory_space<vmem>>, vector<1x1x64xf32>
    %249 = vector.shape_cast %248 : vector<1x1x64xf32> to vector<1x64xf32>
    %c2_133 = arith.constant 2 : index
    %c0_134 = arith.constant 0 : index
    %c0_135 = arith.constant 0 : index
    %250 = vector.load %arg6[%c2_133, %c0_134, %c0_135] : memref<4x1x64xf32, #tpu.memory_space<vmem>>, vector<1x1x64xf32>
    %251 = vector.shape_cast %250 : vector<1x1x64xf32> to vector<1x64xf32>
    %cst_136 = arith.constant dense<0.000000e+00> : vector<16xf32>
    %252 = vector.multi_reduction <add>, %247, %cst_136 [1] : vector<16x64xf32> to vector<16xf32>
    %253 = vector.shape_cast %252 : vector<16xf32> to vector<16x1xf32>
    %cst_137 = arith.constant 6.400000e+01 : f32
    %254 = vector.broadcast %cst_137 : f32 to vector<16x1xf32>
    %255 = arith.divf %253, %254 : vector<16x1xf32>
    %256 = vector.broadcast %255 : vector<16x1xf32> to vector<16x64xf32>
    %257 = arith.subf %247, %256 : vector<16x64xf32>
    %258 = arith.mulf %257, %257 : vector<16x64xf32>
    %cst_138 = arith.constant dense<0.000000e+00> : vector<16xf32>
    %259 = vector.multi_reduction <add>, %258, %cst_138 [1] : vector<16x64xf32> to vector<16xf32>
    %260 = vector.shape_cast %259 : vector<16xf32> to vector<16x1xf32>
    %cst_139 = arith.constant 6.400000e+01 : f32
    %261 = vector.broadcast %cst_139 : f32 to vector<16x1xf32>
    %262 = arith.divf %260, %261 : vector<16x1xf32>
    %263 = vector.broadcast %255 : vector<16x1xf32> to vector<16x64xf32>
    %264 = arith.subf %247, %263 : vector<16x64xf32>
    %cst_140 = arith.constant 9.99999974E-6 : f32
    %265 = vector.broadcast %cst_140 : f32 to vector<16x1xf32>
    %266 = arith.addf %262, %265 : vector<16x1xf32>
    %267 = math.rsqrt %266 : vector<16x1xf32>
    %268 = vector.broadcast %267 : vector<16x1xf32> to vector<16x64xf32>
    %269 = arith.mulf %264, %268 : vector<16x64xf32>
    %270 = vector.broadcast %249 : vector<1x64xf32> to vector<16x64xf32>
    %271 = arith.mulf %269, %270 : vector<16x64xf32>
    %272 = vector.broadcast %251 : vector<1x64xf32> to vector<16x64xf32>
    %273 = arith.addf %271, %272 : vector<16x64xf32>
    %c2_141 = arith.constant 2 : index
    %c0_142 = arith.constant 0 : index
    %c0_143 = arith.constant 0 : index
    %274 = vector.load %arg7[%c2_141, %c0_142, %c0_143] : memref<4x64x128xf32, #tpu.memory_space<vmem>>, vector<1x64x128xf32>
    %275 = vector.shape_cast %274 : vector<1x64x128xf32> to vector<64x128xf32>
    %cst_144 = arith.constant dense<0.000000e+00> : vector<16x128xf32>
    %276 = tpu.matmul %273, %275, %cst_144 {dimension_numbers = #tpu.dot_dimension_numbers<[1], [0], [0], [1], [0, 0, 1, 1], [], []>} : vector<16x64xf32>, vector<64x128xf32>, vector<16x128xf32> -> vector<16x128xf32>
    %c2_145 = arith.constant 2 : index
    %c0_146 = arith.constant 0 : index
    %c0_147 = arith.constant 0 : index
    %277 = vector.load %arg8[%c2_145, %c0_146, %c0_147] : memref<4x1x128xf32, #tpu.memory_space<vmem>>, vector<1x1x128xf32>
    %278 = vector.shape_cast %277 : vector<1x1x128xf32> to vector<1x128xf32>
    %279 = vector.broadcast %278 : vector<1x128xf32> to vector<16x128xf32>
    %280 = arith.addf %276, %279 : vector<16x128xf32>
    %cst_148 = arith.constant 0.000000e+00 : f32
    %281 = vector.broadcast %cst_148 : f32 to vector<16x128xf32>
    %282 = arith.maximumf %280, %281 : vector<16x128xf32>
    %c2_149 = arith.constant 2 : index
    %c0_150 = arith.constant 0 : index
    %c0_151 = arith.constant 0 : index
    %283 = vector.load %arg9[%c2_149, %c0_150, %c0_151] : memref<4x128x64xf32, #tpu.memory_space<vmem>>, vector<1x128x64xf32>
    %284 = vector.shape_cast %283 : vector<1x128x64xf32> to vector<128x64xf32>
    %cst_152 = arith.constant dense<0.000000e+00> : vector<16x64xf32>
    %285 = tpu.matmul %282, %284, %cst_152 {dimension_numbers = #tpu.dot_dimension_numbers<[1], [0], [0], [1], [0, 0, 1, 1], [], []>} : vector<16x128xf32>, vector<128x64xf32>, vector<16x64xf32> -> vector<16x64xf32>
    %c2_153 = arith.constant 2 : index
    %c0_154 = arith.constant 0 : index
    %c0_155 = arith.constant 0 : index
    %286 = vector.load %arg10[%c2_153, %c0_154, %c0_155] : memref<4x1x64xf32, #tpu.memory_space<vmem>>, vector<1x1x64xf32>
    %287 = vector.shape_cast %286 : vector<1x1x64xf32> to vector<1x64xf32>
    %288 = vector.broadcast %287 : vector<1x64xf32> to vector<16x64xf32>
    %289 = arith.addf %285, %288 : vector<16x64xf32>
    %290 = arith.addf %273, %289 : vector<16x64xf32>
    %c2_156 = arith.constant 2 : index
    %c0_157 = arith.constant 0 : index
    %c0_158 = arith.constant 0 : index
    %291 = vector.load %arg11[%c2_156, %c0_157, %c0_158] : memref<4x1x64xf32, #tpu.memory_space<vmem>>, vector<1x1x64xf32>
    %292 = vector.shape_cast %291 : vector<1x1x64xf32> to vector<1x64xf32>
    %c2_159 = arith.constant 2 : index
    %c0_160 = arith.constant 0 : index
    %c0_161 = arith.constant 0 : index
    %293 = vector.load %arg12[%c2_159, %c0_160, %c0_161] : memref<4x1x64xf32, #tpu.memory_space<vmem>>, vector<1x1x64xf32>
    %294 = vector.shape_cast %293 : vector<1x1x64xf32> to vector<1x64xf32>
    %cst_162 = arith.constant dense<0.000000e+00> : vector<16xf32>
    %295 = vector.multi_reduction <add>, %290, %cst_162 [1] : vector<16x64xf32> to vector<16xf32>
    %296 = vector.shape_cast %295 : vector<16xf32> to vector<16x1xf32>
    %cst_163 = arith.constant 6.400000e+01 : f32
    %297 = vector.broadcast %cst_163 : f32 to vector<16x1xf32>
    %298 = arith.divf %296, %297 : vector<16x1xf32>
    %299 = vector.broadcast %298 : vector<16x1xf32> to vector<16x64xf32>
    %300 = arith.subf %290, %299 : vector<16x64xf32>
    %301 = arith.mulf %300, %300 : vector<16x64xf32>
    %cst_164 = arith.constant dense<0.000000e+00> : vector<16xf32>
    %302 = vector.multi_reduction <add>, %301, %cst_164 [1] : vector<16x64xf32> to vector<16xf32>
    %303 = vector.shape_cast %302 : vector<16xf32> to vector<16x1xf32>
    %cst_165 = arith.constant 6.400000e+01 : f32
    %304 = vector.broadcast %cst_165 : f32 to vector<16x1xf32>
    %305 = arith.divf %303, %304 : vector<16x1xf32>
    %306 = vector.broadcast %298 : vector<16x1xf32> to vector<16x64xf32>
    %307 = arith.subf %290, %306 : vector<16x64xf32>
    %cst_166 = arith.constant 9.99999974E-6 : f32
    %308 = vector.broadcast %cst_166 : f32 to vector<16x1xf32>
    %309 = arith.addf %305, %308 : vector<16x1xf32>
    %310 = math.rsqrt %309 : vector<16x1xf32>
    %311 = vector.broadcast %310 : vector<16x1xf32> to vector<16x64xf32>
    %312 = arith.mulf %307, %311 : vector<16x64xf32>
    %313 = vector.broadcast %292 : vector<1x64xf32> to vector<16x64xf32>
    %314 = arith.mulf %312, %313 : vector<16x64xf32>
    %315 = vector.broadcast %294 : vector<1x64xf32> to vector<16x64xf32>
    %316 = arith.addf %314, %315 : vector<16x64xf32>
    %c3 = arith.constant 3 : index
    %c0_167 = arith.constant 0 : index
    %c0_168 = arith.constant 0 : index
    %317 = vector.load %arg1[%c3, %c0_167, %c0_168] : memref<4x64x192xf32, #tpu.memory_space<vmem>>, vector<1x64x192xf32>
    %318 = vector.shape_cast %317 : vector<1x64x192xf32> to vector<64x192xf32>
    %cst_169 = arith.constant dense<0.000000e+00> : vector<16x192xf32>
    %319 = tpu.matmul %316, %318, %cst_169 {dimension_numbers = #tpu.dot_dimension_numbers<[1], [0], [0], [1], [0, 0, 1, 1], [], []>} : vector<16x64xf32>, vector<64x192xf32>, vector<16x192xf32> -> vector<16x192xf32>
    %c3_170 = arith.constant 3 : index
    %c0_171 = arith.constant 0 : index
    %c0_172 = arith.constant 0 : index
    %320 = vector.load %arg2[%c3_170, %c0_171, %c0_172] : memref<4x1x192xf32, #tpu.memory_space<vmem>>, vector<1x1x192xf32>
    %321 = vector.shape_cast %320 : vector<1x1x192xf32> to vector<1x192xf32>
    %322 = vector.broadcast %321 : vector<1x192xf32> to vector<16x192xf32>
    %323 = arith.addf %319, %322 : vector<16x192xf32>
    %324 = vector.extract_strided_slice %323 {offsets = [0, 0], sizes = [16, 64], strides = [1, 1]} : vector<16x192xf32> to vector<16x64xf32>
    %325 = vector.shape_cast %324 : vector<16x64xf32> to vector<2x8x64xf32>
    %326 = vector.extract_strided_slice %323 {offsets = [0, 64], sizes = [16, 64], strides = [1, 1]} : vector<16x192xf32> to vector<16x64xf32>
    %327 = vector.shape_cast %326 : vector<16x64xf32> to vector<2x8x64xf32>
    %328 = vector.extract_strided_slice %323 {offsets = [0, 128], sizes = [16, 64], strides = [1, 1]} : vector<16x192xf32> to vector<16x64xf32>
    %329 = vector.shape_cast %328 : vector<16x64xf32> to vector<2x8x64xf32>
    "tpu.trace_start"() <{level = 10 : i32, message = "bqd,bkd->bqk"}> : () -> ()
    %cst_173 = arith.constant dense<0.000000e+00> : vector<2x8x8xf32>
    %330 = tpu.matmul %325, %327, %cst_173 {dimension_numbers = #tpu.dot_dimension_numbers<[2], [2], [1], [1], [0, 0, 0, 1, 1, 1], [0], [0]>} : vector<2x8x64xf32>, vector<2x8x64xf32>, vector<2x8x8xf32> -> vector<2x8x8xf32>
    "tpu.trace_stop"() : () -> ()
    %cst_174 = arith.constant 1.250000e-01 : f32
    %331 = vector.broadcast %cst_174 : f32 to vector<2x8x8xf32>
    %332 = arith.mulf %330, %331 : vector<2x8x8xf32>
    %cst_175 = arith.constant dense<0xFF800000> : vector<2x8xf32>
    %333 = vector.multi_reduction <maximumf>, %332, %cst_175 [2] : vector<2x8x8xf32> to vector<2x8xf32>
    %334 = vector.shape_cast %333 : vector<2x8xf32> to vector<2x8x1xf32>
    %335 = vector.broadcast %334 : vector<2x8x1xf32> to vector<2x8x8xf32>
    %336 = arith.subf %332, %335 : vector<2x8x8xf32>
    %337 = math.exp %336 : vector<2x8x8xf32>
    %cst_176 = arith.constant dense<0.000000e+00> : vector<2x8xf32>
    %338 = vector.multi_reduction <add>, %337, %cst_176 [2] : vector<2x8x8xf32> to vector<2x8xf32>
    %339 = vector.shape_cast %338 : vector<2x8xf32> to vector<2x8x1xf32>
    %340 = tpu.reciprocal %339 {approx = true} : vector<2x8x1xf32> -> vector<2x8x1xf32>
    %341 = vector.broadcast %340 : vector<2x8x1xf32> to vector<2x8x8xf32>
    %342 = arith.mulf %337, %341 : vector<2x8x8xf32>
    "tpu.trace_start"() <{level = 10 : i32, message = "bqk,bkd->bqd"}> : () -> ()
    %cst_177 = arith.constant dense<0.000000e+00> : vector<2x8x64xf32>
    %343 = tpu.matmul %342, %329, %cst_177 {dimension_numbers = #tpu.dot_dimension_numbers<[2], [1], [1], [2], [0, 0, 0, 1, 1, 2], [0], [0]>} : vector<2x8x8xf32>, vector<2x8x64xf32>, vector<2x8x64xf32> -> vector<2x8x64xf32>
    "tpu.trace_stop"() : () -> ()
    %344 = vector.shape_cast %343 : vector<2x8x64xf32> to vector<16x64xf32>
    %c3_178 = arith.constant 3 : index
    %c0_179 = arith.constant 0 : index
    %c0_180 = arith.constant 0 : index
    %345 = vector.load %arg3[%c3_178, %c0_179, %c0_180] : memref<4x64x64xf32, #tpu.memory_space<vmem>>, vector<1x64x64xf32>
    %346 = vector.shape_cast %345 : vector<1x64x64xf32> to vector<64x64xf32>
    %cst_181 = arith.constant dense<0.000000e+00> : vector<16x64xf32>
    %347 = tpu.matmul %344, %346, %cst_181 {dimension_numbers = #tpu.dot_dimension_numbers<[1], [0], [0], [1], [0, 0, 1, 1], [], []>} : vector<16x64xf32>, vector<64x64xf32>, vector<16x64xf32> -> vector<16x64xf32>
    %c3_182 = arith.constant 3 : index
    %c0_183 = arith.constant 0 : index
    %c0_184 = arith.constant 0 : index
    %348 = vector.load %arg4[%c3_182, %c0_183, %c0_184] : memref<4x1x64xf32, #tpu.memory_space<vmem>>, vector<1x1x64xf32>
    %349 = vector.shape_cast %348 : vector<1x1x64xf32> to vector<1x64xf32>
    %350 = vector.broadcast %349 : vector<1x64xf32> to vector<16x64xf32>
    %351 = arith.addf %347, %350 : vector<16x64xf32>
    %352 = arith.addf %316, %351 : vector<16x64xf32>
    %c3_185 = arith.constant 3 : index
    %c0_186 = arith.constant 0 : index
    %c0_187 = arith.constant 0 : index
    %353 = vector.load %arg5[%c3_185, %c0_186, %c0_187] : memref<4x1x64xf32, #tpu.memory_space<vmem>>, vector<1x1x64xf32>
    %354 = vector.shape_cast %353 : vector<1x1x64xf32> to vector<1x64xf32>
    %c3_188 = arith.constant 3 : index
    %c0_189 = arith.constant 0 : index
    %c0_190 = arith.constant 0 : index
    %355 = vector.load %arg6[%c3_188, %c0_189, %c0_190] : memref<4x1x64xf32, #tpu.memory_space<vmem>>, vector<1x1x64xf32>
    %356 = vector.shape_cast %355 : vector<1x1x64xf32> to vector<1x64xf32>
    %cst_191 = arith.constant dense<0.000000e+00> : vector<16xf32>
    %357 = vector.multi_reduction <add>, %352, %cst_191 [1] : vector<16x64xf32> to vector<16xf32>
    %358 = vector.shape_cast %357 : vector<16xf32> to vector<16x1xf32>
    %cst_192 = arith.constant 6.400000e+01 : f32
    %359 = vector.broadcast %cst_192 : f32 to vector<16x1xf32>
    %360 = arith.divf %358, %359 : vector<16x1xf32>
    %361 = vector.broadcast %360 : vector<16x1xf32> to vector<16x64xf32>
    %362 = arith.subf %352, %361 : vector<16x64xf32>
    %363 = arith.mulf %362, %362 : vector<16x64xf32>
    %cst_193 = arith.constant dense<0.000000e+00> : vector<16xf32>
    %364 = vector.multi_reduction <add>, %363, %cst_193 [1] : vector<16x64xf32> to vector<16xf32>
    %365 = vector.shape_cast %364 : vector<16xf32> to vector<16x1xf32>
    %cst_194 = arith.constant 6.400000e+01 : f32
    %366 = vector.broadcast %cst_194 : f32 to vector<16x1xf32>
    %367 = arith.divf %365, %366 : vector<16x1xf32>
    %368 = vector.broadcast %360 : vector<16x1xf32> to vector<16x64xf32>
    %369 = arith.subf %352, %368 : vector<16x64xf32>
    %cst_195 = arith.constant 9.99999974E-6 : f32
    %370 = vector.broadcast %cst_195 : f32 to vector<16x1xf32>
    %371 = arith.addf %367, %370 : vector<16x1xf32>
    %372 = math.rsqrt %371 : vector<16x1xf32>
    %373 = vector.broadcast %372 : vector<16x1xf32> to vector<16x64xf32>
    %374 = arith.mulf %369, %373 : vector<16x64xf32>
    %375 = vector.broadcast %354 : vector<1x64xf32> to vector<16x64xf32>
    %376 = arith.mulf %374, %375 : vector<16x64xf32>
    %377 = vector.broadcast %356 : vector<1x64xf32> to vector<16x64xf32>
    %378 = arith.addf %376, %377 : vector<16x64xf32>
    %c3_196 = arith.constant 3 : index
    %c0_197 = arith.constant 0 : index
    %c0_198 = arith.constant 0 : index
    %379 = vector.load %arg7[%c3_196, %c0_197, %c0_198] : memref<4x64x128xf32, #tpu.memory_space<vmem>>, vector<1x64x128xf32>
    %380 = vector.shape_cast %379 : vector<1x64x128xf32> to vector<64x128xf32>
    %cst_199 = arith.constant dense<0.000000e+00> : vector<16x128xf32>
    %381 = tpu.matmul %378, %380, %cst_199 {dimension_numbers = #tpu.dot_dimension_numbers<[1], [0], [0], [1], [0, 0, 1, 1], [], []>} : vector<16x64xf32>, vector<64x128xf32>, vector<16x128xf32> -> vector<16x128xf32>
    %c3_200 = arith.constant 3 : index
    %c0_201 = arith.constant 0 : index
    %c0_202 = arith.constant 0 : index
    %382 = vector.load %arg8[%c3_200, %c0_201, %c0_202] : memref<4x1x128xf32, #tpu.memory_space<vmem>>, vector<1x1x128xf32>
    %383 = vector.shape_cast %382 : vector<1x1x128xf32> to vector<1x128xf32>
    %384 = vector.broadcast %383 : vector<1x128xf32> to vector<16x128xf32>
    %385 = arith.addf %381, %384 : vector<16x128xf32>
    %cst_203 = arith.constant 0.000000e+00 : f32
    %386 = vector.broadcast %cst_203 : f32 to vector<16x128xf32>
    %387 = arith.maximumf %385, %386 : vector<16x128xf32>
    %c3_204 = arith.constant 3 : index
    %c0_205 = arith.constant 0 : index
    %c0_206 = arith.constant 0 : index
    %388 = vector.load %arg9[%c3_204, %c0_205, %c0_206] : memref<4x128x64xf32, #tpu.memory_space<vmem>>, vector<1x128x64xf32>
    %389 = vector.shape_cast %388 : vector<1x128x64xf32> to vector<128x64xf32>
    %cst_207 = arith.constant dense<0.000000e+00> : vector<16x64xf32>
    %390 = tpu.matmul %387, %389, %cst_207 {dimension_numbers = #tpu.dot_dimension_numbers<[1], [0], [0], [1], [0, 0, 1, 1], [], []>} : vector<16x128xf32>, vector<128x64xf32>, vector<16x64xf32> -> vector<16x64xf32>
    %c3_208 = arith.constant 3 : index
    %c0_209 = arith.constant 0 : index
    %c0_210 = arith.constant 0 : index
    %391 = vector.load %arg10[%c3_208, %c0_209, %c0_210] : memref<4x1x64xf32, #tpu.memory_space<vmem>>, vector<1x1x64xf32>
    %392 = vector.shape_cast %391 : vector<1x1x64xf32> to vector<1x64xf32>
    %393 = vector.broadcast %392 : vector<1x64xf32> to vector<16x64xf32>
    %394 = arith.addf %390, %393 : vector<16x64xf32>
    %395 = arith.addf %378, %394 : vector<16x64xf32>
    %c3_211 = arith.constant 3 : index
    %c0_212 = arith.constant 0 : index
    %c0_213 = arith.constant 0 : index
    %396 = vector.load %arg11[%c3_211, %c0_212, %c0_213] : memref<4x1x64xf32, #tpu.memory_space<vmem>>, vector<1x1x64xf32>
    %397 = vector.shape_cast %396 : vector<1x1x64xf32> to vector<1x64xf32>
    %c3_214 = arith.constant 3 : index
    %c0_215 = arith.constant 0 : index
    %c0_216 = arith.constant 0 : index
    %398 = vector.load %arg12[%c3_214, %c0_215, %c0_216] : memref<4x1x64xf32, #tpu.memory_space<vmem>>, vector<1x1x64xf32>
    %399 = vector.shape_cast %398 : vector<1x1x64xf32> to vector<1x64xf32>
    %cst_217 = arith.constant dense<0.000000e+00> : vector<16xf32>
    %400 = vector.multi_reduction <add>, %395, %cst_217 [1] : vector<16x64xf32> to vector<16xf32>
    %401 = vector.shape_cast %400 : vector<16xf32> to vector<16x1xf32>
    %cst_218 = arith.constant 6.400000e+01 : f32
    %402 = vector.broadcast %cst_218 : f32 to vector<16x1xf32>
    %403 = arith.divf %401, %402 : vector<16x1xf32>
    %404 = vector.broadcast %403 : vector<16x1xf32> to vector<16x64xf32>
    %405 = arith.subf %395, %404 : vector<16x64xf32>
    %406 = arith.mulf %405, %405 : vector<16x64xf32>
    %cst_219 = arith.constant dense<0.000000e+00> : vector<16xf32>
    %407 = vector.multi_reduction <add>, %406, %cst_219 [1] : vector<16x64xf32> to vector<16xf32>
    %408 = vector.shape_cast %407 : vector<16xf32> to vector<16x1xf32>
    %cst_220 = arith.constant 6.400000e+01 : f32
    %409 = vector.broadcast %cst_220 : f32 to vector<16x1xf32>
    %410 = arith.divf %408, %409 : vector<16x1xf32>
    %411 = vector.broadcast %403 : vector<16x1xf32> to vector<16x64xf32>
    %412 = arith.subf %395, %411 : vector<16x64xf32>
    %cst_221 = arith.constant 9.99999974E-6 : f32
    %413 = vector.broadcast %cst_221 : f32 to vector<16x1xf32>
    %414 = arith.addf %410, %413 : vector<16x1xf32>
    %415 = math.rsqrt %414 : vector<16x1xf32>
    %416 = vector.broadcast %415 : vector<16x1xf32> to vector<16x64xf32>
    %417 = arith.mulf %412, %416 : vector<16x64xf32>
    %418 = vector.broadcast %397 : vector<1x64xf32> to vector<16x64xf32>
    %419 = arith.mulf %417, %418 : vector<16x64xf32>
    %420 = vector.broadcast %399 : vector<1x64xf32> to vector<16x64xf32>
    %421 = arith.addf %419, %420 : vector<16x64xf32>
    %c0_222 = arith.constant 0 : index
    %c0_223 = arith.constant 0 : index
    %422 = vector.load %arg13[%c0_222, %c0_223] : memref<64x128xf32, #tpu.memory_space<vmem>>, vector<64x128xf32>
    %cst_224 = arith.constant dense<0.000000e+00> : vector<16x128xf32>
    %423 = tpu.matmul %421, %422, %cst_224 {dimension_numbers = #tpu.dot_dimension_numbers<[1], [0], [0], [1], [0, 0, 1, 1], [], []>} : vector<16x64xf32>, vector<64x128xf32>, vector<16x128xf32> -> vector<16x128xf32>
    %c0_225 = arith.constant 0 : index
    %c0_226 = arith.constant 0 : index
    %424 = vector.load %arg14[%c0_225, %c0_226] : memref<1x128xf32, #tpu.memory_space<vmem>>, vector<1x128xf32>
    %425 = vector.broadcast %424 : vector<1x128xf32> to vector<16x128xf32>
    %426 = arith.addf %423, %425 : vector<16x128xf32>
    %cst_227 = arith.constant 0.000000e+00 : f32
    %427 = vector.broadcast %cst_227 : f32 to vector<16x128xf32>
    %428 = arith.maximumf %426, %427 : vector<16x128xf32>
    %c0_228 = arith.constant 0 : index
    %c0_229 = arith.constant 0 : index
    %429 = vector.load %arg15[%c0_228, %c0_229] : memref<128x128xf32, #tpu.memory_space<vmem>>, vector<128x128xf32>
    %cst_230 = arith.constant dense<0.000000e+00> : vector<16x128xf32>
    %430 = tpu.matmul %428, %429, %cst_230 {dimension_numbers = #tpu.dot_dimension_numbers<[1], [0], [0], [1], [0, 0, 1, 1], [], []>} : vector<16x128xf32>, vector<128x128xf32>, vector<16x128xf32> -> vector<16x128xf32>
    %c0_231 = arith.constant 0 : index
    %c0_232 = arith.constant 0 : index
    %431 = vector.load %arg16[%c0_231, %c0_232] : memref<1x128xf32, #tpu.memory_space<vmem>>, vector<1x128xf32>
    %432 = vector.broadcast %431 : vector<1x128xf32> to vector<16x128xf32>
    %433 = arith.addf %430, %432 : vector<16x128xf32>
    %c0_233 = arith.constant 0 : index
    %c0_234 = arith.constant 0 : index
    %434 = vector.load %arg17[%c0_233, %c0_234] : memref<16x128xf32, #tpu.memory_space<vmem>>, vector<16x128xf32>
    tpu.vector_store %arg17[%c0_233, %c0_234], %433 {strides = array<i32>} : memref<16x128xf32, #tpu.memory_space<vmem>>, vector<16x128xf32>,
    return
  }
}

</mosaic_0001>

<bundles_post_ra>
// kernel: tpu_custom_call.1
= control target key start
LH: loop header
LB: loop body
LE: loop exit
PB: predicated region body
PF: predicated region fallthrough
CT: control target
= control target key end

     0   :  { %s6109_s0 = inlined_call_operand.hbm [shape: f32[2,8,64], index: 0, kind: input, shape index: {}]   ;;  %s6110_s1 = inlined_call_operand.vmem [shape: f32[4,64,192], index: 1, kind: input, shape index: {}]   ;;  %s6111_s2 = inlined_call_operand.hbm [shape: f32[4,1,192], index: 2, kind: input, shape index: {}]   ;;  %s6112_s3 = inlined_call_operand.vmem [shape: f32[4,64,64], index: 3, kind: input, shape index: {}]   ;;  %s6113_s4 = inlined_call_operand.vmem [shape: f32[4,1,64], index: 4, kind: input, shape index: {}]   ;;  %s6114_s5 = inlined_call_operand.vmem [shape: f32[4,1,64], index: 5, kind: input, shape index: {}]   ;;  %s6115_s6 = inlined_call_operand.vmem [shape: f32[4,1,64], index: 6, kind: input, shape index: {}]   ;;  %s6116_s7 = inlined_call_operand.hbm [shape: f32[4,64,128], index: 7, kind: input, shape index: {}]   ;;  %s6117_s8 = inlined_call_operand.vmem [shape: f32[4,1,128], index: 8, kind: input, shape index: {}]   ;;  %s6118_s9 = inlined_call_operand.vmem [shape: f32[4,128,64], index: 9, kind: input, shape index: {}]   ;;  %s6119_s10 = inlined_call_operand.vmem [shape: f32[4,1,64], index: 10, kind: input, shape index: {}]   ;;  %s6120_s11 = inlined_call_operand.vmem [shape: f32[4,1,64], index: 11, kind: input, shape index: {}]   ;;  %s6121_s12 = inlined_call_operand.vmem [shape: f32[4,1,64], index: 12, kind: input, shape index: {}]   ;;  %s6122_s13 = inlined_call_operand.hbm [shape: f32[64,128], index: 13, kind: input, shape index: {}]   ;;  %s6123_s14 = inlined_call_operand.vmem [shape: f32[1,128], index: 14, kind: input, shape index: {}]   ;;  %s6124_s15 = inlined_call_operand.hbm [shape: f32[128,128], index: 15, kind: input, shape index: {}]   ;;  %s6125_s16 = inlined_call_operand.vmem [shape: f32[1,128], index: 16, kind: input, shape index: {}]   ;;  %s6126_s17 = inlined_call_operand.hbm [shape: f32[16,128], index: 17, kind: output, shape index: {}]  }
   0x1   :  { %6130 = sst [smem:[#allocation16_spill]] %s6109_s0 }
   0x2   :  { %6131 = sst [smem:[#allocation17_spill]] %s6110_s1 }
   0x3   :  { %6132 = sst [smem:[#allocation18_spill]] %s6126_s17 }
   0x4   :  { %22 = vsyncpa [#allocation3], 0 }
   0x5   :  { %23 = vsyncpa [#allocation6], 0 }
   0x6   :  { %24 = vsyncpa [#allocation9], 0 }
   0x7   :  { %25 = vsyncpa [#allocation4], 0  ;;  %s5103_s24 = smov [#allocation5]   ;;  %s4963_s28 = scalar_lea.hbm %s6111_s2, 128 }
   0x8   :  { %s45_s25 = sshll.u32 %s5103_s24, 4  ;;  %p4964_p0 = scmp.ne.s32.totalorder %s6111_s2, %s4963_s28  ;;  %s46_s25 = int_to_ptr.vmem [resolvable:$true] %s45_s25 }
   0x9   :  { %p4967_p1 = scmp.lt.u32.totalorder %s4963_s28, %s6111_s2 }
   0xb   :  { %p4969_p2 = pnand %p4967_p1, %p4964_p0 }
   0xd   :  { %4972 = shalt.err (!%p4969_p2)
}
   0xe   :  { %s4973_s19 = scalar_lea.vmem %s46_s25, 128  ;;  %p4978_p4 = scmp.lt.s32.totalorder %s46_s25, %s46_s25 }
   0xf   :  { %p4974_p3 = scmp.ne.s32.totalorder %s46_s25, %s4973_s19  ;;  %p4979_p5 = scmp.lt.s32.totalorder %s4973_s19, %s4973_s19 }
  0x11   :  { %p4980_p6 = por %p4979_p5, %p4978_p4 }
  0x13   :  { %p4981_p7 = pnand %p4980_p6, %p4974_p3 }
  0x15   :  { %4984 = shalt.err (!%p4981_p7)
}
  0x16   :  { %s5104_s1 = smov 32   ;;  %s5105_s20 = smov 2  }
  0x17   :  { %51 = dma.hbm_to_vmem [thread:$0]  %s6111_s2, 128, %s46_s25, [#allocation6], %s5104_s1, %s5104_s1, %s5105_s20  }
  0x18   :  { %s5106_s23 = smov [#allocation8]   ;;  %s5107_s26 = smov [#allocation2]  }
  0x19   :  { %s87_s24 = sshll.u32 %s5106_s23, 4  ;;  %s31_s27 = sshll.u32 %s5107_s26, 4  ;;  %s88_s24 = int_to_ptr.vmem [resolvable:$true] %s87_s24  ;;  %s32_s27 = int_to_ptr.vmem [resolvable:$true] %s31_s27 }
  0x1a   :  { %s4985_s0 = scalar_lea.hbm %s6122_s13, 1024 }
  0x1b   :  { %p4986_p8 = scmp.ne.s32.totalorder %s6122_s13, %s4985_s0  ;;  %p4989_p9 = scmp.lt.u32.totalorder %s4985_s0, %s6122_s13 }
  0x1d   :  { %p4991_p10 = pnand %p4989_p9, %p4986_p8 }
  0x1f   :  { %4994 = shalt.err (!%p4991_p10)
}
  0x20   :  { %s4995_s2 = scalar_lea.vmem %s88_s24, 1024  ;;  %p5000_p12 = scmp.lt.s32.totalorder %s88_s24, %s88_s24 }
  0x21   :  { %p4996_p11 = scmp.ne.s32.totalorder %s88_s24, %s4995_s2  ;;  %p5001_p13 = scmp.lt.s32.totalorder %s4995_s2, %s4995_s2 }
  0x23   :  { %p5002_p0 = por %p5001_p13, %p5000_p12 }
  0x25   :  { %p5003_p1 = pnand %p5002_p0, %p4996_p11 }
  0x27   :  { %5006 = shalt.err (!%p5003_p1)
}
  0x28   :  { %s5108_s25 = smov 128   ;;  %s5109_s1 = smov 8  }
  0x29   :  { %93 = dma.hbm_to_vmem [thread:$0]  %s6122_s13, 1024, %s88_s24, [#allocation9], %s5108_s25, %s5108_s25, %s5109_s1  }
  0x2a   :  { %s6133_s23 = sld [smem:[#allocation16_spill]] }
  0x30   :  { %s5007_s26 = scalar_lea.hbm %s6133_s23, 256 }
  0x31   :  { %p5008_p2 = scmp.ne.s32.totalorder %s6133_s23, %s5007_s26  ;;  %p5011_p3 = scmp.lt.u32.totalorder %s5007_s26, %s6133_s23 }
  0x33   :  { %p5013_p4 = pnand %p5011_p3, %p5008_p2 }
  0x35   :  { %5016 = shalt.err (!%p5013_p4)
}
  0x36   :  { %s5017_s18 = scalar_lea.vmem %s32_s27, 256  ;;  %p5022_p6 = scmp.lt.s32.totalorder %s32_s27, %s32_s27 }
  0x37   :  { %p5018_p5 = scmp.ne.s32.totalorder %s32_s27, %s5017_s18  ;;  %p5023_p7 = scmp.lt.s32.totalorder %s5017_s18, %s5017_s18 }
  0x39   :  { %p5024_p8 = por %p5023_p7, %p5022_p6 }
  0x3b   :  { %p5025_p9 = pnand %p5024_p8, %p5018_p5 }
  0x3d   :  { %5028 = shalt.err (!%p5025_p9)
}
  0x3e   :  { %37 = dma.hbm_to_vmem [thread:$0]  %s6133_s23, 256, %s32_s27, [#allocation3], %s5108_s25, %s5108_s25, %s5109_s1  }
  0x3f   :  { %s5110_s19 = smov [#allocation7]   ;;  %s5111_s20 = smov [#allocation10]  }
  0x40   :  { %s65_s2 = sshll.u32 %s5110_s19, 4  ;;  %s101_s21 = sshll.u32 %s5111_s20, 4  ;;  %s66_s2 = int_to_ptr.vmem [resolvable:$true] %s65_s2  ;;  %s102_s21 = int_to_ptr.vmem [resolvable:$true] %s101_s21 }
  0x41   :  { %s5029_s26 = scalar_lea.hbm %s6116_s7, 4096 }
  0x42   :  { %p5030_p10 = scmp.ne.s32.totalorder %s6116_s7, %s5029_s26  ;;  %p5033_p11 = scmp.lt.u32.totalorder %s5029_s26, %s6116_s7 }
  0x44   :  { %p5035_p12 = pnand %p5033_p11, %p5030_p10 }
  0x46   :  { %5038 = shalt.err (!%p5035_p12)
}
  0x47   :  { %s5039_s27 = scalar_lea.vmem %s66_s2, 4096  ;;  %p5044_p0 = scmp.lt.s32.totalorder %s66_s2, %s66_s2 }
  0x48   :  { %p5040_p13 = scmp.ne.s32.totalorder %s66_s2, %s5039_s27  ;;  %p5045_p1 = scmp.lt.s32.totalorder %s5039_s27, %s5039_s27 }
  0x4a   :  { %p5046_p2 = por %p5045_p1, %p5044_p0 }
  0x4c   :  { %p5047_p3 = pnand %p5046_p2, %p5040_p13 }
  0x4e   :  { %5050 = shalt.err (!%p5047_p3)
}
  0x4f   :  { %71 = dma.hbm_to_vmem [thread:$0]  %s6116_s7, 4096, %s66_s2, [#allocation6], %s5108_s25, %s5108_s25, %s5109_s1  }
  0x50   :  { %s5051_s19 = scalar_lea.hbm %s6124_s15, 2048 }
  0x51   :  { %p5052_p4 = scmp.ne.s32.totalorder %s6124_s15, %s5051_s19  ;;  %p5055_p5 = scmp.lt.u32.totalorder %s5051_s19, %s6124_s15 }
  0x53   :  { %p5057_p6 = pnand %p5055_p5, %p5052_p4 }
  0x55   :  { %5060 = shalt.err (!%p5057_p6)
}
  0x56   :  { %s5061_s28 = scalar_lea.vmem %s102_s21, 2048  ;;  %p5066_p8 = scmp.lt.s32.totalorder %s102_s21, %s102_s21 }
  0x57   :  { %p5062_p7 = scmp.ne.s32.totalorder %s102_s21, %s5061_s28  ;;  %p5067_p9 = scmp.lt.s32.totalorder %s5061_s28, %s5061_s28 }
  0x59   :  { %p5068_p10 = por %p5067_p9, %p5066_p8 }
  0x5b   :  { %p5069_p11 = pnand %p5068_p10, %p5062_p7 }
  0x5d   :  { %5072 = shalt.err (!%p5069_p11)
}
  0x5e   :  { %107 = dma.hbm_to_vmem [thread:$0]  %s6124_s15, 2048, %s102_s21, [#allocation9], %s5108_s25, %s5108_s25, %s5109_s1  }
  0x5f   :  { %5095 = dma.done.wait [#allocation3], 256  }
  0x60   :  { %5096 = vsyncadd [#allocation3], 4294967040 }
  0x61   :  { %5097 = dma.done.wait [#allocation6], 4224  }
  0x62   :  { %5098 = vsyncadd [#allocation6], 4294963072 }
  0x63   :  { %5099 = dma.done.wait [#allocation9], 3072  }
  0x64   :  { %5100 = vsyncadd [#allocation9], 4294964224  ;;  %v5112_v0 = vmov 0.0   ;;  %s6134_s30 = sld [smem:[#allocation17_spill]]  ;;  %v5328_v25 = vld [vmem:[#allocation2] sm:$0xff]  ;;  %vm155_vm0 = vcmask 523264   ;;  %v145_v27 = vlaneseq }
  0x65   :  { %226 = vmatprep.mubr.f32.mxu0 %v5112_v0  ;;  %4097 = vmatprep.subr.mxu1 %v5112_v0  ;;  %v5334_v26 = vld [vmem:[#allocation2 + $0x8] sm:$0xff]  ;;  %vm5113_vm1 = vmmov 0   ;;  %v143_v30 = vld [vmem:[#allocation5] sm:$0x3]  ;;  %s5114_s7 = smov 64   ;;  %vm395_vm2 = vcmask 64512  }
  0x66   :  { %v146_v28 = vshrl.u32 %v145_v27, 7  ;;  %4099 = vmatprep.mubr.msk.f32.mxu1 %vm5113_vm1, %v5112_v0 }
  0x68   :  { %v5342_v29 = vsub.s32 0, %v146_v28  ;;  %v5345_v33 = vsub.s32 1, %v146_v28 }
  0x6a   :  { %v128_v1 = vld [vmem:[%s6134_s30 + $0x8] sm:$0xff]  ;;  %v130_v2 = vld [vmem:[%s6134_s30 + $0x18] sm:$0xff]  ;;  %v127_v3 = vld [vmem:[%s6134_s30] sm:$0xff]  ;;  %v148_v31 = vrot.slane %v143_v30, %v5342_v29  ;;  %v152_v36 = vrot.slane %v143_v30, %v5345_v33 }
  0x6b   :  { %v4518_v4 = vpack.c.bf16 %v130_v2, %v128_v1  ;;  %v129_v5 = vld [vmem:[%s6134_s30 + $0x10] sm:$0xff]  ;;  %v132_v6 = vld [vmem:[%s6134_s30 + $0x28] sm:$0xff]  ;;  %v134_v7 = vld [vmem:[%s6134_s30 + $0x38] sm:$0xff] }
  0x6c   :  { %v4520_v8 = vpack.c.bf16 %v129_v5, %v127_v3  ;;  %v4522_v9 = vpack.c.bf16 %v134_v7, %v132_v6  ;;  %v131_v10 = vld [vmem:[%s6134_s30 + $0x20] sm:$0xff]  ;;  %v133_v11 = vld [vmem:[%s6134_s30 + $0x30] sm:$0xff]  ;;  %v136_v12 = vld [vmem:[%s6134_s30 + $0x48] sm:$0xff] }
  0x6d   :  { %4519 = vmatprep.subr.bf16.mxu0 %v4518_v4  ;;  %v138_v13 = vld [vmem:[%s6134_s30 + $0x58] sm:$0xff]  ;;  %v4524_v14 = vpack.c.bf16 %v133_v11, %v131_v10  ;;  %v135_v16 = vld [vmem:[%s6134_s30 + $0x40] sm:$0xff]  ;;  %v137_v17 = vld [vmem:[%s6134_s30 + $0x50] sm:$0xff] }
  0x6e   :  { %4521 = vmatpush1.bf16.msra.mxu0 %v4520_v8  ;;  %v4526_v15 = vpack.c.bf16 %v138_v13, %v136_v12  ;;  %v140_v18 = vld [vmem:[%s6134_s30 + $0x68] sm:$0xff]  ;;  %v142_v19 = vld [vmem:[%s6134_s30 + $0x78] sm:$0xff]  ;;  %v4528_v20 = vpack.c.bf16 %v137_v17, %v135_v16  ;;  %v139_v22 = vld [vmem:[%s6134_s30 + $0x60] sm:$0xff] }
  0x6f   :  { %4523 = vmatprep.subr.bf16.mxu0 %v4522_v9  ;;  %v4530_v21 = vpack.c.bf16 %v142_v19, %v140_v18  ;;  %v141_v23 = vld [vmem:[%s6134_s30 + $0x70] sm:$0xff]  ;;  %v564_v1 = vld [vmem:[%s6112_s3] sm:$0xff]  ;;  %v565_v2 = vld [vmem:[%s6112_s3 + $0x8] sm:$0xff] }
  0x70   :  { %v4532_v24 = vpack.c.bf16 %v141_v23, %v139_v22  ;;  %v4534_v5 = vpack.c.bf16 %v565_v2, %v564_v1  ;;  %v566_v6 = vld [vmem:[%s6112_s3 + $0x10] sm:$0xff]  ;;  %v567_v7 = vld [vmem:[%s6112_s3 + $0x18] sm:$0xff]  ;;  %v568_v11 = vld [vmem:[%s6112_s3 + $0x20] sm:$0xff] }
  0x71   :  { %v4538_v10 = vpack.c.bf16 %v567_v7, %v566_v6  ;;  %v569_v12 = vld [vmem:[%s6112_s3 + $0x28] sm:$0xff]  ;;  %v812_v1 = vld [vmem:[%s6118_s9 + $0x38] sm:$0xff]  ;;  %v815_v6 = vld [vmem:[%s6118_s9 + $0x50] sm:$0xff] }
  0x72   :  { %4525 = vmatpush1.bf16.msra.mxu0 %v4524_v14  ;;  %v4542_v13 = vpack.c.bf16 %v569_v12, %v568_v11  ;;  %v570_v14 = vld [vmem:[%s6112_s3 + $0x30] sm:$0xff]  ;;  %v816_v7 = vld [vmem:[%s6118_s9 + $0x58] sm:$0xff] }
  0x73   :  { %4527 = vmatprep.subr.bf16.mxu0 %v4526_v15  ;;  %v571_v15 = vld [vmem:[%s6112_s3 + $0x38] sm:$0xff] }
  0x74   :  { %v4546_v16 = vpack.c.bf16 %v571_v15, %v570_v14 }
  0x76   :  { %4529 = vmatpush1.bf16.msra.mxu0 %v4528_v20 }
  0x77   :  { %4531 = vmatprep.subr.bf16.mxu0 %v4530_v21  ;;  %v3667_v21 = vld [vmem:[%s6113_s4] ss:$0 sm:$0xff] }
  0x7a   :  { %4533 = vmatpush1.bf16.msra.mxu0 %v4532_v24 }
  0x7b   :  { %4092 = vmatprep.subr.mxu0 %v5112_v0 }
  0x7d   :  { %3659 = vmatmul.mubr.msk.f32.vlgmr.msra.gmra.mrb[0].mxu0 %vm155_vm0, %v5328_v25 }
  0x7e   :  { %232 = vmatprep.mubr.f32.mxu0 %v5112_v0 }
  0x81   :  { %3660 = vmatmul.mubr.msk.f32.gmra.mrb[2].mxu0 %vm155_vm0, %v5334_v26 }
  0x82   :  { %4094 = vmatprep.mubr.msk.f32.mxu0 %vm5113_vm1, %v5112_v0 }
 0x150   :  { %v228_v32 = vpop.f32.mrb[0].mxu0 }
 0x151   :  { %v229_v34 = vadd.f32 %v228_v32, %v148_v31  ;;  %v230_v35 = vpop.f32.mrb[1].mxu0 }
 0x152   :  { %v231_v43 = vadd.f32 %v230_v35, %v152_v36 }
 0x153   :  { %240 = vrot.lane.b32.xlu0 %v229_v34, %s5114_s7 }
 0x154   :  { %v234_v37 = vpop.f32.mrb[2].mxu0 }
 0x155   :  { %v235_v38 = vadd.f32 %v234_v37, %v148_v31  ;;  %v236_v39 = vpop.f32.mrb[3].mxu0 }
 0x156   :  { %v237_v40 = vadd.f32 %v236_v39, %v152_v36 }
 0x157   :  { %317 = vrot.lane.b32.xlu0 %v235_v38, %s5114_s7 }
 0x1c5   :  { %v241_v41 = vpop.permute.xlu0 %240 }
 0x1c6   :  { %4093 = vmatpush3.xpose.msk.msra.mxu0 %vm155_vm0, %v241_v41 }
 0x1c9   :  { %4095 = vmatmul.mubr.msk.f32.vlgmr.msra.gmra.mrb[4].mxu0 %vm155_vm0, %v229_v34  ;;  %v318_v42 = vpop.permute.xlu0 %317 }
 0x1ca   :  { %4098 = vmatpush3.xpose.msk.msra.mxu1 %vm155_vm0, %v318_v42  ;;  %v707_v42 = vld [vmem:[#allocation7] sm:$0xff] }
 0x1cb   :  { %4102 = vmatprep.subr.mxu1 %v5112_v0 }
 0x1cd   :  { %4100 = vmatmul.mubr.msk.f32.vlgmr.msra.gmra.mrb[0].mxu1 %vm155_vm0, %v235_v38 }
 0x1ce   :  { %4103 = vmatpush3.msra.mxu1 %v231_v43  ;;  %4104 = vmatprep.mubr.msk.f32.mxu1 %vm5113_vm1, %v5112_v0  ;;  %v708_v43 = vld [vmem:[#allocation7 + $0x8] sm:$0xff] }
 0x1cf   :  { %4107 = vmatprep.subr.mxu1 %v5112_v0 }
 0x29c   :  { %v312_v44 = vpop.f32.mrb[4].mxu0 }
 0x29d   :  { %v393_v45 = vmul.f32 0.125, %v312_v44  ;;  %v4096_v46 = vpop.f32.mrb[5].mxu0  ;;  %v4550_v44 = vpack.c.bf16 %v708_v43, %v707_v42 }
 0x29e   :  { %v710_v46 = vld [vmem:[#allocation7 + $0x18] sm:$0xff] }
 0x29f   :  { %v396_v47 = vsel %vm395_vm2, %v393_v45, -inf }
 0x2a0   :  { %397 = vmax.xlane.f32.xlu1 %v396_v47  ;;  %v389_v48 = vpop.f32.mrb[0].mxu1 }
 0x2a1   :  { %v394_v49 = vmul.f32 0.125, %v389_v48  ;;  %v4101_v50 = vpop.f32.mrb[1].mxu1  ;;  %v711_v48 = vld [vmem:[#allocation7 + $0x20] sm:$0xff] }
 0x2a3   :  { %v399_v51 = vsel %vm395_vm2, %v394_v49, -inf }
 0x2a4   :  { %400 = vmax.xlane.f32.xlu1 %v399_v51  ;;  %v713_v51 = vld [vmem:[#allocation7 + $0x30] sm:$0xff] }
 0x32d   :  { %v398_v52 = vpop.xlane.xlu1 %397 }
 0x32e   :  { %v402_v53 = vsub.f32 %v393_v45, %v398_v52  ;;  %v709_v45 = vld [vmem:[#allocation7 + $0x10] sm:$0xff]  ;;  %v714_v52 = vld [vmem:[#allocation7 + $0x38] sm:$0xff] }
 0x32f   :  { %v4554_v47 = vpack.c.bf16 %v710_v46, %v709_v45 }
 0x330   :  { %v404_v54 = vmul.f32 1.442695, %v402_v53  ;;  %v4562_v53 = vpack.c.bf16 %v714_v52, %v713_v51 }
 0x331   :  { %v401_v55 = vpop.xlane.xlu1 %400 }
 0x332   :  { %4899 = vpow2.f32 %v404_v54  ;;  %v403_v56 = vsub.f32 %v394_v49, %v401_v55  ;;  %v712_v49 = vld [vmem:[#allocation7 + $0x28] sm:$0xff]  ;;  %v806_v55 = vld [vmem:[%s6118_s9 + $0x8] sm:$0xff] }
 0x333   :  { %v4558_v50 = vpack.c.bf16 %v712_v49, %v711_v48  ;;  %v805_v54 = vld [vmem:[%s6118_s9] sm:$0xff] }
 0x334   :  { %v406_v57 = vmul.f32 1.442695, %v403_v56  ;;  %v807_v56 = vld [vmem:[%s6118_s9 + $0x10] sm:$0xff] }
 0x336   :  { %4901 = vpow2.f32 %v406_v57  ;;  %v4566_v57 = vpack.c.bf16 %v806_v55, %v805_v54 }
 0x338   :  { %4567 = vmatprep.subr.bf16.mxu0 %v4566_v57 }
 0x339   :  { %4569 = vmatpush3.bf16.msra.mxu0 %v4566_v57 }
 0x33c   :  { %v4900_v58 = vpop.eup %4899 }
 0x33d   :  { %v408_v59 = vsel %vm395_vm2, %v4900_v58, 0.0 }
 0x33e   :  { %409 = vadd.xlane.f32.xlu0 %v408_v59 }
 0x340   :  { %v4902_v60 = vpop.eup %4901 }
 0x341   :  { %v411_v61 = vsel %vm395_vm2, %v4902_v60, 0.0 }
 0x342   :  { %412 = vadd.xlane.f32.xlu1 %v411_v61  ;;  %v810_v61 = vld [vmem:[%s6118_s9 + $0x28] sm:$0xff] }
 0x3cb   :  { %v410_v62 = vpop.xlane.xlu0 %409 }
 0x3cc   :  { %4903 = vrcp.f32 %v410_v62 }
 0x3cf   :  { %v413_v63 = vpop.xlane.xlu1 %412 }
 0x3d0   :  { %4905 = vrcp.f32 %v413_v63  ;;  %v811_v63 = vld [vmem:[%s6118_s9 + $0x30] sm:$0xff] }
 0x3d1   :  { %v4578_v2 = vpack.c.bf16 %v812_v1, %v811_v63  ;;  %v3680_v63 = vld [vmem:[%s6134_s30 + $0x90] sm:$0xff] }
 0x3d6   :  { %v4904_v3 = vpop.eup %4903 }
 0x3d7   :  { %v416_v4 = vmul.f32 %v4904_v3, %v4900_v58  ;;  %v808_v58 = vld [vmem:[%s6118_s9 + $0x18] sm:$0xff]  ;;  %v813_v3 = vld [vmem:[%s6118_s9 + $0x40] sm:$0xff] }
 0x3d8   :  { %v4570_v59 = vpack.c.bf16 %v808_v58, %v807_v56 }
 0x3d9   :  { %4105 = vmatmul.mubr.msk.f32.vlgmr.msra.gmra.mrb[2].mxu1 %vm395_vm2, %v416_v4  ;;  %v814_v4 = vld [vmem:[%s6118_s9 + $0x48] sm:$0xff] }
 0x3da   :  { %v4906_v8 = vpop.eup %4905  ;;  %4108 = vmatpush3.msra.mxu1 %v237_v40  ;;  %4109 = vmatprep.mubr.msk.f32.mxu1 %vm5113_vm1, %v5112_v0 }
 0x3db   :  { %v417_v9 = vmul.f32 %v4906_v8, %v4902_v60  ;;  %4535 = vmatprep.subr.bf16.mxu1 %v4534_v5  ;;  %v809_v60 = vld [vmem:[%s6118_s9 + $0x20] sm:$0xff]  ;;  %4571 = vmatprep.subr.bf16.mxu0 %v4570_v59  ;;  %v4586_v8 = vpack.c.bf16 %v816_v7, %v815_v6  ;;  %v3684_v6 = vld [vmem:[%s6134_s30 + $0xb0] sm:$0xff] }
 0x3dc   :  { %v4574_v62 = vpack.c.bf16 %v810_v61, %v809_v60  ;;  %4573 = vmatpush3.bf16.msra.mxu0 %v4570_v59  ;;  %v3679_v59 = vld [vmem:[%s6134_s30 + $0x88] sm:$0xff]  ;;  %v3681_v60 = vld [vmem:[%s6134_s30 + $0x98] sm:$0xff] }
 0x3dd   :  { %4110 = vmatmul.mubr.msk.f32.vlgmr.msra.gmra.mrb[4].mxu1 %vm395_vm2, %v417_v9  ;;  %v817_v9 = vld [vmem:[%s6118_s9 + $0x60] sm:$0xff]  ;;  %v4598_v61 = vpack.c.bf16 %v3681_v60, %v3679_v59 }
 0x3de   :  { %4537 = vmatpush3.bf16.msra.mxu1 %v4534_v5  ;;  %4575 = vmatprep.subr.bf16.mxu0 %v4574_v62  ;;  %v4582_v5 = vpack.c.bf16 %v814_v4, %v813_v3  ;;  %v3685_v3 = vld [vmem:[%s6134_s30 + $0xb8] sm:$0xff] }
 0x3df   :  { %4539 = vmatprep.subr.bf16.mxu1 %v4538_v10 }
 0x3e0   :  { %4577 = vmatpush3.bf16.msra.mxu0 %v4574_v62  ;;  %v3678_v62 = vld [vmem:[%s6134_s30 + $0x80] sm:$0xff] }
 0x3e1   :  { %4579 = vmatprep.subr.bf16.mxu0 %v4578_v2  ;;  %v4600_v1 = vpack.c.bf16 %v3680_v63, %v3678_v62 }
 0x3e2   :  { %4541 = vmatpush3.bf16.msra.mxu1 %v4538_v10  ;;  %v818_v10 = vld [vmem:[%s6118_s9 + $0x68] sm:$0xff] }
 0x3e3   :  { %4543 = vmatprep.subr.bf16.mxu1 %v4542_v13  ;;  %v4590_v11 = vpack.c.bf16 %v818_v10, %v817_v9  ;;  %v3689_v9 = vld [vmem:[%s6134_s30 + $0xd8] sm:$0xff] }
 0x3e4   :  { %4581 = vmatpush3.bf16.msra.mxu0 %v4578_v2  ;;  %v3683_v2 = vld [vmem:[%s6134_s30 + $0xa8] sm:$0xff] }
 0x3e5   :  { %4583 = vmatprep.subr.bf16.mxu0 %v4582_v5  ;;  %v4602_v4 = vpack.c.bf16 %v3685_v3, %v3683_v2 }
 0x3e6   :  { %4545 = vmatpush3.bf16.msra.mxu1 %v4542_v13 }
 0x3e7   :  { %4547 = vmatprep.subr.bf16.mxu1 %v4546_v16 }
 0x3e8   :  { %4585 = vmatpush3.bf16.msra.mxu0 %v4582_v5  ;;  %v3682_v5 = vld [vmem:[%s6134_s30 + $0xa0] sm:$0xff] }
 0x3e9   :  { %4587 = vmatprep.subr.bf16.mxu0 %v4586_v8  ;;  %v4604_v7 = vpack.c.bf16 %v3684_v6, %v3682_v5  ;;  %v3702_v6 = vld [vmem:[%s6112_s3 + $0x40] sm:$0xff] }
 0x3ea   :  { %4549 = vmatpush3.bf16.msra.mxu1 %v4546_v16 }
 0x3eb   :  { %4551 = vmatprep.subr.bf16.mxu1 %v4550_v44 }
 0x3ec   :  { %4589 = vmatpush3.bf16.msra.mxu0 %v4586_v8  ;;  %v3687_v8 = vld [vmem:[%s6134_s30 + $0xc8] sm:$0xff] }
 0x3ed   :  { %4591 = vmatprep.subr.bf16.mxu0 %v4590_v11  ;;  %v4606_v10 = vpack.c.bf16 %v3689_v9, %v3687_v8 }
 0x3f0   :  { %4593 = vmatpush3.bf16.msra.mxu0 %v4590_v11  ;;  %v3686_v11 = vld [vmem:[%s6134_s30 + $0xc0] sm:$0xff] }
 0x4ac   :  { %v487_v17 = vpop.f32.mrb[2].mxu1 }
 0x4ad   :  { %v4106_v18 = vpop.f32.mrb[3].mxu1  ;;  %4128 = vmatprep.mubr.msk.f32.mxu1 %vm155_vm0, %v487_v17 }
 0x4b0   :  { %v560_v19 = vpop.f32.mrb[4].mxu1 }
 0x4b1   :  { %v4111_v20 = vpop.f32.mrb[5].mxu1  ;;  %4129 = vmatmul.mubr.msk.f32.vlgmr.msra.gmra.mrb[6].mxu1 %vm155_vm0, %v560_v19  ;;  %v3670_v19 = vld [vmem:[%s6114_s5] ss:$0 sm:$0xff] }
 0x4b2   :  { %4553 = vmatpush3.bf16.msra.mxu1 %v4550_v44 }
 0x4b3   :  { %4555 = vmatprep.subr.bf16.mxu1 %v4554_v47 }
 0x4b6   :  { %4557 = vmatpush3.bf16.msra.mxu1 %v4554_v47 }
 0x4b7   :  { %4559 = vmatprep.subr.bf16.mxu1 %v4558_v50 }
 0x4ba   :  { %4561 = vmatpush3.bf16.msra.mxu1 %v4558_v50 }
 0x4bb   :  { %4563 = vmatprep.subr.bf16.mxu1 %v4562_v53 }
 0x4be   :  { %4565 = vmatpush3.bf16.msra.mxu1 %v4562_v53 }
 0x4bf   :  { %4599 = vmatprep.subr.bf16.mxu1 %v4598_v61 }
 0x584   :  { %v4130_v22 = vpop.f32.mrb[6].mxu1 }
 0x585   :  { %v651_v23 = vpop.f32.mrb[7].mxu1  ;;  %v657_v24 = vadd.f32 %v4130_v22, %v3667_v21 }
 0x586   :  { %v652_v27 = vadd.f32 %v3667_v21, %v651_v23  ;;  %v3671_v21 = vld [vmem:[%s6115_s6] ss:$0 sm:$0xff] }
 0x587   :  { %v661_v31 = vadd.f32 %v657_v24, %v5334_v26 }
 0x588   :  { %v660_v28 = vadd.f32 %v652_v27, %v5328_v25 }
 0x589   :  { %v667_v32 = vsel %vm155_vm0, %v661_v31, 0.0 }
 0x58a   :  { %v664_v30 = vsel %vm155_vm0, %v660_v28, 0.0 }
 0x58b   :  { %665 = vadd.xlane.f32.xlu1 %v664_v30 }
 0x58f   :  { %668 = vadd.xlane.f32.xlu1 %v667_v32  ;;  %v820_v32 = vld [vmem:[%s6118_s9 + $0x78] sm:$0xff] }
 0x618   :  { %v666_v34 = vpop.xlane.xlu1 %665 }
 0x619   :  { %v671_v35 = vmul.f32 0.015625, %v666_v34 }
 0x61b   :  { %v5399_v36 = vsub.f32 %v660_v28, %v671_v35  ;;  %v3672_v35 = vld [vmem:[%s6117_s8] ss:$0 sm:$0xff] }
 0x61c   :  { %v669_v37 = vpop.xlane.xlu1 %668 }
 0x61d   :  { %v672_v38 = vmul.f32 0.015625, %v669_v37  ;;  %v675_v39 = vmul.f32 %v5399_v36, %v5399_v36 }
 0x61f   :  { %v5403_v40 = vsub.f32 %v661_v31, %v672_v38  ;;  %v677_v25 = vsel %vm155_vm0, %v675_v39, 0.0  ;;  %v819_v31 = vld [vmem:[%s6118_s9 + $0x70] sm:$0xff] }
 0x620   :  { %678 = vadd.xlane.f32.xlu1 %v677_v25  ;;  %v4594_v34 = vpack.c.bf16 %v820_v32, %v819_v31  ;;  %v3677_v32 = vld [vmem:[%s6121_s12] ss:$0 sm:$0xff] }
 0x621   :  { %v676_v26 = vmul.f32 %v5403_v40, %v5403_v40 }
 0x622   :  { %4595 = vmatprep.subr.bf16.mxu0 %v4594_v34 }
 0x623   :  { %v680_v41 = vsel %vm155_vm0, %v676_v26, 0.0  ;;  %4597 = vmatpush3.bf16.msra.mxu0 %v4594_v34  ;;  %v3675_v26 = vld [vmem:[%s6119_s10] ss:$0 sm:$0xff] }
 0x624   :  { %681 = vadd.xlane.f32.xlu1 %v680_v41  ;;  %4200 = vmatprep.subr.mxu0 %v5112_v0 }
 0x6ad   :  { %v679_v12 = vpop.xlane.xlu1 %678 }
 0x6ae   :  { %v683_v13 = vmul.f32 0.015625, %v679_v12  ;;  %v3688_v12 = vld [vmem:[%s6134_s30 + $0xd0] sm:$0xff] }
 0x6b0   :  { %v685_v14 = vadd.f32 1e-05, %v683_v13  ;;  %v4608_v13 = vpack.c.bf16 %v3688_v12, %v3686_v11  ;;  %v3704_v11 = vld [vmem:[%s6112_s3 + $0x50] sm:$0xff]  ;;  %v3705_v12 = vld [vmem:[%s6112_s3 + $0x58] sm:$0xff] }
 0x6b1   :  { %v682_v15 = vpop.xlane.xlu1 %681 }
 0x6b2   :  { %4907 = vrsqrt.f32 %v685_v14  ;;  %v684_v16 = vmul.f32 0.015625, %v682_v15  ;;  %v3691_v14 = vld [vmem:[%s6134_s30 + $0xe8] sm:$0xff]  ;;  %v3693_v15 = vld [vmem:[%s6134_s30 + $0xf8] sm:$0xff] }
 0x6b4   :  { %v686_v17 = vadd.f32 1e-05, %v684_v16  ;;  %v3690_v16 = vld [vmem:[%s6134_s30 + $0xe0] sm:$0xff] }
 0x6b6   :  { %4909 = vrsqrt.f32 %v686_v17  ;;  %v4610_v17 = vpack.c.bf16 %v3693_v15, %v3691_v14  ;;  %v4618_v15 = vpack.c.bf16 %v3705_v12, %v3704_v11  ;;  %v3731_v11 = vld [vmem:[%s6118_s9 + $0xc8] sm:$0xff] }
 0x6bc   :  { %v4908_v18 = vpop.eup %4907 }
 0x6bd   :  { %v689_v20 = vmul.f32 %v4908_v18, %v5399_v36  ;;  %v3692_v18 = vld [vmem:[%s6134_s30 + $0xf0] sm:$0xff] }
 0x6bf   :  { %v697_v22 = vmul.f32 %v3670_v19, %v689_v20 }
 0x6c0   :  { %v4910_v23 = vpop.eup %4909 }
 0x6c1   :  { %v690_v24 = vmul.f32 %v4910_v23, %v5403_v40  ;;  %v705_v27 = vadd.f32 %v3671_v21, %v697_v22 }
 0x6c3   :  { %v698_v28 = vmul.f32 %v3670_v19, %v690_v24  ;;  %4147 = vmatprep.mubr.msk.f32.mxu1 %vm155_vm0, %v705_v27  ;;  %v4612_v19 = vpack.c.bf16 %v3692_v18, %v3690_v16  ;;  %v3706_v16 = vld [vmem:[%s6112_s3 + $0x60] sm:$0xff] }
 0x6c5   :  { %v706_v30 = vadd.f32 %v3671_v21, %v698_v28 }
 0x6c7   :  { %4148 = vmatmul.mubr.msk.f32.vlgmr.msra.gmra.mrb[8].mxu1 %vm155_vm0, %v706_v30 }
 0x6c8   :  { %1049 = vmatprep.mubr.f32.mxu1 %v5112_v0  ;;  %4601 = vmatpush1.bf16.msra.mxu1 %v4600_v1 }
 0x6c9   :  { %4603 = vmatprep.subr.bf16.mxu1 %v4602_v4 }
 0x6cc   :  { %4605 = vmatpush1.bf16.msra.mxu1 %v4604_v7  ;;  %v3703_v7 = vld [vmem:[%s6112_s3 + $0x48] sm:$0xff] }
 0x6cd   :  { %4607 = vmatprep.subr.bf16.mxu1 %v4606_v10  ;;  %v4614_v8 = vpack.c.bf16 %v3703_v7, %v3702_v6  ;;  %v3728_v7 = vld [vmem:[%s6118_s9 + $0xb0] sm:$0xff] }
 0x6d0   :  { %4609 = vmatpush1.bf16.msra.mxu1 %v4608_v13 }
 0x6d1   :  { %4611 = vmatprep.subr.bf16.mxu1 %v4610_v17  ;;  %v3707_v17 = vld [vmem:[%s6112_s3 + $0x68] sm:$0xff] }
 0x6d4   :  { %4613 = vmatpush1.bf16.msra.mxu1 %v4612_v19 }
 0x6d5   :  { %4185 = vmatprep.subr.mxu1 %v5112_v0 }
 0x79a   :  { %v4149_v36 = vpop.f32.mrb[8].mxu1 }
 0x79b   :  { %v800_v37 = vadd.f32 %v4149_v36, %v3672_v35  ;;  %v794_v38 = vpop.f32.mrb[9].mxu1 }
 0x79c   :  { %v795_v39 = vadd.f32 %v3672_v35, %v794_v38 }
 0x79d   :  { %v804_v25 = vmax.f32 %v800_v37, 0.0 }
 0x79e   :  { %v803_v40 = vmax.f32 %v795_v39, 0.0 }
 0x7a0   :  { %4182 = vmatprep.mubr.f32.mxu0 %v803_v40  ;;  %v967_v40 = vld [vmem:[#allocation5 + $0x2] sm:$0x3] }
 0x7a1   :  { %4183 = vmatmul.mubr.f32.vlgmr.msra.gmra.mrb[6].mxu0 %v804_v25  ;;  %v972_v25 = vrot.slane %v967_v40, %v5342_v29 }
 0x7a2   :  { %4202 = vmatprep.mubr.msk.f32.mxu0 %vm5113_vm1, %v5112_v0 }
 0x874   :  { %v4184_v41 = vpop.f32.mrb[6].mxu0 }
 0x875   :  { %v894_v42 = vpop.f32.mrb[7].mxu0  ;;  %v900_v43 = vadd.f32 %v4184_v41, %v3675_v26 }
 0x876   :  { %v895_v44 = vadd.f32 %v3675_v26, %v894_v42  ;;  %v976_v26 = vrot.slane %v967_v40, %v5345_v33 }
 0x877   :  { %v904_v47 = vadd.f32 %v900_v43, %v706_v30  ;;  %v3676_v30 = vld [vmem:[%s6120_s11] ss:$0 sm:$0xff] }
 0x878   :  { %v903_v45 = vadd.f32 %v895_v44, %v705_v27 }
 0x879   :  { %v910_v48 = vsel %vm155_vm0, %v904_v47, 0.0 }
 0x87a   :  { %v907_v46 = vsel %vm155_vm0, %v903_v45, 0.0 }
 0x87b   :  { %908 = vadd.xlane.f32.xlu1 %v907_v46 }
 0x87f   :  { %911 = vadd.xlane.f32.xlu1 %v910_v48 }
 0x908   :  { %v909_v49 = vpop.xlane.xlu1 %908 }
 0x909   :  { %v913_v50 = vmul.f32 0.015625, %v909_v49 }
 0x90b   :  { %v915_v51 = vsub.f32 %v903_v45, %v913_v50 }
 0x90c   :  { %v912_v52 = vpop.xlane.xlu1 %911 }
 0x90d   :  { %v914_v53 = vmul.f32 0.015625, %v912_v52  ;;  %v917_v54 = vmul.f32 %v915_v51, %v915_v51 }
 0x90f   :  { %v916_v55 = vsub.f32 %v904_v47, %v914_v53  ;;  %v919_v56 = vsel %vm155_vm0, %v917_v54, 0.0 }
 0x910   :  { %920 = vadd.xlane.f32.xlu1 %v919_v56 }
 0x911   :  { %v918_v57 = vmul.f32 %v916_v55, %v916_v55 }
 0x913   :  { %v922_v58 = vsel %vm155_vm0, %v918_v57, 0.0 }
 0x914   :  { %923 = vadd.xlane.f32.xlu0 %v922_v58 }
 0x99d   :  { %v921_v20 = vpop.xlane.xlu1 %920 }
 0x99e   :  { %v925_v21 = vmul.f32 0.015625, %v921_v20  ;;  %v4622_v20 = vpack.c.bf16 %v3707_v17, %v3706_v16  ;;  %v3734_v16 = vld [vmem:[%s6118_s9 + $0xe0] sm:$0xff]  ;;  %v3735_v17 = vld [vmem:[%s6118_s9 + $0xe8] sm:$0xff] }
 0x9a0   :  { %v927_v22 = vadd.f32 1e-05, %v925_v21  ;;  %v3708_v21 = vld [vmem:[%s6112_s3 + $0x70] sm:$0xff] }
 0x9a1   :  { %v924_v23 = vpop.xlane.xlu0 %923 }
 0x9a2   :  { %4911 = vrsqrt.f32 %v927_v22  ;;  %v926_v24 = vmul.f32 0.015625, %v924_v23  ;;  %v3709_v22 = vld [vmem:[%s6112_s3 + $0x78] sm:$0xff] }
 0x9a3   :  { %v4626_v23 = vpack.c.bf16 %v3709_v22, %v3708_v21 }
 0x9a4   :  { %v928_v27 = vadd.f32 1e-05, %v926_v24 }
 0x9a6   :  { %4913 = vrsqrt.f32 %v928_v27 }
 0x9ac   :  { %v4912_v28 = vpop.eup %4911 }
 0x9ad   :  { %v931_v31 = vmul.f32 %v4912_v28, %v915_v51 }
 0x9af   :  { %v939_v34 = vmul.f32 %v3676_v30, %v931_v31  ;;  %v3711_v31 = vld [vmem:[%s6113_s4 + $0x1] ss:$0 sm:$0xff] }
 0x9b0   :  { %v4914_v35 = vpop.eup %4913 }
 0x9b1   :  { %v5536_v36 = vadd.f32 %v3677_v32, %v939_v34  ;;  %v932_v37 = vmul.f32 %v4914_v35, %v916_v55 }
 0x9b3   :  { %3694 = vmatmul.mubr.msk.f32.vlgmr.msra.gmra.mrb[10].mxu1 %vm155_vm0, %v5536_v36  ;;  %v940_v38 = vmul.f32 %v3676_v30, %v932_v37 }
 0x9b4   :  { %1055 = vmatprep.mubr.f32.mxu1 %v5112_v0 }
 0x9b5   :  { %v5541_v39 = vadd.f32 %v3677_v32, %v940_v38 }
 0x9b7   :  { %3695 = vmatmul.mubr.msk.f32.gmra.mrb[12].mxu1 %vm155_vm0, %v5541_v39 }
 0x9b8   :  { %4187 = vmatprep.mubr.msk.f32.mxu1 %vm5113_vm1, %v5112_v0 }
 0xa86   :  { %v1051_v41 = vpop.f32.mrb[10].mxu1 }
 0xa87   :  { %v1052_v42 = vadd.f32 %v1051_v41, %v972_v25  ;;  %v1053_v43 = vpop.f32.mrb[11].mxu1 }
 0xa88   :  { %v1054_v44 = vadd.f32 %v1053_v43, %v976_v26 }
 0xa89   :  { %1063 = vrot.lane.b32.xlu1 %v1052_v42, %s5114_s7 }
 0xa8a   :  { %v1057_v45 = vpop.f32.mrb[12].mxu1 }
 0xa8b   :  { %v1058_v46 = vadd.f32 %v1057_v45, %v972_v25  ;;  %v1059_v47 = vpop.f32.mrb[13].mxu1 }
 0xa8c   :  { %v1060_v48 = vadd.f32 %v1059_v47, %v976_v26 }
 0xa8d   :  { %1140 = vrot.lane.b32.xlu0 %v1058_v46, %s5114_s7 }
 0xa8e   :  { %4201 = vmatpush3.msra.mxu0 %v1060_v48 }
 0xafb   :  { %v1064_v49 = vpop.permute.xlu1 %1063 }
 0xafc   :  { %4186 = vmatpush3.xpose.msk.msra.mxu1 %vm155_vm0, %v1064_v49  ;;  %v1533_v49 = vld [vmem:[#allocation7 + $0x40] sm:$0xff] }
 0xafd   :  { %4190 = vmatprep.subr.mxu1 %v5112_v0 }
 0xaff   :  { %v1141_v50 = vpop.permute.xlu0 %1140  ;;  %4188 = vmatmul.mubr.msk.f32.vlgmr.msra.gmra.mrb[14].mxu1 %vm155_vm0, %v1052_v42 }
 0xb00   :  { %4191 = vmatpush3.xpose.msk.msra.mxu1 %vm155_vm0, %v1141_v50  ;;  %4192 = vmatprep.mubr.msk.f32.mxu1 %vm5113_vm1, %v5112_v0  ;;  %v1534_v50 = vld [vmem:[#allocation7 + $0x48] sm:$0xff] }
 0xb01   :  { %4195 = vmatprep.subr.mxu1 %v5112_v0 }
 0xb03   :  { %4193 = vmatmul.mubr.msk.f32.vlgmr.msra.gmra.mrb[16].mxu1 %vm155_vm0, %v1058_v46 }
 0xb04   :  { %4196 = vmatpush3.msra.mxu1 %v1054_v44  ;;  %4197 = vmatprep.mubr.msk.f32.mxu1 %vm5113_vm1, %v5112_v0 }
 0xb05   :  { %4615 = vmatprep.subr.bf16.mxu1 %v4614_v8 }
 0xbd2   :  { %v1135_v51 = vpop.f32.mrb[14].mxu1 }
 0xbd3   :  { %v1216_v52 = vmul.f32 0.125, %v1135_v51  ;;  %v4189_v53 = vpop.f32.mrb[15].mxu1  ;;  %v4630_v51 = vpack.c.bf16 %v1534_v50, %v1533_v49 }
 0xbd4   :  { %v1536_v53 = vld [vmem:[#allocation7 + $0x58] sm:$0xff] }
 0xbd5   :  { %v1218_v54 = vsel %vm395_vm2, %v1216_v52, -inf  ;;  %4631 = vmatprep.subr.bf16.mxu0 %v4630_v51 }
 0xbd6   :  { %1219 = vmax.xlane.f32.xlu1 %v1218_v54  ;;  %v1212_v55 = vpop.f32.mrb[16].mxu1 }
 0xbd7   :  { %v1217_v56 = vmul.f32 0.125, %v1212_v55  ;;  %v4194_v57 = vpop.f32.mrb[17].mxu1  ;;  %v1537_v55 = vld [vmem:[#allocation7 + $0x60] sm:$0xff] }
 0xbd9   :  { %v1221_v58 = vsel %vm395_vm2, %v1217_v56, -inf }
 0xbda   :  { %1222 = vmax.xlane.f32.xlu0 %v1221_v58  ;;  %v1539_v58 = vld [vmem:[#allocation7 + $0x70] sm:$0xff] }
 0xc63   :  { %v1220_v59 = vpop.xlane.xlu1 %1219 }
 0xc64   :  { %v1224_v60 = vsub.f32 %v1216_v52, %v1220_v59  ;;  %v1535_v52 = vld [vmem:[#allocation7 + $0x50] sm:$0xff]  ;;  %v1540_v59 = vld [vmem:[#allocation7 + $0x78] sm:$0xff] }
 0xc65   :  { %v4634_v54 = vpack.c.bf16 %v1536_v53, %v1535_v52 }
 0xc66   :  { %v1226_v61 = vmul.f32 1.442695, %v1224_v60  ;;  %v4642_v60 = vpack.c.bf16 %v1540_v59, %v1539_v58 }
 0xc67   :  { %v1223_v62 = vpop.xlane.xlu0 %1222 }
 0xc68   :  { %4915 = vpow2.f32 %v1226_v61  ;;  %v1225_v63 = vsub.f32 %v1217_v56, %v1223_v62  ;;  %v1538_v56 = vld [vmem:[#allocation7 + $0x68] sm:$0xff]  ;;  %v3723_v62 = vld [vmem:[%s6118_s9 + $0x88] sm:$0xff] }
 0xc69   :  { %v4638_v57 = vpack.c.bf16 %v1538_v56, %v1537_v55  ;;  %v3722_v61 = vld [vmem:[%s6118_s9 + $0x80] sm:$0xff] }
 0xc6a   :  { %v1228_v1 = vmul.f32 1.442695, %v1225_v63  ;;  %v3724_v63 = vld [vmem:[%s6118_s9 + $0x90] sm:$0xff] }
 0xc6c   :  { %4917 = vpow2.f32 %v1228_v1  ;;  %v4646_v1 = vpack.c.bf16 %v3723_v62, %v3722_v61 }
 0xc72   :  { %v4916_v2 = vpop.eup %4915 }
 0xc73   :  { %v1230_v3 = vsel %vm395_vm2, %v4916_v2, 0.0 }
 0xc74   :  { %1231 = vadd.xlane.f32.xlu1 %v1230_v3 }
 0xc76   :  { %v4918_v4 = vpop.eup %4917 }
 0xc77   :  { %v1233_v5 = vsel %vm395_vm2, %v4918_v4, 0.0 }
 0xc78   :  { %1234 = vadd.xlane.f32.xlu0 %v1233_v5  ;;  %v3727_v5 = vld [vmem:[%s6118_s9 + $0xa8] sm:$0xff] }
 0xd01   :  { %v1232_v9 = vpop.xlane.xlu1 %1231 }
 0xd02   :  { %4919 = vrcp.f32 %v1232_v9 }
 0xd05   :  { %v1235_v10 = vpop.xlane.xlu0 %1234 }
 0xd06   :  { %4921 = vrcp.f32 %v1235_v10  ;;  %v3730_v10 = vld [vmem:[%s6118_s9 + $0xc0] sm:$0xff] }
 0xd07   :  { %v4662_v12 = vpack.c.bf16 %v3731_v11, %v3730_v10  ;;  %v3751_v10 = vld [vmem:[%s6134_s30 + $0x138] sm:$0xff] }
 0xd0c   :  { %v4920_v13 = vpop.eup %4919 }
 0xd0d   :  { %v1238_v14 = vmul.f32 %v4920_v13, %v4916_v2  ;;  %v3725_v2 = vld [vmem:[%s6118_s9 + $0x98] sm:$0xff]  ;;  %v3732_v13 = vld [vmem:[%s6118_s9 + $0xd0] sm:$0xff] }
 0xd0e   :  { %v4650_v3 = vpack.c.bf16 %v3725_v2, %v3724_v63 }
 0xd0f   :  { %4198 = vmatmul.mubr.msk.f32.vlgmr.msra.gmra.mrb[18].mxu1 %vm395_vm2, %v1238_v14  ;;  %v3733_v14 = vld [vmem:[%s6118_s9 + $0xd8] sm:$0xff] }
 0xd10   :  { %v4922_v18 = vpop.eup %4921  ;;  %4617 = vmatpush3.bf16.msra.mxu1 %v4614_v8  ;;  %v3729_v8 = vld [vmem:[%s6118_s9 + $0xb8] sm:$0xff] }
 0xd11   :  { %v1239_v19 = vmul.f32 %v4922_v18, %v4918_v4  ;;  %4619 = vmatprep.subr.bf16.mxu1 %v4618_v15  ;;  %v3726_v4 = vld [vmem:[%s6118_s9 + $0xa0] sm:$0xff]  ;;  %v4658_v9 = vpack.c.bf16 %v3729_v8, %v3728_v7  ;;  %v4670_v18 = vpack.c.bf16 %v3735_v17, %v3734_v16  ;;  %v3746_v7 = vld [vmem:[%s6134_s30 + $0x110] sm:$0xff]  ;;  %v3755_v16 = vld [vmem:[%s6134_s30 + $0x158] sm:$0xff] }
 0xd12   :  { %v4654_v6 = vpack.c.bf16 %v3727_v5, %v3726_v4  ;;  %v3747_v4 = vld [vmem:[%s6134_s30 + $0x118] sm:$0xff] }
 0xd13   :  { %4203 = vmatmul.mubr.msk.f32.vlgmr.msra.gmra.mrb[8].mxu0 %vm395_vm2, %v1239_v19 }
 0xd14   :  { %4621 = vmatpush3.bf16.msra.mxu1 %v4618_v15  ;;  %4633 = vmatpush3.bf16.msra.mxu0 %v4630_v51  ;;  %v4666_v15 = vpack.c.bf16 %v3733_v14, %v3732_v13  ;;  %v3750_v13 = vld [vmem:[%s6134_s30 + $0x130] sm:$0xff] }
 0xd15   :  { %4623 = vmatprep.subr.bf16.mxu1 %v4622_v20  ;;  %4635 = vmatprep.subr.bf16.mxu0 %v4634_v54 }
 0xd18   :  { %4625 = vmatpush3.bf16.msra.mxu1 %v4622_v20  ;;  %4637 = vmatpush3.bf16.msra.mxu0 %v4634_v54 }
 0xd19   :  { %4627 = vmatprep.subr.bf16.mxu1 %v4626_v23  ;;  %4639 = vmatprep.subr.bf16.mxu0 %v4638_v57 }
 0xd1c   :  { %4629 = vmatpush3.bf16.msra.mxu1 %v4626_v23  ;;  %4641 = vmatpush3.bf16.msra.mxu0 %v4638_v57 }
 0xd1d   :  { %4643 = vmatprep.subr.bf16.mxu0 %v4642_v60  ;;  %4647 = vmatprep.subr.bf16.mxu1 %v4646_v1 }
 0xd20   :  { %4645 = vmatpush3.bf16.msra.mxu0 %v4642_v60 }
 0xde2   :  { %v1309_v24 = vpop.f32.mrb[18].mxu1 }
 0xde3   :  { %v4199_v27 = vpop.f32.mrb[19].mxu1  ;;  %4221 = vmatprep.mubr.msk.f32.mxu1 %vm155_vm0, %v1309_v24 }
 0xde6   :  { %v1382_v28 = vpop.f32.mrb[8].mxu0 }
 0xde7   :  { %v4204_v30 = vpop.f32.mrb[9].mxu0  ;;  %4222 = vmatmul.mubr.msk.f32.vlgmr.msra.gmra.mrb[20].mxu1 %vm155_vm0, %v1382_v28  ;;  %v3716_v28 = vld [vmem:[%s6114_s5 + $0x1] ss:$0 sm:$0xff] }
 0xde8   :  { %4649 = vmatpush3.bf16.msra.mxu1 %v4646_v1 }
 0xde9   :  { %4651 = vmatprep.subr.bf16.mxu1 %v4650_v3 }
 0xdec   :  { %4653 = vmatpush3.bf16.msra.mxu1 %v4650_v3  ;;  %v3745_v3 = vld [vmem:[%s6134_s30 + $0x108] sm:$0xff] }
 0xded   :  { %4655 = vmatprep.subr.bf16.mxu1 %v4654_v6  ;;  %v4678_v5 = vpack.c.bf16 %v3747_v4, %v3745_v3 }
 0xdef   :  { %4679 = vmatprep.subr.bf16.mxu0 %v4678_v5 }
 0xdf0   :  { %4657 = vmatpush3.bf16.msra.mxu1 %v4654_v6  ;;  %v3744_v6 = vld [vmem:[%s6134_s30 + $0x100] sm:$0xff] }
 0xdf1   :  { %4659 = vmatprep.subr.bf16.mxu1 %v4658_v9  ;;  %v4680_v8 = vpack.c.bf16 %v3746_v7, %v3744_v6 }
 0xdf4   :  { %4661 = vmatpush3.bf16.msra.mxu1 %v4658_v9  ;;  %v3749_v9 = vld [vmem:[%s6134_s30 + $0x128] sm:$0xff] }
 0xdf5   :  { %4663 = vmatprep.subr.bf16.mxu1 %v4662_v12  ;;  %v4682_v11 = vpack.c.bf16 %v3751_v10, %v3749_v9 }
 0xdf8   :  { %4665 = vmatpush3.bf16.msra.mxu1 %v4662_v12  ;;  %v3748_v12 = vld [vmem:[%s6134_s30 + $0x120] sm:$0xff] }
 0xdf9   :  { %4667 = vmatprep.subr.bf16.mxu1 %v4666_v15  ;;  %v4684_v14 = vpack.c.bf16 %v3750_v13, %v3748_v12  ;;  %v3768_v13 = vld [vmem:[%s6112_s3 + $0x80] sm:$0xff] }
 0xdfc   :  { %4669 = vmatpush3.bf16.msra.mxu1 %v4666_v15  ;;  %v3753_v15 = vld [vmem:[%s6134_s30 + $0x148] sm:$0xff] }
 0xdfd   :  { %4671 = vmatprep.subr.bf16.mxu1 %v4670_v18  ;;  %v4686_v17 = vpack.c.bf16 %v3755_v16, %v3753_v15 }
 0xe00   :  { %4673 = vmatpush3.bf16.msra.mxu1 %v4670_v18  ;;  %v3752_v18 = vld [vmem:[%s6134_s30 + $0x140] sm:$0xff] }
 0xeba   :  { %v4223_v32 = vpop.f32.mrb[20].mxu1 }
 0xebb   :  { %v1481_v34 = vadd.f32 %v4223_v32, %v3711_v31  ;;  %v1475_v35 = vpop.f32.mrb[21].mxu1 }
 0xebc   :  { %v1476_v37 = vadd.f32 %v3711_v31, %v1475_v35 }
 0xebd   :  { %v1485_v38 = vadd.f32 %v1481_v34, %v5541_v39  ;;  %v3717_v34 = vld [vmem:[%s6115_s6 + $0x1] ss:$0 sm:$0xff] }
 0xebe   :  { %v1484_v40 = vadd.f32 %v1476_v37, %v5536_v36 }
 0xebf   :  { %v1493_v25 = vsel %vm155_vm0, %v1485_v38, 0.0 }
 0xec0   :  { %1494 = vadd.xlane.f32.xlu0 %v1493_v25  ;;  %v1490_v26 = vsel %vm155_vm0, %v1484_v40, 0.0  ;;  %v3736_v25 = vld [vmem:[%s6118_s9 + $0xf0] sm:$0xff] }
 0xec1   :  { %1491 = vadd.xlane.f32.xlu1 %v1490_v26  ;;  %v3737_v26 = vld [vmem:[%s6118_s9 + $0xf8] sm:$0xff] }
 0xf4d   :  { %v1495_v41 = vpop.xlane.xlu0 %1494 }
 0xf4e   :  { %v1497_v42 = vmul.f32 0.015625, %v1495_v41  ;;  %v1492_v43 = vpop.xlane.xlu1 %1491  ;;  %v4674_v41 = vpack.c.bf16 %v3737_v26, %v3736_v25  ;;  %v3742_v25 = vld [vmem:[%s6120_s11 + $0x1] ss:$0 sm:$0xff] }
 0xf4f   :  { %v1496_v44 = vmul.f32 0.015625, %v1492_v43 }
 0xf50   :  { %v5600_v45 = vsub.f32 %v1485_v38, %v1497_v42  ;;  %4675 = vmatprep.subr.bf16.mxu1 %v4674_v41  ;;  %v3719_v42 = vld [vmem:[%s6117_s8 + $0x1] ss:$0 sm:$0xff] }
 0xf51   :  { %v5602_v46 = vsub.f32 %v1484_v40, %v1496_v44  ;;  %4677 = vmatpush3.bf16.msra.mxu1 %v4674_v41 }
 0xf52   :  { %v1501_v47 = vmul.f32 %v5600_v45, %v5600_v45  ;;  %4293 = vmatprep.subr.mxu1 %v5112_v0 }
 0xf53   :  { %v1500_v36 = vmul.f32 %v5602_v46, %v5602_v46 }
 0xf54   :  { %v1505_v39 = vsel %vm155_vm0, %v1501_v47, 0.0 }
 0xf55   :  { %1506 = vadd.xlane.f32.xlu0 %v1505_v39  ;;  %v1502_v48 = vsel %vm155_vm0, %v1500_v36, 0.0  ;;  %v3739_v39 = vld [vmem:[%s6119_s10 + $0x1] ss:$0 sm:$0xff] }
 0xf56   :  { %1503 = vadd.xlane.f32.xlu1 %v1502_v48 }
 0xfe2   :  { %v1507_v19 = vpop.xlane.xlu0 %1506 }
 0xfe3   :  { %v1509_v20 = vmul.f32 0.015625, %v1507_v19  ;;  %v1504_v21 = vpop.xlane.xlu1 %1503  ;;  %v3754_v19 = vld [vmem:[%s6134_s30 + $0x150] sm:$0xff] }
 0xfe4   :  { %v1508_v22 = vmul.f32 0.015625, %v1504_v21  ;;  %v3757_v21 = vld [vmem:[%s6134_s30 + $0x168] sm:$0xff] }
 0xfe5   :  { %v1511_v23 = vadd.f32 1e-05, %v1509_v20  ;;  %v4688_v20 = vpack.c.bf16 %v3754_v19, %v3752_v18  ;;  %v3770_v18 = vld [vmem:[%s6112_s3 + $0x90] sm:$0xff]  ;;  %v3771_v19 = vld [vmem:[%s6112_s3 + $0x98] sm:$0xff] }
 0xfe6   :  { %v1510_v24 = vadd.f32 1e-05, %v1508_v22  ;;  %v3759_v22 = vld [vmem:[%s6134_s30 + $0x178] sm:$0xff] }
 0xfe7   :  { %4923 = vrsqrt.f32 %v1511_v23  ;;  %v3756_v23 = vld [vmem:[%s6134_s30 + $0x160] sm:$0xff] }
 0xfe8   :  { %4925 = vrsqrt.f32 %v1510_v24  ;;  %v4690_v24 = vpack.c.bf16 %v3759_v22, %v3757_v21  ;;  %v4698_v22 = vpack.c.bf16 %v3771_v19, %v3770_v18  ;;  %v3797_v18 = vld [vmem:[%s6118_s9 + $0x148] sm:$0xff] }
 0xff1   :  { %v4924_v27 = vpop.eup %4923 }
 0xff2   :  { %v4926_v30 = vpop.eup %4925  ;;  %v1515_v31 = vmul.f32 %v4924_v27, %v5600_v45  ;;  %v3758_v27 = vld [vmem:[%s6134_s30 + $0x170] sm:$0xff] }
 0xff3   :  { %v1514_v32 = vmul.f32 %v4926_v30, %v5602_v46 }
 0xff4   :  { %v1523_v35 = vmul.f32 %v3716_v28, %v1515_v31 }
 0xff5   :  { %v1522_v37 = vmul.f32 %v3716_v28, %v1514_v32  ;;  %v4692_v28 = vpack.c.bf16 %v3758_v27, %v3756_v23  ;;  %v3772_v23 = vld [vmem:[%s6112_s3 + $0xa0] sm:$0xff] }
 0xff6   :  { %v1531_v40 = vadd.f32 %v3717_v34, %v1523_v35 }
 0xff7   :  { %v1530_v38 = vadd.f32 %v3717_v34, %v1522_v37 }
 0xff9   :  { %4240 = vmatprep.mubr.msk.f32.mxu0 %vm155_vm0, %v1530_v38 }
 0xffa   :  { %4241 = vmatmul.mubr.msk.f32.vlgmr.msra.gmra.mrb[10].mxu0 %vm155_vm0, %v1531_v40 }
 0xffb   :  { %1880 = vmatprep.mubr.f32.mxu0 %v5112_v0  ;;  %4681 = vmatpush1.bf16.msra.mxu0 %v4680_v8 }
 0xffc   :  { %4683 = vmatprep.subr.bf16.mxu0 %v4682_v11 }
 0xfff   :  { %4685 = vmatpush1.bf16.msra.mxu0 %v4684_v14  ;;  %v3769_v14 = vld [vmem:[%s6112_s3 + $0x88] sm:$0xff] }
0x1000   :  { %4687 = vmatprep.subr.bf16.mxu0 %v4686_v17  ;;  %v4694_v15 = vpack.c.bf16 %v3769_v14, %v3768_v13  ;;  %v3794_v14 = vld [vmem:[%s6118_s9 + $0x130] sm:$0xff] }
0x1003   :  { %4689 = vmatpush1.bf16.msra.mxu0 %v4688_v20 }
0x1004   :  { %4691 = vmatprep.subr.bf16.mxu0 %v4690_v24  ;;  %v3773_v24 = vld [vmem:[%s6112_s3 + $0xa8] sm:$0xff] }
0x1007   :  { %4693 = vmatpush1.bf16.msra.mxu0 %v4692_v28 }
0x1008   :  { %4278 = vmatprep.subr.mxu0 %v5112_v0 }
0x10cd   :  { %v4242_v43 = vpop.f32.mrb[10].mxu0 }
0x10ce   :  { %v1627_v44 = vadd.f32 %v4242_v43, %v3719_v42  ;;  %v1621_v45 = vpop.f32.mrb[11].mxu0 }
0x10cf   :  { %v1622_v46 = vadd.f32 %v3719_v42, %v1621_v45  ;;  %v3743_v42 = vld [vmem:[%s6121_s12 + $0x1] ss:$0 sm:$0xff] }
0x10d0   :  { %v1631_v36 = vmax.f32 %v1627_v44, 0.0 }
0x10d1   :  { %v1630_v47 = vmax.f32 %v1622_v46, 0.0 }
0x10d3   :  { %4275 = vmatprep.mubr.f32.mxu1 %v1630_v47  ;;  %v1798_v47 = vld [vmem:[#allocation5 + $0x4] sm:$0x3] }
0x10d4   :  { %4276 = vmatmul.mubr.f32.vlgmr.msra.gmra.mrb[22].mxu1 %v1631_v36  ;;  %v1803_v36 = vrot.slane %v1798_v47, %v5342_v29 }
0x10d5   :  { %4295 = vmatprep.mubr.msk.f32.mxu1 %vm5113_vm1, %v5112_v0 }
0x11a7   :  { %v4277_v48 = vpop.f32.mrb[22].mxu1 }
0x11a8   :  { %v1729_v49 = vadd.f32 %v4277_v48, %v3739_v39  ;;  %v1723_v50 = vpop.f32.mrb[23].mxu1 }
0x11a9   :  { %v1724_v51 = vadd.f32 %v3739_v39, %v1723_v50  ;;  %v1807_v39 = vrot.slane %v1798_v47, %v5345_v33 }
0x11aa   :  { %v1733_v52 = vadd.f32 %v1729_v49, %v1531_v40 }
0x11ab   :  { %v1732_v53 = vadd.f32 %v1724_v51, %v1530_v38 }
0x11ac   :  { %v1741_v54 = vsel %vm155_vm0, %v1733_v52, 0.0 }
0x11ad   :  { %1742 = vadd.xlane.f32.xlu0 %v1741_v54  ;;  %v1738_v55 = vsel %vm155_vm0, %v1732_v53, 0.0 }
0x11ae   :  { %1739 = vadd.xlane.f32.xlu1 %v1738_v55 }
0x123a   :  { %v1743_v56 = vpop.xlane.xlu0 %1742 }
0x123b   :  { %v1745_v57 = vmul.f32 0.015625, %v1743_v56  ;;  %v1740_v58 = vpop.xlane.xlu1 %1739 }
0x123c   :  { %v1744_v59 = vmul.f32 0.015625, %v1740_v58 }
0x123d   :  { %v1747_v60 = vsub.f32 %v1733_v52, %v1745_v57 }
0x123e   :  { %v1746_v61 = vsub.f32 %v1732_v53, %v1744_v59 }
0x123f   :  { %v1749_v62 = vmul.f32 %v1747_v60, %v1747_v60 }
0x1240   :  { %v1748_v63 = vmul.f32 %v1746_v61, %v1746_v61 }
0x1241   :  { %v1753_v1 = vsel %vm155_vm0, %v1749_v62, 0.0 }
0x1242   :  { %1754 = vadd.xlane.f32.xlu0 %v1753_v1  ;;  %v1750_v2 = vsel %vm155_vm0, %v1748_v63, 0.0 }
0x1243   :  { %1751 = vadd.xlane.f32.xlu1 %v1750_v2 }
0x12cf   :  { %v1755_v30 = vpop.xlane.xlu0 %1754 }
0x12d0   :  { %v1757_v31 = vmul.f32 0.015625, %v1755_v30  ;;  %v1752_v32 = vpop.xlane.xlu1 %1751  ;;  %v4702_v30 = vpack.c.bf16 %v3773_v24, %v3772_v23  ;;  %v3800_v23 = vld [vmem:[%s6118_s9 + $0x160] sm:$0xff]  ;;  %v3801_v24 = vld [vmem:[%s6118_s9 + $0x168] sm:$0xff] }
0x12d1   :  { %v1756_v34 = vmul.f32 0.015625, %v1752_v32  ;;  %v3775_v32 = vld [vmem:[%s6112_s3 + $0xb8] sm:$0xff] }
0x12d2   :  { %v1759_v35 = vadd.f32 1e-05, %v1757_v31  ;;  %v3774_v31 = vld [vmem:[%s6112_s3 + $0xb0] sm:$0xff] }
0x12d3   :  { %v1758_v37 = vadd.f32 1e-05, %v1756_v34  ;;  %v4706_v34 = vpack.c.bf16 %v3775_v32, %v3774_v31 }
0x12d4   :  { %4927 = vrsqrt.f32 %v1759_v35 }
0x12d5   :  { %4929 = vrsqrt.f32 %v1758_v37 }
0x12de   :  { %v4928_v38 = vpop.eup %4927 }
0x12df   :  { %v4930_v40 = vpop.eup %4929  ;;  %v1763_v41 = vmul.f32 %v4928_v38, %v1747_v60 }
0x12e0   :  { %v1762_v26 = vmul.f32 %v4930_v40, %v1746_v61 }
0x12e1   :  { %v1771_v45 = vmul.f32 %v3742_v25, %v1763_v41 }
0x12e2   :  { %v1770_v43 = vmul.f32 %v3742_v25, %v1762_v26  ;;  %v3777_v25 = vld [vmem:[%s6113_s4 + $0x2] ss:$0 sm:$0xff] }
0x12e3   :  { %v5742_v46 = vadd.f32 %v3743_v42, %v1771_v45 }
0x12e4   :  { %v5737_v44 = vadd.f32 %v3743_v42, %v1770_v43 }
0x12e6   :  { %3760 = vmatmul.mubr.msk.f32.vlgmr.msra.gmra.mrb[12].mxu0 %vm155_vm0, %v5737_v44 }
0x12e7   :  { %1886 = vmatprep.mubr.f32.mxu0 %v5112_v0 }
0x12ea   :  { %3761 = vmatmul.mubr.msk.f32.gmra.mrb[14].mxu0 %vm155_vm0, %v5742_v46 }
0x12eb   :  { %4280 = vmatprep.mubr.msk.f32.mxu0 %vm5113_vm1, %v5112_v0 }
0x13b9   :  { %v1882_v48 = vpop.f32.mrb[12].mxu0 }
0x13ba   :  { %v1883_v49 = vadd.f32 %v1882_v48, %v1803_v36  ;;  %v1884_v50 = vpop.f32.mrb[13].mxu0 }
0x13bb   :  { %v1885_v51 = vadd.f32 %v1884_v50, %v1807_v39 }
0x13bc   :  { %1894 = vrot.lane.b32.xlu1 %v1883_v49, %s5114_s7 }
0x13bd   :  { %v1888_v52 = vpop.f32.mrb[14].mxu0 }
0x13be   :  { %v1889_v53 = vadd.f32 %v1888_v52, %v1803_v36  ;;  %v1890_v54 = vpop.f32.mrb[15].mxu0 }
0x13bf   :  { %v1891_v55 = vadd.f32 %v1890_v54, %v1807_v39 }
0x13c0   :  { %1971 = vrot.lane.b32.xlu0 %v1889_v53, %s5114_s7 }
0x13c1   :  { %4294 = vmatpush3.msra.mxu1 %v1891_v55 }
0x142e   :  { %v1895_v56 = vpop.permute.xlu1 %1894 }
0x142f   :  { %4279 = vmatpush3.xpose.msk.msra.mxu0 %vm155_vm0, %v1895_v56  ;;  %v2364_v56 = vld [vmem:[#allocation7 + $0x80] sm:$0xff] }
0x1430   :  { %4283 = vmatprep.subr.mxu0 %v5112_v0 }
0x1432   :  { %v1972_v57 = vpop.permute.xlu0 %1971  ;;  %4281 = vmatmul.mubr.msk.f32.vlgmr.msra.gmra.mrb[16].mxu0 %vm155_vm0, %v1883_v49 }
0x1433   :  { %4284 = vmatpush3.xpose.msk.msra.mxu0 %vm155_vm0, %v1972_v57  ;;  %4285 = vmatprep.mubr.msk.f32.mxu0 %vm5113_vm1, %v5112_v0  ;;  %v2365_v57 = vld [vmem:[#allocation7 + $0x88] sm:$0xff] }
0x1434   :  { %4288 = vmatprep.subr.mxu0 %v5112_v0 }
0x1436   :  { %4286 = vmatmul.mubr.msk.f32.vlgmr.msra.gmra.mrb[18].mxu0 %vm155_vm0, %v1889_v53 }
0x1437   :  { %4289 = vmatpush3.msra.mxu0 %v1885_v51  ;;  %4290 = vmatprep.mubr.msk.f32.mxu0 %vm5113_vm1, %v5112_v0 }
0x1438   :  { %4695 = vmatprep.subr.bf16.mxu0 %v4694_v15 }
0x1505   :  { %v1966_v58 = vpop.f32.mrb[16].mxu0 }
0x1506   :  { %v2047_v59 = vmul.f32 0.125, %v1966_v58  ;;  %v4282_v60 = vpop.f32.mrb[17].mxu0  ;;  %v4710_v58 = vpack.c.bf16 %v2365_v57, %v2364_v56 }
0x1507   :  { %v2367_v60 = vld [vmem:[#allocation7 + $0x98] sm:$0xff] }
0x1508   :  { %v2049_v61 = vsel %vm395_vm2, %v2047_v59, -inf  ;;  %4711 = vmatprep.subr.bf16.mxu1 %v4710_v58 }
0x1509   :  { %2050 = vmax.xlane.f32.xlu1 %v2049_v61  ;;  %v2043_v62 = vpop.f32.mrb[18].mxu0 }
0x150a   :  { %v2048_v63 = vmul.f32 0.125, %v2043_v62  ;;  %v4287_v1 = vpop.f32.mrb[19].mxu0  ;;  %v2368_v62 = vld [vmem:[#allocation7 + $0xa0] sm:$0xff] }
0x150c   :  { %v2052_v2 = vsel %vm395_vm2, %v2048_v63, -inf }
0x150d   :  { %2053 = vmax.xlane.f32.xlu0 %v2052_v2  ;;  %v2370_v2 = vld [vmem:[#allocation7 + $0xb0] sm:$0xff] }
0x1596   :  { %v2051_v3 = vpop.xlane.xlu1 %2050 }
0x1597   :  { %v2055_v4 = vsub.f32 %v2047_v59, %v2051_v3  ;;  %v2366_v59 = vld [vmem:[#allocation7 + $0x90] sm:$0xff]  ;;  %v2371_v3 = vld [vmem:[#allocation7 + $0xb8] sm:$0xff] }
0x1598   :  { %v4714_v61 = vpack.c.bf16 %v2367_v60, %v2366_v59 }
0x1599   :  { %v2057_v5 = vmul.f32 1.442695, %v2055_v4  ;;  %v4722_v4 = vpack.c.bf16 %v2371_v3, %v2370_v2 }
0x159a   :  { %v2054_v6 = vpop.xlane.xlu0 %2053 }
0x159b   :  { %4931 = vpow2.f32 %v2057_v5  ;;  %v2056_v7 = vsub.f32 %v2048_v63, %v2054_v6  ;;  %v2369_v63 = vld [vmem:[#allocation7 + $0xa8] sm:$0xff]  ;;  %v3789_v6 = vld [vmem:[%s6118_s9 + $0x108] sm:$0xff] }
0x159c   :  { %v4718_v1 = vpack.c.bf16 %v2369_v63, %v2368_v62  ;;  %v3788_v5 = vld [vmem:[%s6118_s9 + $0x100] sm:$0xff] }
0x159d   :  { %v2059_v8 = vmul.f32 1.442695, %v2056_v7  ;;  %v3790_v7 = vld [vmem:[%s6118_s9 + $0x110] sm:$0xff] }
0x159f   :  { %4933 = vpow2.f32 %v2059_v8  ;;  %v4726_v8 = vpack.c.bf16 %v3789_v6, %v3788_v5 }
0x15a5   :  { %v4932_v9 = vpop.eup %4931 }
0x15a6   :  { %v2061_v10 = vsel %vm395_vm2, %v4932_v9, 0.0 }
0x15a7   :  { %2062 = vadd.xlane.f32.xlu1 %v2061_v10 }
0x15a9   :  { %v4934_v11 = vpop.eup %4933 }
0x15aa   :  { %v2064_v12 = vsel %vm395_vm2, %v4934_v11, 0.0 }
0x15ab   :  { %2065 = vadd.xlane.f32.xlu0 %v2064_v12  ;;  %v3793_v12 = vld [vmem:[%s6118_s9 + $0x128] sm:$0xff] }
0x1634   :  { %v2063_v16 = vpop.xlane.xlu1 %2062 }
0x1635   :  { %4935 = vrcp.f32 %v2063_v16 }
0x1638   :  { %v2066_v17 = vpop.xlane.xlu0 %2065 }
0x1639   :  { %4937 = vrcp.f32 %v2066_v17  ;;  %v3796_v17 = vld [vmem:[%s6118_s9 + $0x140] sm:$0xff] }
0x163a   :  { %v4742_v19 = vpack.c.bf16 %v3797_v18, %v3796_v17  ;;  %v3817_v17 = vld [vmem:[%s6134_s30 + $0x1b8] sm:$0xff] }
0x163f   :  { %v4936_v20 = vpop.eup %4935 }
0x1640   :  { %v2069_v21 = vmul.f32 %v4936_v20, %v4932_v9  ;;  %v3791_v9 = vld [vmem:[%s6118_s9 + $0x118] sm:$0xff]  ;;  %v3798_v20 = vld [vmem:[%s6118_s9 + $0x150] sm:$0xff] }
0x1641   :  { %v4730_v10 = vpack.c.bf16 %v3791_v9, %v3790_v7 }
0x1642   :  { %4291 = vmatmul.mubr.msk.f32.vlgmr.msra.gmra.mrb[20].mxu0 %vm395_vm2, %v2069_v21  ;;  %v3799_v21 = vld [vmem:[%s6118_s9 + $0x158] sm:$0xff] }
0x1643   :  { %v4938_v27 = vpop.eup %4937  ;;  %4697 = vmatpush3.bf16.msra.mxu0 %v4694_v15  ;;  %v3795_v15 = vld [vmem:[%s6118_s9 + $0x138] sm:$0xff] }
0x1644   :  { %v2070_v28 = vmul.f32 %v4938_v27, %v4934_v11  ;;  %4699 = vmatprep.subr.bf16.mxu0 %v4698_v22  ;;  %v3792_v11 = vld [vmem:[%s6118_s9 + $0x120] sm:$0xff]  ;;  %v4738_v16 = vpack.c.bf16 %v3795_v15, %v3794_v14  ;;  %v4750_v27 = vpack.c.bf16 %v3801_v24, %v3800_v23  ;;  %v3812_v14 = vld [vmem:[%s6134_s30 + $0x190] sm:$0xff]  ;;  %v3821_v23 = vld [vmem:[%s6134_s30 + $0x1d8] sm:$0xff] }
0x1645   :  { %v4734_v13 = vpack.c.bf16 %v3793_v12, %v3792_v11  ;;  %v3813_v11 = vld [vmem:[%s6134_s30 + $0x198] sm:$0xff] }
0x1646   :  { %4296 = vmatmul.mubr.msk.f32.vlgmr.msra.gmra.mrb[24].mxu1 %vm395_vm2, %v2070_v28 }
0x1647   :  { %4701 = vmatpush3.bf16.msra.mxu0 %v4698_v22  ;;  %4713 = vmatpush3.bf16.msra.mxu1 %v4710_v58  ;;  %v4746_v22 = vpack.c.bf16 %v3799_v21, %v3798_v20  ;;  %v3816_v20 = vld [vmem:[%s6134_s30 + $0x1b0] sm:$0xff] }
0x1648   :  { %4703 = vmatprep.subr.bf16.mxu0 %v4702_v30  ;;  %4715 = vmatprep.subr.bf16.mxu1 %v4714_v61 }
0x164b   :  { %4705 = vmatpush3.bf16.msra.mxu0 %v4702_v30  ;;  %4717 = vmatpush3.bf16.msra.mxu1 %v4714_v61 }
0x164c   :  { %4707 = vmatprep.subr.bf16.mxu0 %v4706_v34  ;;  %4719 = vmatprep.subr.bf16.mxu1 %v4718_v1 }
0x164f   :  { %4709 = vmatpush3.bf16.msra.mxu0 %v4706_v34  ;;  %4721 = vmatpush3.bf16.msra.mxu1 %v4718_v1 }
0x1650   :  { %4723 = vmatprep.subr.bf16.mxu1 %v4722_v4  ;;  %4727 = vmatprep.subr.bf16.mxu0 %v4726_v8 }
0x1653   :  { %4725 = vmatpush3.bf16.msra.mxu1 %v4722_v4 }
0x1715   :  { %v2140_v35 = vpop.f32.mrb[20].mxu0 }
0x1716   :  { %v4292_v37 = vpop.f32.mrb[21].mxu0  ;;  %4314 = vmatprep.mubr.msk.f32.mxu0 %vm155_vm0, %v2140_v35 }
0x1719   :  { %v2213_v38 = vpop.f32.mrb[24].mxu1 }
0x171a   :  { %v4297_v40 = vpop.f32.mrb[25].mxu1  ;;  %4315 = vmatmul.mubr.msk.f32.vlgmr.msra.gmra.mrb[22].mxu0 %vm155_vm0, %v2213_v38  ;;  %v3782_v38 = vld [vmem:[%s6114_s5 + $0x2] ss:$0 sm:$0xff] }
0x171b   :  { %4729 = vmatpush3.bf16.msra.mxu0 %v4726_v8 }
0x171c   :  { %4731 = vmatprep.subr.bf16.mxu0 %v4730_v10 }
0x171f   :  { %4733 = vmatpush3.bf16.msra.mxu0 %v4730_v10  ;;  %v3811_v10 = vld [vmem:[%s6134_s30 + $0x188] sm:$0xff] }
0x1720   :  { %4735 = vmatprep.subr.bf16.mxu0 %v4734_v13  ;;  %v4758_v12 = vpack.c.bf16 %v3813_v11, %v3811_v10 }
0x1722   :  { %4759 = vmatprep.subr.bf16.mxu1 %v4758_v12 }
0x1723   :  { %4737 = vmatpush3.bf16.msra.mxu0 %v4734_v13  ;;  %v3810_v13 = vld [vmem:[%s6134_s30 + $0x180] sm:$0xff] }
0x1724   :  { %4739 = vmatprep.subr.bf16.mxu0 %v4738_v16  ;;  %v4760_v15 = vpack.c.bf16 %v3812_v14, %v3810_v13 }
0x1727   :  { %4741 = vmatpush3.bf16.msra.mxu0 %v4738_v16  ;;  %v3815_v16 = vld [vmem:[%s6134_s30 + $0x1a8] sm:$0xff] }
0x1728   :  { %4743 = vmatprep.subr.bf16.mxu0 %v4742_v19  ;;  %v4762_v18 = vpack.c.bf16 %v3817_v17, %v3815_v16  ;;  %v3834_v17 = vld [vmem:[%s6112_s3 + $0xc0] sm:$0xff] }
0x172b   :  { %4745 = vmatpush3.bf16.msra.mxu0 %v4742_v19  ;;  %v3814_v19 = vld [vmem:[%s6134_s30 + $0x1a0] sm:$0xff] }
0x172c   :  { %4747 = vmatprep.subr.bf16.mxu0 %v4746_v22  ;;  %v4764_v21 = vpack.c.bf16 %v3816_v20, %v3814_v19 }
0x172f   :  { %4749 = vmatpush3.bf16.msra.mxu0 %v4746_v22  ;;  %v3819_v22 = vld [vmem:[%s6134_s30 + $0x1c8] sm:$0xff] }
0x1730   :  { %4751 = vmatprep.subr.bf16.mxu0 %v4750_v27  ;;  %v4766_v24 = vpack.c.bf16 %v3821_v23, %v3819_v22  ;;  %v3836_v22 = vld [vmem:[%s6112_s3 + $0xd0] sm:$0xff]  ;;  %v3837_v23 = vld [vmem:[%s6112_s3 + $0xd8] sm:$0xff] }
0x1733   :  { %4753 = vmatpush3.bf16.msra.mxu0 %v4750_v27  ;;  %v3818_v27 = vld [vmem:[%s6134_s30 + $0x1c0] sm:$0xff] }
0x17ed   :  { %v4316_v26 = vpop.f32.mrb[22].mxu0 }
0x17ee   :  { %v2312_v41 = vadd.f32 %v4316_v26, %v3777_v25  ;;  %v2306_v42 = vpop.f32.mrb[23].mxu0 }
0x17ef   :  { %v2307_v43 = vadd.f32 %v3777_v25, %v2306_v42 }
0x17f0   :  { %v2316_v45 = vadd.f32 %v2312_v41, %v5742_v46  ;;  %v3783_v41 = vld [vmem:[%s6115_s6 + $0x2] ss:$0 sm:$0xff] }
0x17f1   :  { %v2315_v47 = vadd.f32 %v2307_v43, %v5737_v44 }
0x17f2   :  { %v2324_v36 = vsel %vm155_vm0, %v2316_v45, 0.0 }
0x17f3   :  { %2325 = vadd.xlane.f32.xlu0 %v2324_v36  ;;  %v2321_v39 = vsel %vm155_vm0, %v2315_v47, 0.0  ;;  %v3802_v36 = vld [vmem:[%s6118_s9 + $0x170] sm:$0xff] }
0x17f4   :  { %2322 = vadd.xlane.f32.xlu1 %v2321_v39  ;;  %v3803_v39 = vld [vmem:[%s6118_s9 + $0x178] sm:$0xff] }
0x1880   :  { %v2326_v48 = vpop.xlane.xlu0 %2325 }
0x1881   :  { %v2328_v49 = vmul.f32 0.015625, %v2326_v48  ;;  %v2323_v50 = vpop.xlane.xlu1 %2322  ;;  %v4754_v48 = vpack.c.bf16 %v3803_v39, %v3802_v36  ;;  %v3808_v36 = vld [vmem:[%s6120_s11 + $0x2] ss:$0 sm:$0xff] }
0x1882   :  { %v2327_v51 = vmul.f32 0.015625, %v2323_v50 }
0x1883   :  { %v5801_v52 = vsub.f32 %v2316_v45, %v2328_v49  ;;  %4755 = vmatprep.subr.bf16.mxu0 %v4754_v48  ;;  %v3785_v49 = vld [vmem:[%s6117_s8 + $0x2] ss:$0 sm:$0xff] }
0x1884   :  { %v5803_v53 = vsub.f32 %v2315_v47, %v2327_v51  ;;  %4757 = vmatpush3.bf16.msra.mxu0 %v4754_v48 }
0x1885   :  { %v2332_v54 = vmul.f32 %v5801_v52, %v5801_v52  ;;  %4386 = vmatprep.subr.mxu0 %v5112_v0 }
0x1886   :  { %v2331_v44 = vmul.f32 %v5803_v53, %v5803_v53 }
0x1887   :  { %v2336_v46 = vsel %vm155_vm0, %v2332_v54, 0.0 }
0x1888   :  { %2337 = vadd.xlane.f32.xlu0 %v2336_v46  ;;  %v2333_v55 = vsel %vm155_vm0, %v2331_v44, 0.0  ;;  %v3805_v46 = vld [vmem:[%s6119_s10 + $0x2] ss:$0 sm:$0xff] }
0x1889   :  { %2334 = vadd.xlane.f32.xlu1 %v2333_v55 }
0x1915   :  { %v2338_v28 = vpop.xlane.xlu0 %2337 }
0x1916   :  { %v2340_v30 = vmul.f32 0.015625, %v2338_v28  ;;  %v2335_v31 = vpop.xlane.xlu1 %2334  ;;  %v3820_v28 = vld [vmem:[%s6134_s30 + $0x1d0] sm:$0xff] }
0x1917   :  { %v2339_v32 = vmul.f32 0.015625, %v2335_v31  ;;  %v3823_v31 = vld [vmem:[%s6134_s30 + $0x1e8] sm:$0xff] }
0x1918   :  { %v2342_v34 = vadd.f32 1e-05, %v2340_v30  ;;  %v4768_v30 = vpack.c.bf16 %v3820_v28, %v3818_v27  ;;  %v4778_v28 = vpack.c.bf16 %v3837_v23, %v3836_v22  ;;  %v3865_v22 = vld [vmem:[%s6118_s9 + $0x1d8] sm:$0xff] }
0x1919   :  { %v2341_v35 = vadd.f32 1e-05, %v2339_v32  ;;  %v3825_v32 = vld [vmem:[%s6134_s30 + $0x1f8] sm:$0xff] }
0x191a   :  { %4939 = vrsqrt.f32 %v2342_v34  ;;  %v3822_v34 = vld [vmem:[%s6134_s30 + $0x1e0] sm:$0xff] }
0x191b   :  { %4941 = vrsqrt.f32 %v2341_v35  ;;  %v4770_v35 = vpack.c.bf16 %v3825_v32, %v3823_v31  ;;  %v3839_v31 = vld [vmem:[%s6112_s3 + $0xe8] sm:$0xff] }
0x1924   :  { %v4940_v37 = vpop.eup %4939 }
0x1925   :  { %v4942_v40 = vpop.eup %4941  ;;  %v2346_v25 = vmul.f32 %v4940_v37, %v5801_v52  ;;  %v3824_v37 = vld [vmem:[%s6134_s30 + $0x1f0] sm:$0xff] }
0x1926   :  { %v2345_v26 = vmul.f32 %v4942_v40, %v5803_v53 }
0x1927   :  { %v2354_v42 = vmul.f32 %v3782_v38, %v2346_v25 }
0x1928   :  { %v2353_v43 = vmul.f32 %v3782_v38, %v2345_v26  ;;  %v4772_v38 = vpack.c.bf16 %v3824_v37, %v3822_v34  ;;  %v3840_v37 = vld [vmem:[%s6112_s3 + $0xf0] sm:$0xff] }
0x1929   :  { %v2362_v47 = vadd.f32 %v3783_v41, %v2354_v42 }
0x192a   :  { %v2361_v45 = vadd.f32 %v3783_v41, %v2353_v43 }
0x192c   :  { %4333 = vmatprep.mubr.msk.f32.mxu1 %vm155_vm0, %v2361_v45 }
0x192d   :  { %4334 = vmatmul.mubr.msk.f32.vlgmr.msra.gmra.mrb[26].mxu1 %vm155_vm0, %v2362_v47 }
0x192e   :  { %2711 = vmatprep.mubr.f32.mxu1 %v5112_v0  ;;  %4761 = vmatpush1.bf16.msra.mxu1 %v4760_v15 }
0x192f   :  { %4763 = vmatprep.subr.bf16.mxu1 %v4762_v18  ;;  %v3835_v18 = vld [vmem:[%s6112_s3 + $0xc8] sm:$0xff] }
0x1930   :  { %v4774_v19 = vpack.c.bf16 %v3835_v18, %v3834_v17  ;;  %v3862_v18 = vld [vmem:[%s6118_s9 + $0x1c0] sm:$0xff] }
0x1932   :  { %4765 = vmatpush1.bf16.msra.mxu1 %v4764_v21 }
0x1933   :  { %4767 = vmatprep.subr.bf16.mxu1 %v4766_v24 }
0x1936   :  { %4769 = vmatpush1.bf16.msra.mxu1 %v4768_v30  ;;  %v3838_v30 = vld [vmem:[%s6112_s3 + $0xe0] sm:$0xff] }
0x1937   :  { %4771 = vmatprep.subr.bf16.mxu1 %v4770_v35  ;;  %v4782_v35 = vpack.c.bf16 %v3839_v31, %v3838_v30 }
0x193a   :  { %4773 = vmatpush1.bf16.msra.mxu1 %v4772_v38  ;;  %v3841_v38 = vld [vmem:[%s6112_s3 + $0xf8] sm:$0xff] }
0x193b   :  { %4371 = vmatprep.subr.mxu1 %v5112_v0 }
0x1a00   :  { %v4335_v50 = vpop.f32.mrb[26].mxu1 }
0x1a01   :  { %v2458_v51 = vadd.f32 %v4335_v50, %v3785_v49  ;;  %v2452_v52 = vpop.f32.mrb[27].mxu1 }
0x1a02   :  { %v2453_v53 = vadd.f32 %v3785_v49, %v2452_v52  ;;  %v3809_v49 = vld [vmem:[%s6121_s12 + $0x2] ss:$0 sm:$0xff] }
0x1a03   :  { %v2462_v44 = vmax.f32 %v2458_v51, 0.0 }
0x1a04   :  { %v2461_v54 = vmax.f32 %v2453_v53, 0.0 }
0x1a06   :  { %4368 = vmatprep.mubr.f32.mxu0 %v2461_v54  ;;  %v2629_v54 = vld [vmem:[#allocation5 + $0x6] sm:$0x3] }
0x1a07   :  { %4369 = vmatmul.mubr.f32.vlgmr.msra.gmra.mrb[24].mxu0 %v2462_v44  ;;  %v2634_v44 = vrot.slane %v2629_v54, %v5342_v29 }
0x1a08   :  { %4388 = vmatprep.mubr.msk.f32.mxu0 %vm5113_vm1, %v5112_v0 }
0x1ada   :  { %v4370_v55 = vpop.f32.mrb[24].mxu0 }
0x1adb   :  { %v2560_v56 = vadd.f32 %v4370_v55, %v3805_v46  ;;  %v2554_v57 = vpop.f32.mrb[25].mxu0 }
0x1adc   :  { %v2555_v58 = vadd.f32 %v3805_v46, %v2554_v57  ;;  %v2638_v46 = vrot.slane %v2629_v54, %v5345_v33 }
0x1add   :  { %v2564_v59 = vadd.f32 %v2560_v56, %v2362_v47 }
0x1ade   :  { %v2563_v60 = vadd.f32 %v2555_v58, %v2361_v45 }
0x1adf   :  { %v2572_v61 = vsel %vm155_vm0, %v2564_v59, 0.0 }
0x1ae0   :  { %2573 = vadd.xlane.f32.xlu0 %v2572_v61  ;;  %v2569_v62 = vsel %vm155_vm0, %v2563_v60, 0.0 }
0x1ae1   :  { %2570 = vadd.xlane.f32.xlu1 %v2569_v62 }
0x1b6d   :  { %v2574_v63 = vpop.xlane.xlu0 %2573 }
0x1b6e   :  { %v2576_v1 = vmul.f32 0.015625, %v2574_v63  ;;  %v2571_v2 = vpop.xlane.xlu1 %2570 }
0x1b6f   :  { %v2575_v3 = vmul.f32 0.015625, %v2571_v2 }
0x1b70   :  { %v2578_v4 = vsub.f32 %v2564_v59, %v2576_v1 }
0x1b71   :  { %v2577_v5 = vsub.f32 %v2563_v60, %v2575_v3 }
0x1b72   :  { %v2580_v6 = vmul.f32 %v2578_v4, %v2578_v4 }
0x1b73   :  { %v2579_v7 = vmul.f32 %v2577_v5, %v2577_v5 }
0x1b74   :  { %v2584_v8 = vsel %vm155_vm0, %v2580_v6, 0.0 }
0x1b75   :  { %2585 = vadd.xlane.f32.xlu0 %v2584_v8  ;;  %v2581_v9 = vsel %vm155_vm0, %v2579_v7, 0.0 }
0x1b76   :  { %2582 = vadd.xlane.f32.xlu1 %v2581_v9 }
0x1c02   :  { %v2586_v40 = vpop.xlane.xlu0 %2585 }
0x1c03   :  { %v2588_v25 = vmul.f32 0.015625, %v2586_v40  ;;  %v2583_v26 = vpop.xlane.xlu1 %2582  ;;  %v4786_v40 = vpack.c.bf16 %v3841_v38, %v3840_v37 }
0x1c04   :  { %v2587_v41 = vmul.f32 0.015625, %v2583_v26 }
0x1c05   :  { %v2590_v42 = vadd.f32 1e-05, %v2588_v25 }
0x1c06   :  { %v2589_v43 = vadd.f32 1e-05, %v2587_v41 }
0x1c07   :  { %4943 = vrsqrt.f32 %v2590_v42 }
0x1c08   :  { %4945 = vrsqrt.f32 %v2589_v43  ;;  %v3843_v43 = vld [vmem:[%s6113_s4 + $0x3] ss:$0 sm:$0xff]  ;;  %s5115_s4 = smov [#allocation11]  }
0x1c11   :  { %v4944_v45 = vpop.eup %4943 }
0x1c12   :  { %v4946_v47 = vpop.eup %4945  ;;  %v2594_v48 = vmul.f32 %v4944_v45, %v2578_v4 }
0x1c13   :  { %v2593_v39 = vmul.f32 %v4946_v47, %v2577_v5 }
0x1c14   :  { %v2602_v52 = vmul.f32 %v3808_v36, %v2594_v48 }
0x1c15   :  { %v2601_v50 = vmul.f32 %v3808_v36, %v2593_v39 }
0x1c16   :  { %v5943_v53 = vadd.f32 %v3809_v49, %v2602_v52 }
0x1c17   :  { %v5938_v51 = vadd.f32 %v3809_v49, %v2601_v50 }
0x1c19   :  { %3826 = vmatmul.mubr.msk.f32.vlgmr.msra.gmra.mrb[28].mxu1 %vm155_vm0, %v5938_v51 }
0x1c1a   :  { %2717 = vmatprep.mubr.f32.mxu1 %v5112_v0 }
0x1c1d   :  { %3827 = vmatmul.mubr.msk.f32.gmra.mrb[30].mxu1 %vm155_vm0, %v5943_v53 }
0x1c1e   :  { %4373 = vmatprep.mubr.msk.f32.mxu1 %vm5113_vm1, %v5112_v0 }
0x1cec   :  { %v2713_v55 = vpop.f32.mrb[28].mxu1 }
0x1ced   :  { %v2714_v56 = vadd.f32 %v2713_v55, %v2634_v44  ;;  %v2715_v57 = vpop.f32.mrb[29].mxu1 }
0x1cee   :  { %v2716_v58 = vadd.f32 %v2715_v57, %v2638_v46 }
0x1cef   :  { %2725 = vrot.lane.b32.xlu1 %v2714_v56, %s5114_s7 }
0x1cf0   :  { %v2719_v59 = vpop.f32.mrb[30].mxu1 }
0x1cf1   :  { %v2720_v60 = vadd.f32 %v2719_v59, %v2634_v44  ;;  %v2721_v61 = vpop.f32.mrb[31].mxu1 }
0x1cf2   :  { %v2722_v62 = vadd.f32 %v2721_v61, %v2638_v46  ;;  %v3196_v61 = vld [vmem:[#allocation7 + $0xc8] sm:$0xff] }
0x1cf3   :  { %2802 = vrot.lane.b32.xlu0 %v2720_v60, %s5114_s7  ;;  %s3645_s7 = sshll.u32 %s5115_s4, 4  ;;  %s3646_s7 = int_to_ptr.vmem [resolvable:$true] %s3645_s7 }
0x1cf4   :  { %4387 = vmatpush3.msra.mxu0 %v2722_v62  ;;  %p5078_p13 = scmp.lt.s32.totalorder %s3646_s7, %s3646_s7 }
0x1d61   :  { %v2726_v63 = vpop.permute.xlu1 %2725 }
0x1d62   :  { %4372 = vmatpush3.xpose.msk.msra.mxu1 %vm155_vm0, %v2726_v63  ;;  %v3197_v63 = vld [vmem:[#allocation7 + $0xd0] sm:$0xff] }
0x1d63   :  { %4376 = vmatprep.subr.mxu1 %v5112_v0 }
0x1d65   :  { %v2803_v29 = vpop.permute.xlu0 %2802  ;;  %4374 = vmatmul.mubr.msk.f32.vlgmr.msra.gmra.mrb[32].mxu1 %vm155_vm0, %v2714_v56 }
0x1d66   :  { %4377 = vmatpush3.xpose.msk.msra.mxu1 %vm155_vm0, %v2803_v29  ;;  %4378 = vmatprep.mubr.msk.f32.mxu1 %vm5113_vm1, %v5112_v0  ;;  %v3198_v29 = vld [vmem:[#allocation7 + $0xd8] sm:$0xff] }
0x1d67   :  { %4381 = vmatprep.subr.mxu1 %v5112_v0 }
0x1d69   :  { %4379 = vmatmul.mubr.msk.f32.vlgmr.msra.gmra.mrb[34].mxu1 %vm155_vm0, %v2720_v60  ;;  %v3195_v60 = vld [vmem:[#allocation7 + $0xc0] sm:$0xff] }
0x1d6a   :  { %4382 = vmatpush3.msra.mxu1 %v2716_v58  ;;  %4383 = vmatprep.mubr.msk.f32.mxu1 %vm5113_vm1, %v5112_v0  ;;  %v4790_v62 = vpack.c.bf16 %v3196_v61, %v3195_v60 }
0x1d6b   :  { %4775 = vmatprep.subr.bf16.mxu1 %v4774_v19 }
0x1d6c   :  { %4791 = vmatprep.subr.bf16.mxu0 %v4790_v62 }
0x1e38   :  { %v2797_v33 = vpop.f32.mrb[32].mxu1 }
0x1e39   :  { %v2878_v1 = vmul.f32 0.125, %v2797_v33  ;;  %v4375_v2 = vpop.f32.mrb[33].mxu1  ;;  %v4794_v33 = vpack.c.bf16 %v3198_v29, %v3197_v63 }
0x1e3a   :  { %v3200_v2 = vld [vmem:[#allocation7 + $0xe8] sm:$0xff] }
0x1e3b   :  { %v2880_v3 = vsel %vm395_vm2, %v2878_v1, -inf }
0x1e3c   :  { %2881 = vmax.xlane.f32.xlu1 %v2880_v3  ;;  %v2874_v4 = vpop.f32.mrb[34].mxu1 }
0x1e3d   :  { %v2879_v5 = vmul.f32 0.125, %v2874_v4  ;;  %v4380_v6 = vpop.f32.mrb[35].mxu1  ;;  %v3201_v4 = vld [vmem:[#allocation7 + $0xf0] sm:$0xff] }
0x1e3f   :  { %v2883_v7 = vsel %vm395_vm2, %v2879_v5, -inf }
0x1e40   :  { %2884 = vmax.xlane.f32.xlu0 %v2883_v7  ;;  %v3854_v7 = vld [vmem:[%s6118_s9 + $0x180] sm:$0xff] }
0x1ec9   :  { %v2882_v8 = vpop.xlane.xlu1 %2881 }
0x1eca   :  { %v2886_v9 = vsub.f32 %v2878_v1, %v2882_v8  ;;  %v3199_v1 = vld [vmem:[#allocation7 + $0xe0] sm:$0xff]  ;;  %v3855_v8 = vld [vmem:[%s6118_s9 + $0x188] sm:$0xff] }
0x1ecb   :  { %v4798_v3 = vpack.c.bf16 %v3200_v2, %v3199_v1 }
0x1ecc   :  { %v2888_v10 = vmul.f32 1.442695, %v2886_v9  ;;  %v3856_v9 = vld [vmem:[%s6118_s9 + $0x190] sm:$0xff] }
0x1ecd   :  { %v2885_v11 = vpop.xlane.xlu0 %2884 }
0x1ece   :  { %4947 = vpow2.f32 %v2888_v10  ;;  %v2887_v12 = vsub.f32 %v2879_v5, %v2885_v11  ;;  %v3202_v5 = vld [vmem:[#allocation7 + $0xf8] sm:$0xff]  ;;  %v4806_v10 = vpack.c.bf16 %v3855_v8, %v3854_v7  ;;  %v3857_v11 = vld [vmem:[%s6118_s9 + $0x198] sm:$0xff] }
0x1ecf   :  { %v4802_v6 = vpack.c.bf16 %v3202_v5, %v3201_v4 }
0x1ed0   :  { %v2890_v13 = vmul.f32 1.442695, %v2887_v12  ;;  %v4810_v12 = vpack.c.bf16 %v3857_v11, %v3856_v9  ;;  %v3442_v9 = vld [vmem:[#allocation8] sm:$0xff] }
0x1ed2   :  { %4949 = vpow2.f32 %v2890_v13  ;;  %v3858_v13 = vld [vmem:[%s6118_s9 + $0x1a0] sm:$0xff] }
0x1ed8   :  { %v4948_v0 = vpop.eup %4947 }
0x1ed9   :  { %v2892_v14 = vsel %vm395_vm2, %v4948_v0, 0.0 }
0x1eda   :  { %2893 = vadd.xlane.f32.xlu1 %v2892_v14 }
0x1edc   :  { %v4950_v15 = vpop.eup %4949 }
0x1edd   :  { %v2895_v16 = vsel %vm395_vm2, %v4950_v15, 0.0 }
0x1ede   :  { %2896 = vadd.xlane.f32.xlu0 %v2895_v16  ;;  %v3861_v16 = vld [vmem:[%s6118_s9 + $0x1b8] sm:$0xff] }
0x1f67   :  { %v2894_v20 = vpop.xlane.xlu1 %2893 }
0x1f68   :  { %4951 = vrcp.f32 %v2894_v20 }
0x1f6b   :  { %v2897_v21 = vpop.xlane.xlu0 %2896 }
0x1f6c   :  { %4953 = vrcp.f32 %v2897_v21  ;;  %v3864_v21 = vld [vmem:[%s6118_s9 + $0x1d0] sm:$0xff] }
0x1f6d   :  { %v4826_v23 = vpack.c.bf16 %v3865_v22, %v3864_v21  ;;  %v3541_v21 = vld [vmem:[#allocation10 + $0x8] sm:$0xff] }
0x1f72   :  { %v4952_v24 = vpop.eup %4951 }
0x1f73   :  { %v2900_v27 = vmul.f32 %v4952_v24, %v4948_v0  ;;  %v3859_v0 = vld [vmem:[%s6118_s9 + $0x1a8] sm:$0xff]  ;;  %v3866_v24 = vld [vmem:[%s6118_s9 + $0x1e0] sm:$0xff] }
0x1f74   :  { %v4814_v14 = vpack.c.bf16 %v3859_v0, %v3858_v13  ;;  %v3445_v13 = vld [vmem:[#allocation8 + $0x18] sm:$0xff] }
0x1f75   :  { %4384 = vmatmul.mubr.msk.f32.vlgmr.msra.gmra.mrb[36].mxu1 %vm395_vm2, %v2900_v27  ;;  %v3867_v27 = vld [vmem:[%s6118_s9 + $0x1e8] sm:$0xff] }
0x1f76   :  { %v4954_v32 = vpop.eup %4953  ;;  %4777 = vmatpush3.bf16.msra.mxu1 %v4774_v19  ;;  %v3863_v19 = vld [vmem:[%s6118_s9 + $0x1c8] sm:$0xff] }
0x1f77   :  { %v2901_v34 = vmul.f32 %v4954_v32, %v4950_v15  ;;  %4779 = vmatprep.subr.bf16.mxu1 %v4778_v28  ;;  %v3860_v15 = vld [vmem:[%s6118_s9 + $0x1b0] sm:$0xff]  ;;  %v4822_v20 = vpack.c.bf16 %v3863_v19, %v3862_v18 }
0x1f78   :  { %v4818_v17 = vpack.c.bf16 %v3861_v16, %v3860_v15  ;;  %v3447_v15 = vld [vmem:[#allocation8 + $0x28] sm:$0xff]  ;;  %v3449_v18 = vld [vmem:[#allocation8 + $0x38] sm:$0xff] }
0x1f79   :  { %4389 = vmatmul.mubr.msk.f32.vlgmr.msra.gmra.mrb[26].mxu0 %vm395_vm2, %v2901_v34 }
0x1f7a   :  { %4781 = vmatpush3.bf16.msra.mxu1 %v4778_v28  ;;  %4793 = vmatpush3.bf16.msra.mxu0 %v4790_v62  ;;  %v4830_v28 = vpack.c.bf16 %v3867_v27, %v3866_v24 }
0x1f7b   :  { %4783 = vmatprep.subr.bf16.mxu1 %v4782_v35  ;;  %4795 = vmatprep.subr.bf16.mxu0 %v4794_v33 }
0x1f7e   :  { %4785 = vmatpush3.bf16.msra.mxu1 %v4782_v35  ;;  %4797 = vmatpush3.bf16.msra.mxu0 %v4794_v33 }
0x1f7f   :  { %4787 = vmatprep.subr.bf16.mxu1 %v4786_v40  ;;  %4799 = vmatprep.subr.bf16.mxu0 %v4798_v3 }
0x1f82   :  { %4789 = vmatpush3.bf16.msra.mxu1 %v4786_v40  ;;  %4801 = vmatpush3.bf16.msra.mxu0 %v4798_v3  ;;  %v3848_v40 = vld [vmem:[%s6114_s5 + $0x3] ss:$0 sm:$0xff] }
0x1f83   :  { %4803 = vmatprep.subr.bf16.mxu0 %v4802_v6  ;;  %4807 = vmatprep.subr.bf16.mxu1 %v4806_v10 }
0x1f86   :  { %4805 = vmatpush3.bf16.msra.mxu0 %v4802_v6 }
0x2048   :  { %v2971_v25 = vpop.f32.mrb[36].mxu1 }
0x2049   :  { %v4385_v26 = vpop.f32.mrb[37].mxu1  ;;  %4407 = vmatprep.mubr.msk.f32.mxu1 %vm155_vm0, %v2971_v25 }
0x204c   :  { %v3044_v41 = vpop.f32.mrb[26].mxu0 }
0x204d   :  { %v4390_v42 = vpop.f32.mrb[27].mxu0  ;;  %4408 = vmatmul.mubr.msk.f32.vlgmr.msra.gmra.mrb[38].mxu1 %vm155_vm0, %v3044_v41 }
0x204e   :  { %4809 = vmatpush3.bf16.msra.mxu1 %v4806_v10  ;;  %v3849_v42 = vld [vmem:[%s6115_s6 + $0x3] ss:$0 sm:$0xff] }
0x204f   :  { %4811 = vmatprep.subr.bf16.mxu1 %v4810_v12  ;;  %v3443_v10 = vld [vmem:[#allocation8 + $0x8] sm:$0xff] }
0x2050   :  { %v4838_v11 = vpack.c.bf16 %v3443_v10, %v3442_v9 }
0x2052   :  { %4813 = vmatpush3.bf16.msra.mxu1 %v4810_v12  ;;  %4839 = vmatprep.subr.bf16.mxu0 %v4838_v11  ;;  %v3444_v12 = vld [vmem:[#allocation8 + $0x10] sm:$0xff] }
0x2053   :  { %4815 = vmatprep.subr.bf16.mxu1 %v4814_v14  ;;  %v4842_v0 = vpack.c.bf16 %v3445_v13, %v3444_v12 }
0x2056   :  { %4817 = vmatpush3.bf16.msra.mxu1 %v4814_v14  ;;  %v3446_v14 = vld [vmem:[#allocation8 + $0x20] sm:$0xff] }
0x2057   :  { %4819 = vmatprep.subr.bf16.mxu1 %v4818_v17  ;;  %v4846_v16 = vpack.c.bf16 %v3447_v15, %v3446_v14 }
0x205a   :  { %4821 = vmatpush3.bf16.msra.mxu1 %v4818_v17  ;;  %v3448_v17 = vld [vmem:[#allocation8 + $0x30] sm:$0xff] }
0x205b   :  { %4823 = vmatprep.subr.bf16.mxu1 %v4822_v20  ;;  %v4850_v19 = vpack.c.bf16 %v3449_v18, %v3448_v17 }
0x205e   :  { %4825 = vmatpush3.bf16.msra.mxu1 %v4822_v20  ;;  %v3540_v20 = vld [vmem:[#allocation10] sm:$0xff] }
0x205f   :  { %4827 = vmatprep.subr.bf16.mxu1 %v4826_v23  ;;  %v4854_v22 = vpack.c.bf16 %v3541_v21, %v3540_v20 }
0x2062   :  { %4829 = vmatpush3.bf16.msra.mxu1 %v4826_v23 }
0x2063   :  { %4831 = vmatprep.subr.bf16.mxu1 %v4830_v28 }
0x2066   :  { %4833 = vmatpush3.bf16.msra.mxu1 %v4830_v28 }
0x2120   :  { %v4409_v45 = vpop.f32.mrb[38].mxu1 }
0x2121   :  { %v3143_v47 = vadd.f32 %v4409_v45, %v3843_v43  ;;  %v3137_v36 = vpop.f32.mrb[39].mxu1 }
0x2122   :  { %v3138_v39 = vadd.f32 %v3843_v43, %v3137_v36 }
0x2123   :  { %v3147_v48 = vadd.f32 %v3143_v47, %v5943_v53 }
0x2124   :  { %v3146_v49 = vadd.f32 %v3138_v39, %v5938_v51  ;;  %v3868_v39 = vld [vmem:[%s6118_s9 + $0x1f0] sm:$0xff] }
0x2125   :  { %v3155_v50 = vsel %vm155_vm0, %v3147_v48, 0.0 }
0x2126   :  { %3156 = vadd.xlane.f32.xlu0 %v3155_v50  ;;  %v3152_v52 = vsel %vm155_vm0, %v3146_v49, 0.0  ;;  %v3851_v50 = vld [vmem:[%s6117_s8 + $0x3] ss:$0 sm:$0xff] }
0x2127   :  { %3153 = vadd.xlane.f32.xlu1 %v3152_v52 }
0x21b3   :  { %v3157_v54 = vpop.xlane.xlu0 %3156 }
0x21b4   :  { %v3159_v44 = vmul.f32 0.015625, %v3157_v54  ;;  %v3154_v46 = vpop.xlane.xlu1 %3153 }
0x21b5   :  { %v3158_v55 = vmul.f32 0.015625, %v3154_v46 }
0x21b6   :  { %v6002_v56 = vsub.f32 %v3147_v48, %v3159_v44  ;;  %v3869_v48 = vld [vmem:[%s6118_s9 + $0x1f8] sm:$0xff] }
0x21b7   :  { %v6004_v57 = vsub.f32 %v3146_v49, %v3158_v55  ;;  %v4834_v49 = vpack.c.bf16 %v3869_v48, %v3868_v39  ;;  %v3545_v39 = vld [vmem:[#allocation10 + $0x28] sm:$0xff] }
0x21b8   :  { %v3163_v58 = vmul.f32 %v6002_v56, %v6002_v56 }
0x21b9   :  { %v3162_v51 = vmul.f32 %v6004_v57, %v6004_v57  ;;  %4835 = vmatprep.subr.bf16.mxu1 %v4834_v49 }
0x21ba   :  { %v3167_v53 = vsel %vm155_vm0, %v3163_v58, 0.0  ;;  %4837 = vmatpush3.bf16.msra.mxu1 %v4834_v49  ;;  %v3546_v49 = vld [vmem:[#allocation10 + $0x30] sm:$0xff] }
0x21bb   :  { %3168 = vadd.xlane.f32.xlu0 %v3167_v53  ;;  %v3164_v59 = vsel %vm155_vm0, %v3162_v51, 0.0 }
0x21bc   :  { %3165 = vadd.xlane.f32.xlu1 %v3164_v59 }
0x2248   :  { %v3169_v30 = vpop.xlane.xlu0 %3168 }
0x2249   :  { %v3171_v31 = vmul.f32 0.015625, %v3169_v30  ;;  %v3166_v32 = vpop.xlane.xlu1 %3165 }
0x224a   :  { %v3170_v34 = vmul.f32 0.015625, %v3166_v32 }
0x224b   :  { %v3173_v35 = vadd.f32 1e-05, %v3171_v31 }
0x224c   :  { %v3172_v37 = vadd.f32 1e-05, %v3170_v34  ;;  %v3874_v34 = vld [vmem:[%s6120_s11 + $0x3] ss:$0 sm:$0xff] }
0x224d   :  { %4955 = vrsqrt.f32 %v3173_v35 }
0x224e   :  { %4957 = vrsqrt.f32 %v3172_v37 }
0x2257   :  { %v4956_v38 = vpop.eup %4955 }
0x2258   :  { %v4958_v25 = vpop.eup %4957  ;;  %v3177_v26 = vmul.f32 %v4956_v38, %v6002_v56 }
0x2259   :  { %v3176_v41 = vmul.f32 %v4958_v25, %v6004_v57  ;;  %v3871_v57 = vld [vmem:[%s6119_s10 + $0x3] ss:$0 sm:$0xff] }
0x225a   :  { %v3185_v43 = vmul.f32 %v3848_v40, %v3177_v26 }
0x225b   :  { %v3184_v45 = vmul.f32 %v3848_v40, %v3176_v41  ;;  %v3875_v40 = vld [vmem:[%s6121_s12 + $0x3] ss:$0 sm:$0xff]  ;;  %v3542_v41 = vld [vmem:[#allocation10 + $0x10] sm:$0xff] }
0x225c   :  { %v3193_v36 = vadd.f32 %v3849_v42, %v3185_v43 }
0x225d   :  { %v3192_v47 = vadd.f32 %v3849_v42, %v3184_v45  ;;  %v3543_v42 = vld [vmem:[#allocation10 + $0x18] sm:$0xff] }
0x225f   :  { %4426 = vmatprep.mubr.msk.f32.mxu0 %vm155_vm0, %v3192_v47 }
0x2260   :  { %4427 = vmatmul.mubr.msk.f32.vlgmr.msra.gmra.mrb[28].mxu0 %vm155_vm0, %v3193_v36 }
0x2261   :  { %4841 = vmatpush3.bf16.msra.mxu0 %v4838_v11 }
0x2262   :  { %4843 = vmatprep.subr.bf16.mxu0 %v4842_v0 }
0x2265   :  { %4845 = vmatpush3.bf16.msra.mxu0 %v4842_v0 }
0x2266   :  { %4847 = vmatprep.subr.bf16.mxu0 %v4846_v16 }
0x2269   :  { %4849 = vmatpush3.bf16.msra.mxu0 %v4846_v16 }
0x226a   :  { %4851 = vmatprep.subr.bf16.mxu0 %v4850_v19 }
0x226d   :  { %4853 = vmatpush3.bf16.msra.mxu0 %v4850_v19 }
0x226e   :  { %4855 = vmatprep.subr.bf16.mxu0 %v4854_v22 }
0x2333   :  { %v4428_v52 = vpop.f32.mrb[28].mxu0 }
0x2334   :  { %v3289_v54 = vadd.f32 %v4428_v52, %v3851_v50  ;;  %v3283_v44 = vpop.f32.mrb[29].mxu0 }
0x2335   :  { %v3284_v46 = vadd.f32 %v3851_v50, %v3283_v44  ;;  %v3547_v50 = vld [vmem:[#allocation10 + $0x38] sm:$0xff]  ;;  %v3549_v44 = vld [vmem:[#allocation10 + $0x48] sm:$0xff] }
0x2336   :  { %v3293_v56 = vmax.f32 %v3289_v54, 0.0  ;;  %v4866_v52 = vpack.c.bf16 %v3547_v50, %v3546_v49  ;;  %v3548_v54 = vld [vmem:[#allocation10 + $0x40] sm:$0xff] }
0x2337   :  { %v3292_v55 = vmax.f32 %v3284_v46, 0.0  ;;  %v4870_v46 = vpack.c.bf16 %v3549_v44, %v3548_v54 }
0x2339   :  { %4461 = vmatprep.mubr.f32.mxu1 %v3292_v55  ;;  %v3550_v55 = vld [vmem:[#allocation10 + $0x50] sm:$0xff] }
0x233a   :  { %4462 = vmatmul.mubr.f32.vlgmr.msra.gmra.mrb[40].mxu1 %v3293_v56  ;;  %v3551_v56 = vld [vmem:[#allocation10 + $0x58] sm:$0xff] }
0x240d   :  { %v4463_v58 = vpop.f32.mrb[40].mxu1 }
0x240e   :  { %v3391_v51 = vadd.f32 %v4463_v58, %v3871_v57  ;;  %v3385_v53 = vpop.f32.mrb[41].mxu1  ;;  %v3552_v58 = vld [vmem:[#allocation10 + $0x60] sm:$0xff] }
0x240f   :  { %v3386_v59 = vadd.f32 %v3871_v57, %v3385_v53  ;;  %v4874_v57 = vpack.c.bf16 %v3551_v56, %v3550_v55 }
0x2410   :  { %v3395_v60 = vadd.f32 %v3391_v51, %v3193_v36  ;;  %v3544_v36 = vld [vmem:[#allocation10 + $0x20] sm:$0xff]  ;;  %v3553_v51 = vld [vmem:[#allocation10 + $0x68] sm:$0xff] }
0x2411   :  { %v3394_v61 = vadd.f32 %v3386_v59, %v3192_v47  ;;  %v4858_v47 = vpack.c.bf16 %v3543_v42, %v3542_v41  ;;  %v4862_v48 = vpack.c.bf16 %v3545_v39, %v3544_v36  ;;  %v4878_v53 = vpack.c.bf16 %v3553_v51, %v3552_v58  ;;  %v3554_v59 = vld [vmem:[#allocation10 + $0x70] sm:$0xff] }
0x2412   :  { %v3403_v62 = vsel %vm155_vm0, %v3395_v60, 0.0 }
0x2413   :  { %3404 = vadd.xlane.f32.xlu0 %v3403_v62  ;;  %v3400_v63 = vsel %vm155_vm0, %v3394_v61, 0.0  ;;  %v3876_v62 = vld [vmem:[%s6123_s14] ss:$0 sm:$0xff]  ;;  %s5073_s14 = scalar_lea.vmem %s3646_s7, 256 }
0x2414   :  { %3401 = vadd.xlane.f32.xlu1 %v3400_v63  ;;  %p5074_p12 = scmp.ne.s32.totalorder %s3646_s7, %s5073_s14  ;;  %p5079_p0 = scmp.lt.s32.totalorder %s5073_s14, %s5073_s14 }
0x2416   :  { %p5080_p1 = por %p5079_p0, %p5078_p13 }
0x2418   :  { %p5081_p2 = pnand %p5080_p1, %p5074_p12 }
0x24a0   :  { %v3405_v29 = vpop.xlane.xlu0 %3404 }
0x24a1   :  { %v3407_v33 = vmul.f32 0.015625, %v3405_v29  ;;  %v3402_v1 = vpop.xlane.xlu1 %3401 }
0x24a2   :  { %v3406_v2 = vmul.f32 0.015625, %v3402_v1 }
0x24a3   :  { %v3409_v3 = vsub.f32 %v3395_v60, %v3407_v33  ;;  %v3555_v60 = vld [vmem:[#allocation10 + $0x78] sm:$0xff] }
0x24a4   :  { %v3408_v4 = vsub.f32 %v3394_v61, %v3406_v2  ;;  %v4882_v61 = vpack.c.bf16 %v3555_v60, %v3554_v59 }
0x24a5   :  { %v3411_v5 = vmul.f32 %v3409_v3, %v3409_v3 }
0x24a6   :  { %v3410_v6 = vmul.f32 %v3408_v4, %v3408_v4 }
0x24a7   :  { %v3415_v7 = vsel %vm155_vm0, %v3411_v5, 0.0 }
0x24a8   :  { %3416 = vadd.xlane.f32.xlu0 %v3415_v7  ;;  %v3412_v8 = vsel %vm155_vm0, %v3410_v6, 0.0 }
0x24a9   :  { %3413 = vadd.xlane.f32.xlu1 %v3412_v8 }
0x2535   :  { %v3417_v23 = vpop.xlane.xlu0 %3416 }
0x2536   :  { %v3419_v24 = vmul.f32 0.015625, %v3417_v23  ;;  %v3414_v27 = vpop.xlane.xlu1 %3413 }
0x2537   :  { %v3418_v28 = vmul.f32 0.015625, %v3414_v27 }
0x2538   :  { %v3421_v30 = vadd.f32 1e-05, %v3419_v24 }
0x2539   :  { %v3420_v31 = vadd.f32 1e-05, %v3418_v28 }
0x253a   :  { %4959 = vrsqrt.f32 %v3421_v30 }
0x253b   :  { %4961 = vrsqrt.f32 %v3420_v31 }
0x2544   :  { %v4960_v32 = vpop.eup %4959 }
0x2545   :  { %v4962_v35 = vpop.eup %4961  ;;  %v3425_v37 = vmul.f32 %v4960_v32, %v3409_v3 }
0x2546   :  { %v3424_v38 = vmul.f32 %v4962_v35, %v3408_v4  ;;  %v3879_v4 = vld [vmem:[%s6125_s16] ss:$0 sm:$0xff] }
0x2547   :  { %v3433_v25 = vmul.f32 %v3874_v34, %v3425_v37 }
0x2548   :  { %v3432_v26 = vmul.f32 %v3874_v34, %v3424_v38 }
0x2549   :  { %v3441_v45 = vadd.f32 %v3875_v40, %v3433_v25 }
0x254a   :  { %v3440_v43 = vadd.f32 %v3875_v40, %v3432_v26 }
0x254c   :  { %4480 = vmatprep.mubr.msk.f32.mxu0 %vm155_vm0, %v3440_v43 }
0x254d   :  { %4481 = vmatmul.mubr.msk.f32.vlgmr.msra.gmra.mrb[30].mxu0 %vm155_vm0, %v3441_v45 }
0x254e   :  { %4857 = vmatpush3.bf16.msra.mxu0 %v4854_v22 }
0x254f   :  { %4859 = vmatprep.subr.bf16.mxu0 %v4858_v47 }
0x2552   :  { %4861 = vmatpush3.bf16.msra.mxu0 %v4858_v47 }
0x2553   :  { %4863 = vmatprep.subr.bf16.mxu0 %v4862_v48 }
0x2556   :  { %4865 = vmatpush3.bf16.msra.mxu0 %v4862_v48 }
0x2557   :  { %4867 = vmatprep.subr.bf16.mxu0 %v4866_v52 }
0x255a   :  { %4869 = vmatpush3.bf16.msra.mxu0 %v4866_v52 }
0x255b   :  { %4871 = vmatprep.subr.bf16.mxu0 %v4870_v46 }
0x255e   :  { %4873 = vmatpush3.bf16.msra.mxu0 %v4870_v46 }
0x255f   :  { %4875 = vmatprep.subr.bf16.mxu0 %v4874_v57 }
0x2562   :  { %4877 = vmatpush3.bf16.msra.mxu0 %v4874_v57 }
0x2563   :  { %4879 = vmatprep.subr.bf16.mxu0 %v4878_v53 }
0x2566   :  { %4881 = vmatpush3.bf16.msra.mxu0 %v4878_v53 }
0x2567   :  { %4883 = vmatprep.subr.bf16.mxu0 %v4882_v61 }
0x256a   :  { %4885 = vmatpush3.bf16.msra.mxu0 %v4882_v61 }
0x2620   :  { %v4482_v63 = vpop.f32.mrb[30].mxu0 }
0x2621   :  { %v3535_v29 = vadd.f32 %v4482_v63, %v3876_v62  ;;  %v3529_v33 = vpop.f32.mrb[31].mxu0 }
0x2622   :  { %v3530_v1 = vadd.f32 %v3876_v62, %v3529_v33 }
0x2623   :  { %v3539_v3 = vmax.f32 %v3535_v29, 0.0 }
0x2624   :  { %v3538_v2 = vmax.f32 %v3530_v1, 0.0 }
0x2626   :  { %4515 = vmatprep.mubr.f32.mxu0 %v3538_v2 }
0x2627   :  { %4516 = vmatmul.mubr.f32.vlgmr.msra.gmra.mrb[32].mxu0 %v3539_v3 }
0x26fa   :  { %v4517_v5 = vpop.f32.mrb[32].mxu0 }
0x26fb   :  { %v3635_v6 = vadd.f32 %v4517_v5, %v3879_v4  ;;  %v3629_v7 = vpop.f32.mrb[33].mxu0 }
0x26fc   :  { %v3630_v8 = vadd.f32 %v3879_v4, %v3629_v7 }
0x26fd   :  { %3639 = vst [vmem:[#allocation11 + $0x8] sm:$0xff] %v3635_v6 }
0x26fe   :  { %3638 = vst [vmem:[#allocation11] sm:$0xff] %v3630_v8 }
0x26ff   :  { %5084 = shalt.err (!%p5081_p2)
}
0x2700   :  { %s6135_s20 = sld [smem:[#allocation18_spill]] }
0x2706   :  { %s5085_s16 = scalar_lea.hbm %s6135_s20, 256 }
0x2707   :  { %p5086_p3 = scmp.ne.s32.totalorder %s6135_s20, %s5085_s16  ;;  %p5089_p4 = scmp.lt.u32.totalorder %s5085_s16, %s6135_s20 }
0x2709   :  { %p5091_p5 = pnand %p5089_p4, %p5086_p3 }
0x270b   :  { %5094 = shalt.err (!%p5091_p5)
}
0x270c   :  { %3651 = dma.vmem_to_hbm [thread:$0]  %s3646_s7, 256, %s6135_s20, [#allocation4], %s5108_s25, %s5108_s25, %s5109_s1  }
0x270d   :  { %5101 = dma.done.wait [#allocation4], 256  }
0x270e   :  { %5102 = vsyncadd [#allocation4], 4294967040 }
0x270f   :  { %3655 = vsyncpa [#allocation3], 1 }
0x2710   :  { %3656 = vsyncpa [#allocation6], 1 }
0x2711   :  { %3657 = vsyncpa [#allocation9], 1 }
0x2712   :  { %3658 = vsyncpa [#allocation4], 1 }

</bundles_post_ra>
